<compile_context>
chip_gen: v7x
topology: tpu7x:2x2x1
jax: 0.10.0
libtpu: 0.0.40
codegen_flags: <defaults>
</compile_context>

<pallas_src>
import functools

import jax
import jax.numpy as jnp
from jax.experimental import pallas as pl
from jax.experimental.pallas import tpu as pltpu

LANE = 128
SUBLANE = 8
KK = 16            # 4x4 kernel -> 16 taps
BN_EPS = 1e-5


def _tpu_defaults():
    # v5e / v6e: 128 MiB physical VMEM -> big tiles + 64 MiB scoped limit.
    # v7x: 64 MiB physical VMEM -> keep tiles <= 512 and a 32 MiB limit.
    try:
        kind = jax.devices()[0].device_kind.lower()
    except Exception:
        kind = ""
    if "v7" in kind:
        return 512, 32 * 1024 * 1024
    return 1024, 64 * 1024 * 1024


TILE_M_MAX, VMEM_LIMIT = _tpu_defaults()


def _round_up(x, m):
    return ((x + m - 1) // m) * m


# ----------------------------------------------------------------------------
# In-kernel helpers
# ----------------------------------------------------------------------------
def _make_lhs(p_ref, scale_ref, shift_ref):
    """Optionally fuse the previous layer's BatchNorm + LeakyReLU(0.2) into the
    patch tile right after DMA (replaces the old standalone bn_lrelu kernel)."""
    if scale_ref is None:
        return p_ref[...]                       # already activated, bf16
    x = p_ref[...].astype(jnp.float32) * scale_ref[...] + shift_ref[...]
    x = jnp.where(x > 0.0, x, 0.2 * x)
    return x.astype(jnp.bfloat16)


# ----------------------------------------------------------------------------
# Kernel A: tiled (patches @ W) with optional BN+LReLU prologue and a fused
#           activation epilogue (LeakyReLU or exact Sigmoid).
# ----------------------------------------------------------------------------
def _conv_act_kernel(p_ref, *rest, act):
    if len(rest) == 4:
        scale_ref, shift_ref, w_ref, o_ref = rest
    else:
        w_ref, o_ref = rest
        scale_ref = shift_ref = None
    lhs = _make_lhs(p_ref, scale_ref, shift_ref)
    y = jnp.dot(lhs, w_ref[...], preferred_element_type=jnp.float32)
    if act == "lrelu":
        y = jnp.where(y > 0.0, y, 0.2 * y)
    elif act == "sigmoid":
        y = 1.0 / (1.0 + jnp.exp(-y))           # exact sigmoid (parity w/ torch)
    o_ref[...] = y.astype(o_ref.dtype)


def conv_matmul_act(patches, w2d, *, tile_m, act, out_dtype, scale=None, shift=None):
    Mp, K = patches.shape
    Cp = w2d.shape[1]
    ntiles = Mp // tile_m
    in_specs = [pl.BlockSpec((tile_m, K), lambda i: (i, 0))]
    args = [patches]
    if scale is not None:
        in_specs += [pl.BlockSpec((1, K), lambda i: (0, 0)),
                     pl.BlockSpec((1, K), lambda i: (0, 0))]
        args += [scale, shift]
    # TODO(synk): pipeline_mode=pl.Buffered(1) on this constant weight block (v7x).
    in_specs.append(pl.BlockSpec((K, Cp), lambda i: (0, 0)))
    args.append(w2d)
    out_bytes = Mp * Cp * jnp.dtype(out_dtype).itemsize
    return pl.pallas_call(
        functools.partial(_conv_act_kernel, act=act),
        out_shape=jax.ShapeDtypeStruct((Mp, Cp), out_dtype),
        grid=(ntiles,),
        in_specs=in_specs,
        out_specs=pl.BlockSpec((tile_m, Cp), lambda i: (i, 0)),
        compiler_params=pltpu.CompilerParams(
            dimension_semantics=("parallel",),
            vmem_limit_bytes=VMEM_LIMIT,
        ),
        cost_estimate=pl.CostEstimate(
            flops=2 * Mp * K * Cp + (4 * Mp * K if scale is not None else 0),
            transcendentals=Mp * Cp if act == "sigmoid" else 0,
            bytes_accessed=Mp * K * 2 + K * Cp * 2 + out_bytes,
        ),
    )(*args)


# ----------------------------------------------------------------------------
# Kernel B: tiled (patches @ W) with optional BN+LReLU prologue, bf16 raw
#           output, plus per-tile partial sum / sum-of-squares (BN pass 1).
#           Every grid step writes its own partial -> the M axis is "parallel"
#           (megacore-shardable); partials are reduced in glue.
# ----------------------------------------------------------------------------
def _conv_stats_kernel(p_ref, *rest, tile_m, m_true):
    if len(rest) == 6:
        scale_ref, shift_ref, w_ref, y_ref, sum_ref, ssq_ref = rest
    else:
        w_ref, y_ref, sum_ref, ssq_ref = rest
        scale_ref = shift_ref = None
    lhs = _make_lhs(p_ref, scale_ref, shift_ref)
    y = jnp.dot(lhs, w_ref[...], preferred_element_type=jnp.float32)
    y_ref[...] = y.astype(y_ref.dtype)
    # Mask padded M rows so the batch statistics are exact.
    row = (jax.lax.broadcasted_iota(jnp.int32, (tile_m, 1), 0)
           + pl.program_id(0) * tile_m)
    ym = y * (row < m_true).astype(jnp.float32)
    s = jnp.sum(ym, axis=0, keepdims=True)        # (1, Cp)
    q = jnp.sum(ym * ym, axis=0, keepdims=True)   # (1, Cp)
    sum_ref[...] = s.reshape(1, 1, -1)
    ssq_ref[...] = q.reshape(1, 1, -1)


def conv_matmul_stats(patches, w2d, *, tile_m, m_true, scale=None, shift=None):
    Mp, K = patches.shape
    Cp = w2d.shape[1]
    ntiles = Mp // tile_m
    in_specs = [pl.BlockSpec((tile_m, K), lambda i: (i, 0))]
    args = [patches]
    if scale is not None:
        in_specs += [pl.BlockSpec((1, K), lambda i: (0, 0)),
                     pl.BlockSpec((1, K), lambda i: (0, 0))]
        args += [scale, shift]
    in_specs.append(pl.BlockSpec((K, Cp), lambda i: (0, 0)))
    args.append(w2d)
    return pl.pallas_call(
        functools.partial(_conv_stats_kernel, tile_m=tile_m, m_true=m_true),
        out_shape=(
            jax.ShapeDtypeStruct((Mp, Cp), jnp.bfloat16),        # raw conv out
            jax.ShapeDtypeStruct((ntiles, 1, Cp), jnp.float32),  # partial sum
            jax.ShapeDtypeStruct((ntiles, 1, Cp), jnp.float32),  # partial ssq
        ),
        grid=(ntiles,),
        in_specs=in_specs,
        out_specs=(
            pl.BlockSpec((tile_m, Cp), lambda i: (i, 0)),
            pl.BlockSpec((1, 1, Cp), lambda i: (i, 0, 0)),
            pl.BlockSpec((1, 1, Cp), lambda i: (i, 0, 0)),
        ),
        compiler_params=pltpu.CompilerParams(
            dimension_semantics=("parallel",),
            vmem_limit_bytes=VMEM_LIMIT,
        ),
        cost_estimate=pl.CostEstimate(
            flops=2 * Mp * K * Cp + 6 * Mp * Cp
            + (4 * Mp * K if scale is not None else 0),
            transcendentals=0,
            bytes_accessed=Mp * K * 2 + K * Cp * 2 + Mp * Cp * 2
            + 2 * ntiles * Cp * 4,
        ),
    )(*args)


# ----------------------------------------------------------------------------
# Plain-JAX glue: spatial padding (per-channel fill) + im2col.
# TODO(synk): fuse im2col into the Pallas kernels to remove the ~4x HBM patch
# round-trip (requires in-kernel strided minor-dim slices / reshapes).
# ----------------------------------------------------------------------------
def pad_nhwc(x, pad, pad_val_c):
    """Spatial padding with a per-channel fill value.  For BN-prologue layers
    the fill satisfies scale*v + shift == 0, so padded border pixels map to
    exactly 0 after the fused BN + LeakyReLU (matching PyTorch's zero-pad of
    the post-BN activation)."""
    if pad == 0:
        return x
    N, H, W, C = x.shape
    base = jnp.broadcast_to(
        pad_val_c.astype(x.dtype).reshape(1, 1, 1, C),
        (N, H + 2 * pad, W + 2 * pad, C))
    return jax.lax.dynamic_update_slice(base, x, (0, pad, pad, 0))


def im2col(x_pad, k, stride):
    N, H, W, C = x_pad.shape
    Ho = (H - k) // stride + 1
    Wo = (W - k) // stride + 1
    cols = []
    for i in range(k):
        for j in range(k):
            cols.append(
                x_pad[:, i:i + stride * Ho:stride, j:j + stride * Wo:stride, :])
    p = jnp.stack(cols, axis=3)  # (N, Ho, Wo, k*k, C) — tap-major, channel-minor
    return p.reshape(N * Ho * Wo, k * k * C), (N, Ho, Wo)


def conv_layer(x_nhwc, layer, *, stride, pad, in_bn, mode, act=None):
    """One Conv2d(4x4, bias=False) layer.

    in_bn is None   -> x_nhwc is already activated; zero spatial padding.
    in_bn is a dict -> x_nhwc is the previous conv's RAW output; the previous
                       BatchNorm + LeakyReLU(0.2) run in this kernel's prologue
                       (per-K-column scale/shift), border padded with padval.
    mode == "act"   -> fused lrelu / sigmoid epilogue, returns NHWC.
    mode == "stats" -> raw conv output + batch stats, returns (NHWC, bn dict).
    """
    cin = x_nhwc.shape[-1]
    if in_bn is None:
        padval = jnp.zeros((cin,), jnp.float32)
        scale_k = shift_k = None
    else:
        padval = in_bn["padval"]
        Kc = KK * cin
        scale_k = jnp.tile(in_bn["scale"], KK).reshape(1, Kc).astype(jnp.float32)
        shift_k = jnp.tile(in_bn["shift"], KK).reshape(1, Kc).astype(jnp.float32)

    xp = pad_nhwc(x_nhwc, pad, padval)
    patches, (N, Ho, Wo) = im2col(xp, 4, stride)
    patches = patches.astype(jnp.bfloat16)
    M, K = patches.shape
    tile_m = min(TILE_M_MAX, _round_up(M, SUBLANE))
    Mp = _round_up(M, tile_m)
    if Mp != M:
        patches = jnp.pad(patches, ((0, Mp - M), (0, 0)))

    w2d = layer["w2d"]
    cout = layer["cout"]

    if mode == "stats":
        y, psum, pssq = conv_matmul_stats(
            patches, w2d, tile_m=tile_m, m_true=M, scale=scale_k, shift=shift_k)
        ssum = jnp.sum(psum, axis=(0, 1))[:cout]
        ssq = jnp.sum(pssq, axis=(0, 1))[:cout]
        mean = ssum / M
        var = jnp.maximum(ssq / M - mean * mean, 0.0)          # biased variance
        scale = layer["gamma"] * jax.lax.rsqrt(var + BN_EPS)
        shift = layer["beta"] - mean * scale
        safe = jnp.abs(scale) > 1e-12
        pad_next = jnp.where(safe, -shift / jnp.where(safe, scale, 1.0), 0.0)
        out = y[:M, :cout].reshape(N, Ho, Wo, cout)
        return out, {"scale": scale, "shift": shift, "padval": pad_next}

    out_dtype = jnp.float32 if act == "sigmoid" else jnp.bfloat16
    y = conv_matmul_act(patches, w2d, tile_m=tile_m, act=act,
                        out_dtype=out_dtype, scale=scale_k, shift=shift_k)
    return y[:M, :cout].reshape(N, Ho, Wo, cout)


# ----------------------------------------------------------------------------
# Parameters: DCGAN-style init; weight layout / channel padding hoisted to
# init time (lane-dense Cout padded to 128, bf16 matmul operands).
# ----------------------------------------------------------------------------
def _prep_conv(w_oihw, gamma=None, beta=None):
    cout, cin, kh, kw = w_oihw.shape
    K = kh * kw * cin
    Cp = _round_up(cout, LANE)
    # (O,I,H,W) -> (H,W,I,O) -> (K, O): tap-major, channel-minor rows.
    w2d = jnp.transpose(w_oihw, (2, 3, 1, 0)).reshape(K, cout)
    w2d = jnp.pad(w2d, ((0, 0), (0, Cp - cout))).astype(jnp.bfloat16)
    layer = {"w2d": w2d, "cout": cout}
    if gamma is not None:
        layer["gamma"] = gamma.astype(jnp.float32)
        layer["beta"] = beta.astype(jnp.float32)
    return layer


def init_discriminator_params(key, ngf, nc):
    def w(k, shape):
        return 0.02 * jax.random.normal(k, shape, dtype=jnp.float32)

    ks = jax.random.split(key, 8)
    return [
        _prep_conv(w(ks[0], (ngf, nc, 4, 4))),
        _prep_conv(w(ks[1], (ngf, ngf, 4, 4)),
                   1.0 + 0.02 * jax.random.normal(ks[5], (ngf,), jnp.float32),
                   jnp.zeros((ngf,), jnp.float32)),
        _prep_conv(w(ks[2], (2 * ngf, ngf, 4, 4)),
                   1.0 + 0.02 * jax.random.normal(ks[6], (2 * ngf,), jnp.float32),
                   jnp.zeros((2 * ngf,), jnp.float32)),
        _prep_conv(w(ks[3], (4 * ngf, 2 * ngf, 4, 4)),
                   1.0 + 0.02 * jax.random.normal(ks[7], (4 * ngf,), jnp.float32),
                   jnp.zeros((4 * ngf,), jnp.float32)),
        _prep_conv(w(ks[4], (1, 4 * ngf, 4, 4))),
    ]


def discriminator_forward(layers, imgs_nchw):
    # NCHW -> NHWC
    x = jnp.transpose(imgs_nchw.astype(jnp.float32), (0, 2, 3, 1))
    # Conv1 + LeakyReLU (no BN), bf16 activation out.
    x = conv_layer(x, layers[0], stride=2, pad=1, in_bn=None, mode="act",
                   act="lrelu")
    # Conv2/3/4 emit raw outputs + batch stats; their BN + LeakyReLU are fused
    # into the NEXT conv's prologue.
    x, bn = conv_layer(x, layers[1], stride=2, pad=1, in_bn=None, mode="stats")
    x, bn = conv_layer(x, layers[2], stride=2, pad=1, in_bn=bn, mode="stats")
    x, bn = conv_layer(x, layers[3], stride=2, pad=1, in_bn=bn, mode="stats")
    # Conv5 applies BN4 + LeakyReLU in its prologue and Sigmoid in its epilogue.
    x = conv_layer(x, layers[4], stride=1, pad=0, in_bn=bn, mode="act",
                   act="sigmoid")
    # NHWC (N,1,1,1) -> NCHW (N,1,1,1), same as the PyTorch output shape.
    return jnp.transpose(x, (0, 3, 1, 2))


if __name__ == "__main__":
    key = jax.random.PRNGKey(0)
    k_params, k_x = jax.random.split(key)

    ngpu = 1               # unused by forward
    gen_features = 8       # small ngf
    num_channels = 3
    batch = 2
    spatial = 64           # DCGAN discriminator requires 64x64 inputs

    layers = init_discriminator_params(k_params, gen_features, num_channels)
    imgs = jax.random.normal(
        k_x, (batch, num_channels, spatial, spatial), dtype=jnp.float32)

    fwd = jax.jit(functools.partial(discriminator_forward, layers))
    out = jax.block_until_ready(fwd(imgs))
    assert out.shape == (batch, 1, 1, 1), out.shape
    assert bool(jnp.all(jnp.isfinite(out)))
    assert bool(jnp.all((out >= 0.0) & (out <= 1.0)))
    print("KERNEL_OK")
</pallas_src>

<mosaic_0001>
module attributes {stable_mosaic.version = 11 : i64} {
  func.func @_conv_act_kernel(%arg0: i32, %arg1: memref<1024x48xbf16, #tpu.memory_space<vmem>>, %arg2: memref<48x128xbf16, #tpu.memory_space<vmem>>, %arg3: memref<1024x128xbf16, #tpu.memory_space<vmem>>) attributes {dimension_semantics = [#tpu.dimension_semantics<parallel>], iteration_bounds = array<i64: 2>, scalar_prefetch = 0 : i64, scratch_operands = 0 : i64, tpu.core_type = #tpu.core_type<tc>, window_params = [{transform_indices = @transform_0, window_bounds = array<i64: 1024, 48>}, {pipeline_mode = #tpu.pipeline_mode<synchronous>, transform_indices = @transform_1, window_bounds = array<i64: 48, 128>}, {transform_indices = @transform_2, window_bounds = array<i64: 1024, 128>}]} {
    %c0 = arith.constant 0 : index
    %c0_0 = arith.constant 0 : index
    %0 = vector.load %arg1[%c0, %c0_0] : memref<1024x48xbf16, #tpu.memory_space<vmem>>, vector<1024x48xbf16>
    %c0_1 = arith.constant 0 : index
    %c0_2 = arith.constant 0 : index
    %1 = vector.load %arg2[%c0_1, %c0_2] : memref<48x128xbf16, #tpu.memory_space<vmem>>, vector<48x128xbf16>
    %cst = arith.constant dense<0.000000e+00> : vector<1024x128xf32>
    %2 = tpu.matmul %0, %1, %cst {dimension_numbers = #tpu.dot_dimension_numbers<[1], [0], [0], [1], [0, 0, 1, 1], [], []>} : vector<1024x48xbf16>, vector<48x128xbf16>, vector<1024x128xf32> -> vector<1024x128xf32>
    %cst_3 = arith.constant 0.000000e+00 : f32
    %3 = vector.broadcast %cst_3 : f32 to vector<1024x128xf32>
    %4 = arith.cmpf ogt, %2, %3 : vector<1024x128xf32>
    %cst_4 = arith.constant 2.000000e-01 : f32
    %5 = vector.broadcast %cst_4 : f32 to vector<1024x128xf32>
    %6 = arith.mulf %5, %2 : vector<1024x128xf32>
    %7 = arith.select %4, %2, %6 : vector<1024x128xi1>, vector<1024x128xf32>
    %8 = arith.truncf %7 : vector<1024x128xf32> to vector<1024x128xbf16>
    %c0_5 = arith.constant 0 : index
    %c0_6 = arith.constant 0 : index
    %9 = vector.load %arg3[%c0_5, %c0_6] : memref<1024x128xbf16, #tpu.memory_space<vmem>>, vector<1024x128xbf16>
    tpu.vector_store %arg3[%c0_5, %c0_6], %8 {strides = array<i32>} : memref<1024x128xbf16, #tpu.memory_space<vmem>>, vector<1024x128xbf16>,
    return
  }
  func.func @transform_0(%arg0: i32) -> (i32, i32) {
    %c0_i32 = arith.constant 0 : i32
    %c0_i32_0 = arith.constant 0 : i32
    return %arg0, %c0_i32 : i32, i32
  }
  func.func @transform_1(%arg0: i32) -> (i32, i32) {
    %c0_i32 = arith.constant 0 : i32
    %c0_i32_0 = arith.constant 0 : i32
    %c0_i32_1 = arith.constant 0 : i32
    return %c0_i32, %c0_i32_0 : i32, i32
  }
  func.func @transform_2(%arg0: i32) -> (i32, i32) {
    %c0_i32 = arith.constant 0 : i32
    %c0_i32_0 = arith.constant 0 : i32
    return %arg0, %c0_i32 : i32, i32
  }
}

module attributes {stable_mosaic.version = 11 : i64} {
  func.func @_conv_stats_kernel(%arg0: i32, %arg1: memref<512x128xbf16, #tpu.memory_space<vmem>>, %arg2: memref<128x128xbf16, #tpu.memory_space<vmem>>, %arg3: memref<512x128xbf16, #tpu.memory_space<vmem>>, %arg4: memref<1x1x128xf32, #tpu.memory_space<vmem>>, %arg5: memref<1x1x128xf32, #tpu.memory_space<vmem>>) attributes {dimension_semantics = [#tpu.dimension_semantics<parallel>], iteration_bounds = array<i64: 1>, scalar_prefetch = 0 : i64, scratch_operands = 0 : i64, tpu.core_type = #tpu.core_type<tc>, window_params = [{transform_indices = @transform_0, window_bounds = array<i64: 512, 128>}, {pipeline_mode = #tpu.pipeline_mode<synchronous>, transform_indices = @transform_1, window_bounds = array<i64: 128, 128>}, {transform_indices = @transform_2, window_bounds = array<i64: 512, 128>}, {transform_indices = @transform_3, window_bounds = array<i64: 1, 1, 128>}, {transform_indices = @transform_4, window_bounds = array<i64: 1, 1, 128>}]} {
    %c0 = arith.constant 0 : index
    %c0_0 = arith.constant 0 : index
    %0 = vector.load %arg1[%c0, %c0_0] : memref<512x128xbf16, #tpu.memory_space<vmem>>, vector<512x128xbf16>
    %c0_1 = arith.constant 0 : index
    %c0_2 = arith.constant 0 : index
    %1 = vector.load %arg2[%c0_1, %c0_2] : memref<128x128xbf16, #tpu.memory_space<vmem>>, vector<128x128xbf16>
    %cst = arith.constant dense<0.000000e+00> : vector<512x128xf32>
    %2 = tpu.matmul %0, %1, %cst {dimension_numbers = #tpu.dot_dimension_numbers<[1], [0], [0], [1], [0, 0, 1, 1], [], []>} : vector<512x128xbf16>, vector<128x128xbf16>, vector<512x128xf32> -> vector<512x128xf32>
    %3 = arith.truncf %2 : vector<512x128xf32> to vector<512x128xbf16>
    %c0_3 = arith.constant 0 : index
    %c0_4 = arith.constant 0 : index
    %4 = vector.load %arg3[%c0_3, %c0_4] : memref<512x128xbf16, #tpu.memory_space<vmem>>, vector<512x128xbf16>
    tpu.vector_store %arg3[%c0_3, %c0_4], %3 {strides = array<i32>} : memref<512x128xbf16, #tpu.memory_space<vmem>>, vector<512x128xbf16>,
    %5 = tpu.iota {dimensions = array<i32: 0>} : vector<512x1xi32>
    %c512_i32 = arith.constant 512 : i32
    %6 = arith.muli %arg0, %c512_i32 : i32
    %7 = vector.broadcast %6 : i32 to vector<512x1xi32>
    %8 = arith.addi %5, %7 : vector<512x1xi32>
    %c512_i32_5 = arith.constant 512 : i32
    %9 = vector.broadcast %c512_i32_5 : i32 to vector<512x1xi32>
    %10 = arith.cmpi slt, %8, %9 : vector<512x1xi32>
    %11 = arith.extui %10 : vector<512x1xi1> to vector<512x1xi32>
    %12 = arith.sitofp %11 : vector<512x1xi32> to vector<512x1xf32>
    %13 = vector.broadcast %12 : vector<512x1xf32> to vector<512x128xf32>
    %14 = arith.mulf %2, %13 : vector<512x128xf32>
    %cst_6 = arith.constant dense<0.000000e+00> : vector<128xf32>
    %15 = vector.multi_reduction <add>, %14, %cst_6 [0] : vector<512x128xf32> to vector<128xf32>
    %16 = vector.shape_cast %15 : vector<128xf32> to vector<1x128xf32>
    %17 = arith.mulf %14, %14 : vector<512x128xf32>
    %cst_7 = arith.constant dense<0.000000e+00> : vector<128xf32>
    %18 = vector.multi_reduction <add>, %17, %cst_7 [0] : vector<512x128xf32> to vector<128xf32>
    %19 = vector.shape_cast %18 : vector<128xf32> to vector<1x128xf32>
    %20 = vector.shape_cast %16 : vector<1x128xf32> to vector<1x1x128xf32>
    %c0_8 = arith.constant 0 : index
    %c0_9 = arith.constant 0 : index
    %c0_10 = arith.constant 0 : index
    %21 = vector.load %arg4[%c0_8, %c0_9, %c0_10] : memref<1x1x128xf32, #tpu.memory_space<vmem>>, vector<1x1x128xf32>
    tpu.vector_store %arg4[%c0_8, %c0_9, %c0_10], %20 {strides = array<i32>} : memref<1x1x128xf32, #tpu.memory_space<vmem>>, vector<1x1x128xf32>,
    %22 = vector.shape_cast %19 : vector<1x128xf32> to vector<1x1x128xf32>
    %c0_11 = arith.constant 0 : index
    %c0_12 = arith.constant 0 : index
    %c0_13 = arith.constant 0 : index
    %23 = vector.load %arg5[%c0_11, %c0_12, %c0_13] : memref<1x1x128xf32, #tpu.memory_space<vmem>>, vector<1x1x128xf32>
    tpu.vector_store %arg5[%c0_11, %c0_12, %c0_13], %22 {strides = array<i32>} : memref<1x1x128xf32, #tpu.memory_space<vmem>>, vector<1x1x128xf32>,
    return
  }
  func.func @transform_0(%arg0: i32) -> (i32, i32) {
    %c0_i32 = arith.constant 0 : i32
    %c0_i32_0 = arith.constant 0 : i32
    return %arg0, %c0_i32 : i32, i32
  }
  func.func @transform_1(%arg0: i32) -> (i32, i32) {
    %c0_i32 = arith.constant 0 : i32
    %c0_i32_0 = arith.constant 0 : i32
    %c0_i32_1 = arith.constant 0 : i32
    return %c0_i32, %c0_i32_0 : i32, i32
  }
  func.func @transform_2(%arg0: i32) -> (i32, i32) {
    %c0_i32 = arith.constant 0 : i32
    %c0_i32_0 = arith.constant 0 : i32
    return %arg0, %c0_i32 : i32, i32
  }
  func.func @transform_3(%arg0: i32) -> (i32, i32, i32) {
    %c0_i32 = arith.constant 0 : i32
    %c0_i32_0 = arith.constant 0 : i32
    %c0_i32_1 = arith.constant 0 : i32
    return %arg0, %c0_i32, %c0_i32_0 : i32, i32, i32
  }
  func.func @transform_4(%arg0: i32) -> (i32, i32, i32) {
    %c0_i32 = arith.constant 0 : i32
    %c0_i32_0 = arith.constant 0 : i32
    %c0_i32_1 = arith.constant 0 : i32
    return %arg0, %c0_i32, %c0_i32_0 : i32, i32, i32
  }
}

module attributes {stable_mosaic.version = 11 : i64} {
  func.func @_conv_stats_kernel(%arg0: i32, %arg1: memref<128x128xbf16, #tpu.memory_space<vmem>>, %arg2: memref<1x128xf32, #tpu.memory_space<vmem>>, %arg3: memref<1x128xf32, #tpu.memory_space<vmem>>, %arg4: memref<128x128xbf16, #tpu.memory_space<vmem>>, %arg5: memref<128x128xbf16, #tpu.memory_space<vmem>>, %arg6: memref<1x1x128xf32, #tpu.memory_space<vmem>>, %arg7: memref<1x1x128xf32, #tpu.memory_space<vmem>>) attributes {dimension_semantics = [#tpu.dimension_semantics<parallel>], iteration_bounds = array<i64: 1>, scalar_prefetch = 0 : i64, scratch_operands = 0 : i64, tpu.core_type = #tpu.core_type<tc>, window_params = [{transform_indices = @transform_0, window_bounds = array<i64: 128, 128>}, {pipeline_mode = #tpu.pipeline_mode<synchronous>, transform_indices = @transform_1, window_bounds = array<i64: 1, 128>}, {pipeline_mode = #tpu.pipeline_mode<synchronous>, transform_indices = @transform_2, window_bounds = array<i64: 1, 128>}, {pipeline_mode = #tpu.pipeline_mode<synchronous>, transform_indices = @transform_3, window_bounds = array<i64: 128, 128>}, {transform_indices = @transform_4, window_bounds = array<i64: 128, 128>}, {transform_indices = @transform_5, window_bounds = array<i64: 1, 1, 128>}, {transform_indices = @transform_6, window_bounds = array<i64: 1, 1, 128>}]} {
    %c0 = arith.constant 0 : index
    %c0_0 = arith.constant 0 : index
    %0 = vector.load %arg1[%c0, %c0_0] : memref<128x128xbf16, #tpu.memory_space<vmem>>, vector<128x128xbf16>
    %1 = arith.extf %0 : vector<128x128xbf16> to vector<128x128xf32>
    %c0_1 = arith.constant 0 : index
    %c0_2 = arith.constant 0 : index
    %2 = vector.load %arg2[%c0_1, %c0_2] : memref<1x128xf32, #tpu.memory_space<vmem>>, vector<1x128xf32>
    %3 = vector.broadcast %2 : vector<1x128xf32> to vector<128x128xf32>
    %4 = arith.mulf %1, %3 : vector<128x128xf32>
    %c0_3 = arith.constant 0 : index
    %c0_4 = arith.constant 0 : index
    %5 = vector.load %arg3[%c0_3, %c0_4] : memref<1x128xf32, #tpu.memory_space<vmem>>, vector<1x128xf32>
    %6 = vector.broadcast %5 : vector<1x128xf32> to vector<128x128xf32>
    %7 = arith.addf %4, %6 : vector<128x128xf32>
    %cst = arith.constant 0.000000e+00 : f32
    %8 = vector.broadcast %cst : f32 to vector<128x128xf32>
    %9 = arith.cmpf ogt, %7, %8 : vector<128x128xf32>
    %cst_5 = arith.constant 2.000000e-01 : f32
    %10 = vector.broadcast %cst_5 : f32 to vector<128x128xf32>
    %11 = arith.mulf %10, %7 : vector<128x128xf32>
    %12 = arith.select %9, %7, %11 : vector<128x128xi1>, vector<128x128xf32>
    %13 = arith.truncf %12 : vector<128x128xf32> to vector<128x128xbf16>
    %c0_6 = arith.constant 0 : index
    %c0_7 = arith.constant 0 : index
    %14 = vector.load %arg4[%c0_6, %c0_7] : memref<128x128xbf16, #tpu.memory_space<vmem>>, vector<128x128xbf16>
    %cst_8 = arith.constant dense<0.000000e+00> : vector<128x128xf32>
    %15 = tpu.matmul %13, %14, %cst_8 {dimension_numbers = #tpu.dot_dimension_numbers<[1], [0], [0], [1], [0, 0, 1, 1], [], []>} : vector<128x128xbf16>, vector<128x128xbf16>, vector<128x128xf32> -> vector<128x128xf32>
    %16 = arith.truncf %15 : vector<128x128xf32> to vector<128x128xbf16>
    %c0_9 = arith.constant 0 : index
    %c0_10 = arith.constant 0 : index
    %17 = vector.load %arg5[%c0_9, %c0_10] : memref<128x128xbf16, #tpu.memory_space<vmem>>, vector<128x128xbf16>
    tpu.vector_store %arg5[%c0_9, %c0_10], %16 {strides = array<i32>} : memref<128x128xbf16, #tpu.memory_space<vmem>>, vector<128x128xbf16>,
    %18 = tpu.iota {dimensions = array<i32: 0>} : vector<128x1xi32>
    %c128_i32 = arith.constant 128 : i32
    %19 = arith.muli %arg0, %c128_i32 : i32
    %20 = vector.broadcast %19 : i32 to vector<128x1xi32>
    %21 = arith.addi %18, %20 : vector<128x1xi32>
    %c128_i32_11 = arith.constant 128 : i32
    %22 = vector.broadcast %c128_i32_11 : i32 to vector<128x1xi32>
    %23 = arith.cmpi slt, %21, %22 : vector<128x1xi32>
    %24 = arith.extui %23 : vector<128x1xi1> to vector<128x1xi32>
    %25 = arith.sitofp %24 : vector<128x1xi32> to vector<128x1xf32>
    %26 = vector.broadcast %25 : vector<128x1xf32> to vector<128x128xf32>
    %27 = arith.mulf %15, %26 : vector<128x128xf32>
    %cst_12 = arith.constant dense<0.000000e+00> : vector<128xf32>
    %28 = vector.multi_reduction <add>, %27, %cst_12 [0] : vector<128x128xf32> to vector<128xf32>
    %29 = vector.shape_cast %28 : vector<128xf32> to vector<1x128xf32>
    %30 = arith.mulf %27, %27 : vector<128x128xf32>
    %cst_13 = arith.constant dense<0.000000e+00> : vector<128xf32>
    %31 = vector.multi_reduction <add>, %30, %cst_13 [0] : vector<128x128xf32> to vector<128xf32>
    %32 = vector.shape_cast %31 : vector<128xf32> to vector<1x128xf32>
    %33 = vector.shape_cast %29 : vector<1x128xf32> to vector<1x1x128xf32>
    %c0_14 = arith.constant 0 : index
    %c0_15 = arith.constant 0 : index
    %c0_16 = arith.constant 0 : index
    %34 = vector.load %arg6[%c0_14, %c0_15, %c0_16] : memref<1x1x128xf32, #tpu.memory_space<vmem>>, vector<1x1x128xf32>
    tpu.vector_store %arg6[%c0_14, %c0_15, %c0_16], %33 {strides = array<i32>} : memref<1x1x128xf32, #tpu.memory_space<vmem>>, vector<1x1x128xf32>,
    %35 = vector.shape_cast %32 : vector<1x128xf32> to vector<1x1x128xf32>
    %c0_17 = arith.constant 0 : index
    %c0_18 = arith.constant 0 : index
    %c0_19 = arith.constant 0 : index
    %36 = vector.load %arg7[%c0_17, %c0_18, %c0_19] : memref<1x1x128xf32, #tpu.memory_space<vmem>>, vector<1x1x128xf32>
    tpu.vector_store %arg7[%c0_17, %c0_18, %c0_19], %35 {strides = array<i32>} : memref<1x1x128xf32, #tpu.memory_space<vmem>>, vector<1x1x128xf32>,
    return
  }
  func.func @transform_0(%arg0: i32) -> (i32, i32) {
    %c0_i32 = arith.constant 0 : i32
    %c0_i32_0 = arith.constant 0 : i32
    return %arg0, %c0_i32 : i32, i32
  }
  func.func @transform_1(%arg0: i32) -> (i32, i32) {
    %c0_i32 = arith.constant 0 : i32
    %c0_i32_0 = arith.constant 0 : i32
    %c0_i32_1 = arith.constant 0 : i32
    return %c0_i32, %c0_i32_0 : i32, i32
  }
  func.func @transform_2(%arg0: i32) -> (i32, i32) {
    %c0_i32 = arith.constant 0 : i32
    %c0_i32_0 = arith.constant 0 : i32
    %c0_i32_1 = arith.constant 0 : i32
    return %c0_i32, %c0_i32_0 : i32, i32
  }
  func.func @transform_3(%arg0: i32) -> (i32, i32) {
    %c0_i32 = arith.constant 0 : i32
    %c0_i32_0 = arith.constant 0 : i32
    %c0_i32_1 = arith.constant 0 : i32
    return %c0_i32, %c0_i32_0 : i32, i32
  }
  func.func @transform_4(%arg0: i32) -> (i32, i32) {
    %c0_i32 = arith.constant 0 : i32
    %c0_i32_0 = arith.constant 0 : i32
    return %arg0, %c0_i32 : i32, i32
  }
  func.func @transform_5(%arg0: i32) -> (i32, i32, i32) {
    %c0_i32 = arith.constant 0 : i32
    %c0_i32_0 = arith.constant 0 : i32
    %c0_i32_1 = arith.constant 0 : i32
    return %arg0, %c0_i32, %c0_i32_0 : i32, i32, i32
  }
  func.func @transform_6(%arg0: i32) -> (i32, i32, i32) {
    %c0_i32 = arith.constant 0 : i32
    %c0_i32_0 = arith.constant 0 : i32
    %c0_i32_1 = arith.constant 0 : i32
    return %arg0, %c0_i32, %c0_i32_0 : i32, i32, i32
  }
}

module attributes {stable_mosaic.version = 11 : i64} {
  func.func @_conv_stats_kernel(%arg0: i32, %arg1: memref<32x256xbf16, #tpu.memory_space<vmem>>, %arg2: memref<1x256xf32, #tpu.memory_space<vmem>>, %arg3: memref<1x256xf32, #tpu.memory_space<vmem>>, %arg4: memref<256x128xbf16, #tpu.memory_space<vmem>>, %arg5: memref<32x128xbf16, #tpu.memory_space<vmem>>, %arg6: memref<1x1x128xf32, #tpu.memory_space<vmem>>, %arg7: memref<1x1x128xf32, #tpu.memory_space<vmem>>) attributes {dimension_semantics = [#tpu.dimension_semantics<parallel>], iteration_bounds = array<i64: 1>, scalar_prefetch = 0 : i64, scratch_operands = 0 : i64, tpu.core_type = #tpu.core_type<tc>, window_params = [{transform_indices = @transform_0, window_bounds = array<i64: 32, 256>}, {pipeline_mode = #tpu.pipeline_mode<synchronous>, transform_indices = @transform_1, window_bounds = array<i64: 1, 256>}, {pipeline_mode = #tpu.pipeline_mode<synchronous>, transform_indices = @transform_2, window_bounds = array<i64: 1, 256>}, {pipeline_mode = #tpu.pipeline_mode<synchronous>, transform_indices = @transform_3, window_bounds = array<i64: 256, 128>}, {transform_indices = @transform_4, window_bounds = array<i64: 32, 128>}, {transform_indices = @transform_5, window_bounds = array<i64: 1, 1, 128>}, {transform_indices = @transform_6, window_bounds = array<i64: 1, 1, 128>}]} {
    %c0 = arith.constant 0 : index
    %c0_0 = arith.constant 0 : index
    %0 = vector.load %arg1[%c0, %c0_0] : memref<32x256xbf16, #tpu.memory_space<vmem>>, vector<32x256xbf16>
    %1 = arith.extf %0 : vector<32x256xbf16> to vector<32x256xf32>
    %c0_1 = arith.constant 0 : index
    %c0_2 = arith.constant 0 : index
    %2 = vector.load %arg2[%c0_1, %c0_2] : memref<1x256xf32, #tpu.memory_space<vmem>>, vector<1x256xf32>
    %3 = vector.broadcast %2 : vector<1x256xf32> to vector<32x256xf32>
    %4 = arith.mulf %1, %3 : vector<32x256xf32>
    %c0_3 = arith.constant 0 : index
    %c0_4 = arith.constant 0 : index
    %5 = vector.load %arg3[%c0_3, %c0_4] : memref<1x256xf32, #tpu.memory_space<vmem>>, vector<1x256xf32>
    %6 = vector.broadcast %5 : vector<1x256xf32> to vector<32x256xf32>
    %7 = arith.addf %4, %6 : vector<32x256xf32>
    %cst = arith.constant 0.000000e+00 : f32
    %8 = vector.broadcast %cst : f32 to vector<32x256xf32>
    %9 = arith.cmpf ogt, %7, %8 : vector<32x256xf32>
    %cst_5 = arith.constant 2.000000e-01 : f32
    %10 = vector.broadcast %cst_5 : f32 to vector<32x256xf32>
    %11 = arith.mulf %10, %7 : vector<32x256xf32>
    %12 = arith.select %9, %7, %11 : vector<32x256xi1>, vector<32x256xf32>
    %13 = arith.truncf %12 : vector<32x256xf32> to vector<32x256xbf16>
    %c0_6 = arith.constant 0 : index
    %c0_7 = arith.constant 0 : index
    %14 = vector.load %arg4[%c0_6, %c0_7] : memref<256x128xbf16, #tpu.memory_space<vmem>>, vector<256x128xbf16>
    %cst_8 = arith.constant dense<0.000000e+00> : vector<32x128xf32>
    %15 = tpu.matmul %13, %14, %cst_8 {dimension_numbers = #tpu.dot_dimension_numbers<[1], [0], [0], [1], [0, 0, 1, 1], [], []>} : vector<32x256xbf16>, vector<256x128xbf16>, vector<32x128xf32> -> vector<32x128xf32>
    %16 = arith.truncf %15 : vector<32x128xf32> to vector<32x128xbf16>
    %c0_9 = arith.constant 0 : index
    %c0_10 = arith.constant 0 : index
    %17 = vector.load %arg5[%c0_9, %c0_10] : memref<32x128xbf16, #tpu.memory_space<vmem>>, vector<32x128xbf16>
    tpu.vector_store %arg5[%c0_9, %c0_10], %16 {strides = array<i32>} : memref<32x128xbf16, #tpu.memory_space<vmem>>, vector<32x128xbf16>,
    %18 = tpu.iota {dimensions = array<i32: 0>} : vector<32x1xi32>
    %c32_i32 = arith.constant 32 : i32
    %19 = arith.muli %arg0, %c32_i32 : i32
    %20 = vector.broadcast %19 : i32 to vector<32x1xi32>
    %21 = arith.addi %18, %20 : vector<32x1xi32>
    %c32_i32_11 = arith.constant 32 : i32
    %22 = vector.broadcast %c32_i32_11 : i32 to vector<32x1xi32>
    %23 = arith.cmpi slt, %21, %22 : vector<32x1xi32>
    %24 = arith.extui %23 : vector<32x1xi1> to vector<32x1xi32>
    %25 = arith.sitofp %24 : vector<32x1xi32> to vector<32x1xf32>
    %26 = vector.broadcast %25 : vector<32x1xf32> to vector<32x128xf32>
    %27 = arith.mulf %15, %26 : vector<32x128xf32>
    %cst_12 = arith.constant dense<0.000000e+00> : vector<128xf32>
    %28 = vector.multi_reduction <add>, %27, %cst_12 [0] : vector<32x128xf32> to vector<128xf32>
    %29 = vector.shape_cast %28 : vector<128xf32> to vector<1x128xf32>
    %30 = arith.mulf %27, %27 : vector<32x128xf32>
    %cst_13 = arith.constant dense<0.000000e+00> : vector<128xf32>
    %31 = vector.multi_reduction <add>, %30, %cst_13 [0] : vector<32x128xf32> to vector<128xf32>
    %32 = vector.shape_cast %31 : vector<128xf32> to vector<1x128xf32>
    %33 = vector.shape_cast %29 : vector<1x128xf32> to vector<1x1x128xf32>
    %c0_14 = arith.constant 0 : index
    %c0_15 = arith.constant 0 : index
    %c0_16 = arith.constant 0 : index
    %34 = vector.load %arg6[%c0_14, %c0_15, %c0_16] : memref<1x1x128xf32, #tpu.memory_space<vmem>>, vector<1x1x128xf32>
    tpu.vector_store %arg6[%c0_14, %c0_15, %c0_16], %33 {strides = array<i32>} : memref<1x1x128xf32, #tpu.memory_space<vmem>>, vector<1x1x128xf32>,
    %35 = vector.shape_cast %32 : vector<1x128xf32> to vector<1x1x128xf32>
    %c0_17 = arith.constant 0 : index
    %c0_18 = arith.constant 0 : index
    %c0_19 = arith.constant 0 : index
    %36 = vector.load %arg7[%c0_17, %c0_18, %c0_19] : memref<1x1x128xf32, #tpu.memory_space<vmem>>, vector<1x1x128xf32>
    tpu.vector_store %arg7[%c0_17, %c0_18, %c0_19], %35 {strides = array<i32>} : memref<1x1x128xf32, #tpu.memory_space<vmem>>, vector<1x1x128xf32>,
    return
  }
  func.func @transform_0(%arg0: i32) -> (i32, i32) {
    %c0_i32 = arith.constant 0 : i32
    %c0_i32_0 = arith.constant 0 : i32
    return %arg0, %c0_i32 : i32, i32
  }
  func.func @transform_1(%arg0: i32) -> (i32, i32) {
    %c0_i32 = arith.constant 0 : i32
    %c0_i32_0 = arith.constant 0 : i32
    %c0_i32_1 = arith.constant 0 : i32
    return %c0_i32, %c0_i32_0 : i32, i32
  }
  func.func @transform_2(%arg0: i32) -> (i32, i32) {
    %c0_i32 = arith.constant 0 : i32
    %c0_i32_0 = arith.constant 0 : i32
    %c0_i32_1 = arith.constant 0 : i32
    return %c0_i32, %c0_i32_0 : i32, i32
  }
  func.func @transform_3(%arg0: i32) -> (i32, i32) {
    %c0_i32 = arith.constant 0 : i32
    %c0_i32_0 = arith.constant 0 : i32
    %c0_i32_1 = arith.constant 0 : i32
    return %c0_i32, %c0_i32_0 : i32, i32
  }
  func.func @transform_4(%arg0: i32) -> (i32, i32) {
    %c0_i32 = arith.constant 0 : i32
    %c0_i32_0 = arith.constant 0 : i32
    return %arg0, %c0_i32 : i32, i32
  }
  func.func @transform_5(%arg0: i32) -> (i32, i32, i32) {
    %c0_i32 = arith.constant 0 : i32
    %c0_i32_0 = arith.constant 0 : i32
    %c0_i32_1 = arith.constant 0 : i32
    return %arg0, %c0_i32, %c0_i32_0 : i32, i32, i32
  }
  func.func @transform_6(%arg0: i32) -> (i32, i32, i32) {
    %c0_i32 = arith.constant 0 : i32
    %c0_i32_0 = arith.constant 0 : i32
    %c0_i32_1 = arith.constant 0 : i32
    return %arg0, %c0_i32, %c0_i32_0 : i32, i32, i32
  }
}

module attributes {stable_mosaic.version = 11 : i64} {
  func.func @_conv_act_kernel(%arg0: i32, %arg1: memref<8x512xbf16, #tpu.memory_space<vmem>>, %arg2: memref<1x512xf32, #tpu.memory_space<vmem>>, %arg3: memref<1x512xf32, #tpu.memory_space<vmem>>, %arg4: memref<512x128xbf16, #tpu.memory_space<vmem>>, %arg5: memref<8x128xf32, #tpu.memory_space<vmem>>) attributes {dimension_semantics = [#tpu.dimension_semantics<parallel>], iteration_bounds = array<i64: 1>, scalar_prefetch = 0 : i64, scratch_operands = 0 : i64, tpu.core_type = #tpu.core_type<tc>, window_params = [{transform_indices = @transform_0, window_bounds = array<i64: 8, 512>}, {pipeline_mode = #tpu.pipeline_mode<synchronous>, transform_indices = @transform_1, window_bounds = array<i64: 1, 512>}, {pipeline_mode = #tpu.pipeline_mode<synchronous>, transform_indices = @transform_2, window_bounds = array<i64: 1, 512>}, {pipeline_mode = #tpu.pipeline_mode<synchronous>, transform_indices = @transform_3, window_bounds = array<i64: 512, 128>}, {transform_indices = @transform_4, window_bounds = array<i64: 8, 128>}]} {
    %c0 = arith.constant 0 : index
    %c0_0 = arith.constant 0 : index
    %0 = vector.load %arg1[%c0, %c0_0] : memref<8x512xbf16, #tpu.memory_space<vmem>>, vector<8x512xbf16>
    %1 = arith.extf %0 : vector<8x512xbf16> to vector<8x512xf32>
    %c0_1 = arith.constant 0 : index
    %c0_2 = arith.constant 0 : index
    %2 = vector.load %arg2[%c0_1, %c0_2] : memref<1x512xf32, #tpu.memory_space<vmem>>, vector<1x512xf32>
    %3 = vector.broadcast %2 : vector<1x512xf32> to vector<8x512xf32>
    %4 = arith.mulf %1, %3 : vector<8x512xf32>
    %c0_3 = arith.constant 0 : index
    %c0_4 = arith.constant 0 : index
    %5 = vector.load %arg3[%c0_3, %c0_4] : memref<1x512xf32, #tpu.memory_space<vmem>>, vector<1x512xf32>
    %6 = vector.broadcast %5 : vector<1x512xf32> to vector<8x512xf32>
    %7 = arith.addf %4, %6 : vector<8x512xf32>
    %cst = arith.constant 0.000000e+00 : f32
    %8 = vector.broadcast %cst : f32 to vector<8x512xf32>
    %9 = arith.cmpf ogt, %7, %8 : vector<8x512xf32>
    %cst_5 = arith.constant 2.000000e-01 : f32
    %10 = vector.broadcast %cst_5 : f32 to vector<8x512xf32>
    %11 = arith.mulf %10, %7 : vector<8x512xf32>
    %12 = arith.select %9, %7, %11 : vector<8x512xi1>, vector<8x512xf32>
    %13 = arith.truncf %12 : vector<8x512xf32> to vector<8x512xbf16>
    %c0_6 = arith.constant 0 : index
    %c0_7 = arith.constant 0 : index
    %14 = vector.load %arg4[%c0_6, %c0_7] : memref<512x128xbf16, #tpu.memory_space<vmem>>, vector<512x128xbf16>
    %cst_8 = arith.constant dense<0.000000e+00> : vector<8x128xf32>
    %15 = tpu.matmul %13, %14, %cst_8 {dimension_numbers = #tpu.dot_dimension_numbers<[1], [0], [0], [1], [0, 0, 1, 1], [], []>} : vector<8x512xbf16>, vector<512x128xbf16>, vector<8x128xf32> -> vector<8x128xf32>
    %cst_9 = arith.constant 0.000000e+00 : f32
    %16 = vector.broadcast %cst_9 : f32 to vector<8x128xf32>
    %17 = arith.subf %16, %15 : vector<8x128xf32>
    %18 = math.exp %17 : vector<8x128xf32>
    %cst_10 = arith.constant 1.000000e+00 : f32
    %19 = vector.broadcast %cst_10 : f32 to vector<8x128xf32>
    %20 = arith.addf %19, %18 : vector<8x128xf32>
    %cst_11 = arith.constant 1.000000e+00 : f32
    %21 = vector.broadcast %cst_11 : f32 to vector<8x128xf32>
    %22 = arith.divf %21, %20 : vector<8x128xf32>
    %c0_12 = arith.constant 0 : index
    %c0_13 = arith.constant 0 : index
    %23 = vector.load %arg5[%c0_12, %c0_13] : memref<8x128xf32, #tpu.memory_space<vmem>>, vector<8x128xf32>
    tpu.vector_store %arg5[%c0_12, %c0_13], %22 {strides = array<i32>} : memref<8x128xf32, #tpu.memory_space<vmem>>, vector<8x128xf32>,
    return
  }
  func.func @transform_0(%arg0: i32) -> (i32, i32) {
    %c0_i32 = arith.constant 0 : i32
    %c0_i32_0 = arith.constant 0 : i32
    return %arg0, %c0_i32 : i32, i32
  }
  func.func @transform_1(%arg0: i32) -> (i32, i32) {
    %c0_i32 = arith.constant 0 : i32
    %c0_i32_0 = arith.constant 0 : i32
    %c0_i32_1 = arith.constant 0 : i32
    return %c0_i32, %c0_i32_0 : i32, i32
  }
  func.func @transform_2(%arg0: i32) -> (i32, i32) {
    %c0_i32 = arith.constant 0 : i32
    %c0_i32_0 = arith.constant 0 : i32
    %c0_i32_1 = arith.constant 0 : i32
    return %c0_i32, %c0_i32_0 : i32, i32
  }
  func.func @transform_3(%arg0: i32) -> (i32, i32) {
    %c0_i32 = arith.constant 0 : i32
    %c0_i32_0 = arith.constant 0 : i32
    %c0_i32_1 = arith.constant 0 : i32
    return %c0_i32, %c0_i32_0 : i32, i32
  }
  func.func @transform_4(%arg0: i32) -> (i32, i32) {
    %c0_i32 = arith.constant 0 : i32
    %c0_i32_0 = arith.constant 0 : i32
    return %arg0, %c0_i32 : i32, i32
  }
}

</mosaic_0001>

<bundles_post_ra>
// kernel: discriminator_forward.5
= control target key start
LH: loop header
LB: loop body
LE: loop exit
PB: predicated region body
PF: predicated region fallthrough
CT: control target
= control target key end

     0   :  { %7 = vsyncpa [#allocation3], 0  ;;  %s4211_s0 = inlined_call_operand.hbm [shape: bf16[2048,48], index: 0, kind: input, shape index: {}]   ;;  %s4212_s1 = inlined_call_operand.hbm [shape: bf16[48,128], index: 1, kind: input, shape index: {}]   ;;  %s4213_s2 = inlined_call_operand.hbm [shape: bf16[2048,128], index: 2, kind: output, shape index: {}]  }
   0x1   :  { %9 = vsyncpa [#allocation3 + $0x1], 0 }
   0x2   :  { %10 = vsyncpa [#allocation6], 0 }
   0x3   :  { %11 = vsyncpa [#allocation4], 0 }
   0x4   :  { %13 = vsyncpa [#allocation4 + $0x1], 0  ;;  %s3786_s9 = smov 0   ;;  %s3788_s10 = smov 0  }
   0x5   :  { %s3790_s11 = smov 0   ;;  %s3792_s12 = smov 0  }
   0x6 LB: > { %s3807_s13 = sadd.s32 4294967295, %s3762_s12   ;;  %s2511_s14 = sadd.s32 4294967294, %s3762_s12   ;;  %s3762_s12 = sphi %s3792_s12, %s4233_s12   ;;  %s3758_s11 = sphi %s3790_s11, %s4232_s11   ;;  %s3754_s10 = sphi %s3788_s10, %s4231_s10   ;;  %s3750_s9 = sphi %s3786_s9, %s4230_s9  }
   0x7   : > { %p39_p0 = scmp.ne.s32.totalorder %s3754_s10, %s3750_s9  ;;  %p4214_p1 = scmp.eq.s32.totalorder %s3807_s13, 0 }
   0x8   : > { %p90_p3 = scmp.eq.s32.totalorder %s2511_s14, 1  ;;  %p2512_p5 = scmp.ge.s32.totalorder %s3762_s12, 1 }
   0x9   : > { %p3816_p4 = por %p4214_p1, %p39_p0  ;;  %p97_p7 = scmp.lt.s32.totalorder %s3762_s12, 3 }
   0xa   : > { %p3821_p6 = por %p90_p3, %p39_p0  ;;  %s3764_s18 = smov [#allocation5]  }
   0xb   : > { %s4217_s15 = scalar_select %p3816_p4, 1, 0 }
   0xc   : > { %s4218_s16 = scalar_select %p3821_p6, 1, 0 }
   0xd   : > { %p3826_p8 = pnand %p2512_p5, %p97_p7  ;;  %s109_s19 = sshll.u32 %s3764_s18, 4  ;;  %s3830_s19 = int_to_ptr.vmem [resolvable:$true] %s109_s19 }
   0xe   : > { %s3842_s21 = sadd.s32 1, %s3762_s12   ;;  %s26_s22 = sadd.s32 1, %s3758_s11 }
   0xf   : > { %s4219_s17 = scalar_select %p3826_p8, 1, 0 }
  0x10   : > { %p3514_p9 = pneg %p3826_p8  ;;  %s23_s23 = ssub.s32 %s3762_s12, %s3842_s21 }
  0x11   : > { %s3634_s26 = scalar_lea.hbm %s4212_s1, 384 }
  0x12   : > { %p3837_p11 = pnand %p3514_p9, %p4214_p1  ;;  %p3635_p12 = scmp.ne.s32.totalorder %s4212_s1, %s3634_s26 }
  0x13   : > { %p3641_p5 = scmp.lt.u32.totalorder %s3634_s26, %s4212_s1 }
  0x14   : > { %p3636_p13 = pneg %p3837_p11 }
  0x16   : > { %p3637_p0 = pnand %p3636_p13, %p3635_p12 }
  0x18   : > { %p3638_p3 = pneg %p3637_p0 }
  0x1a   : > { %p3643_p7 = pnand %p3641_p5, %p3638_p3 }
  0x1c   : > { %3646 = shalt.err (!%p3643_p7)
}
  0x1d   : > { %s3647_s3 = scalar_lea.vmem %s3830_s19, 384  ;;  %p3655_p2 = scmp.lt.s32.totalorder %s3830_s19, %s3830_s19 }
  0x1e   : > { %p3648_p9 = scmp.ne.s32.totalorder %s3830_s19, %s3647_s3  ;;  %p3656_p6 = scmp.lt.s32.totalorder %s3647_s3, %s3647_s3 }
  0x20   : > { %p3650_p10 = pnand %p3648_p9, %p3636_p13  ;;  %p3657_p4 = por %p3656_p6, %p3655_p2 }
  0x22   : > { %p3651_p1 = pneg %p3650_p10 }
  0x24   : > { %p3658_p8 = pnand %p3657_p4, %p3651_p1 }
  0x26   : > { %3661 = shalt.err (!%p3658_p8)
}
  0x27   : > { %s3765_s4 = smov 64   ;;  %s3766_s5 = smov 4  }
  0x28   : > { %3517 = dma.hbm_to_vmem [thread:$0]  (!%p3837_p11), %s4212_s1, 384, %s3830_s19, [#allocation6], %s3765_s4, %s3765_s4, %s3766_s5  }
  0x29   : > { %p24_p1 = scmp.eq.s32.totalorder %s23_s23, 0  ;;  %p33_p2 = scmp.ne.s32.totalorder %s3758_s11, %s3754_s10 }
  0x2a   : > { %p34_p4 = scmp.eq.s32.totalorder %s3762_s12, 0  ;;  %p3527_p6 = scmp.lt.s32.totalorder %s3762_s12, 2 }
  0x2b   : > { %s3876_s8 = scalar_select %p24_p1, %s3758_s11, %s26_s22  }
  0x2c   : > { %p35_p8 = por %p34_p4, %p33_p2  ;;  %p4221_p10 = scmp.eq.s32.totalorder %s3807_s13, 1 }
  0x2d   : > { %s123_s18 = sand.u32 1, %s3758_s11   ;;  %s2786_s20 = sshll.u32 %s3762_s12, 13 }
  0x2e   : > { %p3880_p12 = por %p4221_p10, %p33_p2  ;;  %s2515_s24 = sshll.u32 %s123_s18, 9 }
  0x2f   : > { %s3889_s27 = scalar_lea.hbm %s4211_s0, %s2786_s20  ;;  %s127_s19 = scalar_lea.vmem [#allocation2], %s2515_s24 }
  0x30   : > { %s134_s22 = sshll.u32 %s127_s19, 4  ;;  %p3891_p11 = pnand %p3527_p6, %p35_p8  ;;  %s3895_s22 = int_to_ptr.vmem [resolvable:$true] %s134_s22 }
  0x31   : > { %s3897_s28 = scalar_lea.sflag [#allocation3], %s123_s18  ;;  %s3662_s29 = scalar_lea.hbm %s3889_s27, 8192 }
  0x32   : > { %p3663_p13 = scmp.ne.s32.totalorder %s3889_s27, %s3662_s29  ;;  %p3664_p0 = pneg %p3891_p11 }
  0x33   : > { %s3667_s6 = scalar_lea.hbm %s4211_s0, 16384  ;;  %p3668_p7 = scmp.lt.u32.totalorder %s3889_s27, %s4211_s0 }
  0x34   : > { %p3665_p3 = pnand %p3664_p0, %p3663_p13  ;;  %p3669_p9 = scmp.lt.u32.totalorder %s3667_s6, %s3662_s29 }
  0x35   : > { %p3671_p2 = scmp.lt.u32.totalorder %s3662_s29, %s3889_s27 }
  0x36   : > { %p3666_p5 = pneg %p3665_p3  ;;  %p3670_p1 = por %p3669_p9, %p3668_p7 }
  0x38   : > { %p3672_p4 = por %p3671_p2, %p3670_p1 }
  0x3a   : > { %p3673_p6 = pnand %p3672_p4, %p3666_p5 }
  0x3c   : > { %3676 = shalt.err (!%p3673_p6)
}
  0x3d   : > { %s3677_s18 = scalar_lea.vmem %s3895_s22, 8192  ;;  %s3767_s24 = smov [#allocation2]  }
  0x3e   : > { %p3678_p8 = scmp.ne.s32.totalorder %s3895_s22, %s3677_s18  ;;  %s3682_s25 = sshll.u32 %s3767_s24, 4  ;;  %s3683_s25 = int_to_ptr.vmem [resolvable:$false] %s3682_s25 }
  0x3f   : > { %s3684_s26 = scalar_lea.vmem %s3683_s25, 16384  ;;  %p3685_p3 = scmp.lt.s32.totalorder %s3895_s22, %s3683_s25 }
  0x40   : > { %p3680_p10 = pnand %p3678_p8, %p3664_p0  ;;  %p3686_p7 = scmp.lt.s32.totalorder %s3684_s26, %s3677_s18 }
  0x42   : > { %p3681_p13 = pneg %p3680_p10  ;;  %p3687_p9 = por %p3686_p7, %p3685_p3 }
  0x44   : > { %p3688_p1 = pnand %p3687_p9, %p3681_p13 }
  0x46   : > { %3691 = shalt.err (!%p3688_p1)
}
  0x47   : > { %3521 = dma.hbm_to_vmem [thread:$0]  (!%p3891_p11), %s3889_s27, 8192, %s3895_s22, %s3897_s28, %s3765_s4, %s3765_s4, %s3766_s5  }
  0x48   : > { %p4224_p0 = scmp.ne.s32.totalorder %s4219_s17, 0 }
  0x49   : > { %s3931_s19 = sand.u32 (!%p4224_p0), 1, %s3754_s10   ;;  %p4225_p5 = scmp.ne.s32.totalorder (!%p4224_p0), %s4217_s15, 0 }
  0x4a   : > { %146 = sbr.rel (%p4224_p0) target bundleno = 455 (0x1c7), region = 28  ;;  %s2519_s29 = sshll.u32 (!%p4224_p0), %s3931_s19, 9 }
  0x4b   : > { %s149_s30 = scalar_lea.sflag (!%p4224_p0), [#allocation3], %s3931_s19  ;;  %s3937_s23 = scalar_lea.vmem (!%p4224_p0), [#allocation2], %s2519_s29 }
  0x51   : > { %3737 = dma.done.wait (%p4225_p5), %s149_s30, 8192  }
  0x52   : > { %3739 = vsyncadd (%p4225_p5), %s149_s30, 4294959104  ;;  %p4226_p11 = scmp.eq.s32.totalorder %s3807_s13, 0 }
  0x54   : > { %3741 = dma.done.wait (%p4226_p11), [#allocation6], 384   ;;  %p4227_p2 = pmov %p4226_p11 }
  0x55   : > { %v3567_v0 = vld [vmem:[#allocation5] sm:$0xff]   ;;  %v3568_v1 = vld [vmem:[#allocation5 + $0x8] sm:$0xff]   ;;  %v3569_v2 = vld [vmem:[#allocation5 + $0x10] sm:$0xff]   ;;  %vm652_vm0 = vcmask 392192   ;;  %s4077_s15 = scalar_lea.vmem [#allocation7], %s2519_s29  ;;  %s2915_s17 = sshll.u32 %s3807_s13, 13 }
  0x56   : > { %3743 = vsyncadd (%p4227_p2), [#allocation6], 4294966912  ;;  %3366 = vmatprep.subr.bf16.mxu0 %v3567_v0  ;;  %3500 = vmatprep.subr.bf16.mxu1 %v3567_v0  ;;  %v3570_v3 = vld [vmem:[%s3937_s23] sm:$0xff]   ;;  %v3572_v5 = vld [vmem:[%s3937_s23 + $0x8] sm:$0xff]   ;;  %s2428_s4 = sshll.u32 %s4077_s15, 4  ;;  %s4161_s22 = scalar_lea.hbm %s4213_s2, %s2915_s17  ;;  %s4163_s4 = int_to_ptr.vmem [resolvable:$true] %s2428_s4 }
  0x57   : > { %3367 = vmatpush3.bf16.msra.mxu0 %v3567_v0  ;;  %3503 = vmatpush3.bf16.msra.mxu1 %v3567_v0  ;;  %v3571_v4 = vld [vmem:[%s3937_s23 + $0x100] sm:$0xff]   ;;  %v3573_v6 = vld [vmem:[%s3937_s23 + $0x108] sm:$0xff]   ;;  %v3574_v7 = vld [vmem:[%s3937_s23 + $0x10] sm:$0xff]   ;;  %s2415_s28 = scalar_lea.sflag [#allocation4], %s3931_s19  ;;  %s3692_s3 = scalar_lea.vmem %s4163_s4, 8192 }
  0x58   : > { %3368 = vmatprep.subr.bf16.mxu0 %v3568_v1  ;;  %3501 = vmatprep.subr.bf16.mxu1 %v3568_v1  ;;  %v3575_v8 = vld [vmem:[%s3937_s23 + $0x110] sm:$0xff]   ;;  %v3576_v9 = vld [vmem:[%s3937_s23 + $0x18] sm:$0xff]   ;;  %v3578_v11 = vld [vmem:[%s3937_s23 + $0x20] sm:$0xff]   ;;  %p3693_p4 = scmp.ne.s32.totalorder %s4163_s4, %s3692_s3  ;;  %s3768_s13 = smov [#allocation7]  }
  0x59   : > { %3372 = vmatprep.mubr.msk.bf16.mxu0 %vm652_vm0, %v3570_v3  ;;  %3436 = vmatprep.mubr.msk.bf16.mxu1 %vm652_vm0, %v3571_v4  ;;  %v3577_v10 = vld [vmem:[%s3937_s23 + $0x118] sm:$0xff]   ;;  %v3579_v12 = vld [vmem:[%s3937_s23 + $0x120] sm:$0xff]   ;;  %v3580_v13 = vld [vmem:[%s3937_s23 + $0x28] sm:$0xff]   ;;  %s3696_s6 = sshll.u32 %s3768_s13, 4  ;;  %s3697_s6 = int_to_ptr.vmem [resolvable:$false] %s3696_s6 }
  0x5a   : > { %v3581_v14 = vld [vmem:[%s3937_s23 + $0x128] sm:$0xff]   ;;  %v3582_v15 = vld [vmem:[%s3937_s23 + $0x30] sm:$0xff]   ;;  %v3584_v17 = vld [vmem:[%s3937_s23 + $0x38] sm:$0xff]   ;;  %p3694_p6 = pnand %p3693_p4, %p3880_p12  ;;  %s3698_s7 = scalar_lea.vmem %s3697_s6, 16384 }
  0x5b   : > { %3369 = vmatpush3.bf16.msra.mxu0 %v3568_v1  ;;  %3504 = vmatpush3.bf16.msra.mxu1 %v3568_v1  ;;  %v3583_v16 = vld [vmem:[%s3937_s23 + $0x130] sm:$0xff]   ;;  %v3585_v18 = vld [vmem:[%s3937_s23 + $0x138] sm:$0xff]   ;;  %v3586_v19 = vld [vmem:[%s3937_s23 + $0x40] sm:$0xff]   ;;  %p3699_p10 = scmp.lt.s32.totalorder %s4163_s4, %s3697_s6  ;;  %p3700_p13 = scmp.lt.s32.totalorder %s3698_s7, %s3692_s3 }
  0x5c   : > { %3370 = vmatprep.subr.bf16.mxu0 %v3569_v2  ;;  %3502 = vmatprep.subr.bf16.mxu1 %v3569_v2  ;;  %v3587_v20 = vld [vmem:[%s3937_s23 + $0x140] sm:$0xff]   ;;  %v3588_v21 = vld [vmem:[%s3937_s23 + $0x48] sm:$0xff]   ;;  %v3590_v23 = vld [vmem:[%s3937_s23 + $0x50] sm:$0xff]   ;;  %p3695_p8 = pneg %p3694_p6 }
  0x5d   : > { %v3589_v22 = vld [vmem:[%s3937_s23 + $0x148] sm:$0xff]   ;;  %v3591_v24 = vld [vmem:[%s3937_s23 + $0x150] sm:$0xff]   ;;  %v3592_v25 = vld [vmem:[%s3937_s23 + $0x58] sm:$0xff]   ;;  %p3701_p3 = por %p3700_p13, %p3699_p10 }
  0x5e   : > { %v3593_v26 = vld [vmem:[%s3937_s23 + $0x158] sm:$0xff]   ;;  %v3594_v27 = vld [vmem:[%s3937_s23 + $0x60] sm:$0xff]   ;;  %v3596_v29 = vld [vmem:[%s3937_s23 + $0x68] sm:$0xff]  }
  0x5f   : > { %3371 = vmatpush3.bf16.msra.mxu0 %v3569_v2  ;;  %3505 = vmatpush3.bf16.msra.mxu1 %v3569_v2  ;;  %v3595_v28 = vld [vmem:[%s3937_s23 + $0x160] sm:$0xff]   ;;  %v3597_v30 = vld [vmem:[%s3937_s23 + $0x168] sm:$0xff]   ;;  %v3598_v31 = vld [vmem:[%s3937_s23 + $0x70] sm:$0xff]   ;;  %p3702_p7 = pnand %p3701_p3, %p3695_p8 }
  0x60   : > { %v3599_v32 = vld [vmem:[%s3937_s23 + $0x170] sm:$0xff]   ;;  %v3600_v33 = vld [vmem:[%s3937_s23 + $0x78] sm:$0xff]   ;;  %v3602_v35 = vld [vmem:[%s3937_s23 + $0x80] sm:$0xff]  }
  0x61   : > { %v3601_v34 = vld [vmem:[%s3937_s23 + $0x178] sm:$0xff]   ;;  %v3603_v36 = vld [vmem:[%s3937_s23 + $0x180] sm:$0xff]   ;;  %v3604_v37 = vld [vmem:[%s3937_s23 + $0x88] sm:$0xff]  }
  0x62   : > { %3373 = vmatmul.mubr.msk.bf16.vlgmr.msra.gmra.mrb[0].mxu0 %vm652_vm0, %v3572_v5  ;;  %3437 = vmatmul.mubr.msk.bf16.vlgmr.msra.gmra.mrb[0].mxu1 %vm652_vm0, %v3573_v6  ;;  %v3605_v38 = vld [vmem:[%s3937_s23 + $0x188] sm:$0xff]   ;;  %v3606_v39 = vld [vmem:[%s3937_s23 + $0x90] sm:$0xff]   ;;  %v3608_v41 = vld [vmem:[%s3937_s23 + $0x98] sm:$0xff]  }
  0x63   : > { %3376 = vmatprep.mubr.msk.bf16.mxu0 %vm652_vm0, %v3574_v7  ;;  %3440 = vmatprep.mubr.msk.bf16.mxu1 %vm652_vm0, %v3575_v8  ;;  %v3607_v40 = vld [vmem:[%s3937_s23 + $0x190] sm:$0xff]   ;;  %v3609_v42 = vld [vmem:[%s3937_s23 + $0x198] sm:$0xff]   ;;  %v3610_v43 = vld [vmem:[%s3937_s23 + $0xa0] sm:$0xff]  }
  0x64   : > { %v3611_v44 = vld [vmem:[%s3937_s23 + $0x1a0] sm:$0xff]   ;;  %v3612_v45 = vld [vmem:[%s3937_s23 + $0xa8] sm:$0xff]   ;;  %v3614_v47 = vld [vmem:[%s3937_s23 + $0xb0] sm:$0xff]  }
  0x65   : > { %v3613_v46 = vld [vmem:[%s3937_s23 + $0x1a8] sm:$0xff]   ;;  %v3615_v48 = vld [vmem:[%s3937_s23 + $0x1b0] sm:$0xff]   ;;  %v3616_v49 = vld [vmem:[%s3937_s23 + $0xb8] sm:$0xff]  }
  0x66   : > { %v3617_v50 = vld [vmem:[%s3937_s23 + $0x1b8] sm:$0xff]   ;;  %v3618_v51 = vld [vmem:[%s3937_s23 + $0xc0] sm:$0xff]   ;;  %v3620_v53 = vld [vmem:[%s3937_s23 + $0xc8] sm:$0xff]  }
  0x67   : > { %v3619_v52 = vld [vmem:[%s3937_s23 + $0x1c0] sm:$0xff]   ;;  %v3621_v54 = vld [vmem:[%s3937_s23 + $0x1c8] sm:$0xff]   ;;  %v3622_v55 = vld [vmem:[%s3937_s23 + $0xd0] sm:$0xff]  }
  0x68   : > { %v3623_v56 = vld [vmem:[%s3937_s23 + $0x1d0] sm:$0xff]   ;;  %v3624_v57 = vld [vmem:[%s3937_s23 + $0xd8] sm:$0xff]   ;;  %v3626_v59 = vld [vmem:[%s3937_s23 + $0xe0] sm:$0xff]  }
  0x69   : > { %v3625_v58 = vld [vmem:[%s3937_s23 + $0x1d8] sm:$0xff]   ;;  %v3627_v60 = vld [vmem:[%s3937_s23 + $0x1e0] sm:$0xff]   ;;  %v3628_v61 = vld [vmem:[%s3937_s23 + $0xe8] sm:$0xff]  }
  0x6a   : > { %3377 = vmatmul.mubr.msk.bf16.gmra.mrb[4].mxu0 %vm652_vm0, %v3576_v9  ;;  %3441 = vmatmul.mubr.msk.bf16.gmra.mrb[4].mxu1 %vm652_vm0, %v3577_v10  ;;  %v3629_v62 = vld [vmem:[%s3937_s23 + $0x1e8] sm:$0xff]   ;;  %v3630_v63 = vld [vmem:[%s3937_s23 + $0xf0] sm:$0xff]   ;;  %v3632_v1 = vld [vmem:[%s3937_s23 + $0xf8] sm:$0xff]  }
  0x6b   : > { %3380 = vmatprep.mubr.msk.bf16.mxu0 %vm652_vm0, %v3578_v11  ;;  %3444 = vmatprep.mubr.msk.bf16.mxu1 %vm652_vm0, %v3579_v12  ;;  %v3631_v0 = vld [vmem:[%s3937_s23 + $0x1f0] sm:$0xff]   ;;  %v3633_v2 = vld [vmem:[%s3937_s23 + $0x1f8] sm:$0xff]  }
  0x72   : > { %3381 = vmatmul.mubr.msk.bf16.gmra.mrb[8].mxu0 %vm652_vm0, %v3580_v13  ;;  %3445 = vmatmul.mubr.msk.bf16.gmra.mrb[8].mxu1 %vm652_vm0, %v3581_v14 }
  0x73   : > { %3384 = vmatprep.mubr.msk.bf16.mxu0 %vm652_vm0, %v3582_v15  ;;  %3448 = vmatprep.mubr.msk.bf16.mxu1 %vm652_vm0, %v3583_v16 }
  0x7a   : > { %3385 = vmatmul.mubr.msk.bf16.gmra.mrb[12].mxu0 %vm652_vm0, %v3584_v17  ;;  %3449 = vmatmul.mubr.msk.bf16.gmra.mrb[12].mxu1 %vm652_vm0, %v3585_v18 }
  0x7b   : > { %3388 = vmatprep.mubr.msk.bf16.mxu0 %vm652_vm0, %v3586_v19  ;;  %3452 = vmatprep.mubr.msk.bf16.mxu1 %vm652_vm0, %v3587_v20 }
  0x82   : > { %3389 = vmatmul.mubr.msk.bf16.gmra.mrb[16].mxu0 %vm652_vm0, %v3588_v21  ;;  %3453 = vmatmul.mubr.msk.bf16.gmra.mrb[16].mxu1 %vm652_vm0, %v3589_v22 }
  0x83   : > { %3392 = vmatprep.mubr.msk.bf16.mxu0 %vm652_vm0, %v3590_v23  ;;  %3456 = vmatprep.mubr.msk.bf16.mxu1 %vm652_vm0, %v3591_v24 }
  0x8a   : > { %3393 = vmatmul.mubr.msk.bf16.gmra.mrb[20].mxu0 %vm652_vm0, %v3592_v25  ;;  %3457 = vmatmul.mubr.msk.bf16.gmra.mrb[20].mxu1 %vm652_vm0, %v3593_v26 }
  0x8b   : > { %3396 = vmatprep.mubr.msk.bf16.mxu0 %vm652_vm0, %v3594_v27  ;;  %3460 = vmatprep.mubr.msk.bf16.mxu1 %vm652_vm0, %v3595_v28 }
  0x92   : > { %3397 = vmatmul.mubr.msk.bf16.gmra.mrb[24].mxu0 %vm652_vm0, %v3596_v29  ;;  %3461 = vmatmul.mubr.msk.bf16.gmra.mrb[24].mxu1 %vm652_vm0, %v3597_v30 }
  0x93   : > { %3400 = vmatprep.mubr.msk.bf16.mxu0 %vm652_vm0, %v3598_v31  ;;  %3464 = vmatprep.mubr.msk.bf16.mxu1 %vm652_vm0, %v3599_v32 }
  0x9a   : > { %3401 = vmatmul.mubr.msk.bf16.gmra.mrb[28].mxu0 %vm652_vm0, %v3600_v33  ;;  %3465 = vmatmul.mubr.msk.bf16.gmra.mrb[28].mxu1 %vm652_vm0, %v3601_v34 }
  0x9b   : > { %3404 = vmatprep.mubr.msk.bf16.mxu0 %vm652_vm0, %v3602_v35  ;;  %3468 = vmatprep.mubr.msk.bf16.mxu1 %vm652_vm0, %v3603_v36 }
  0xa2   : > { %3405 = vmatmul.mubr.msk.bf16.gmra.mrb[32].mxu0 %vm652_vm0, %v3604_v37  ;;  %3469 = vmatmul.mubr.msk.bf16.gmra.mrb[32].mxu1 %vm652_vm0, %v3605_v38 }
  0xa3   : > { %3408 = vmatprep.mubr.msk.bf16.mxu0 %vm652_vm0, %v3606_v39  ;;  %3472 = vmatprep.mubr.msk.bf16.mxu1 %vm652_vm0, %v3607_v40 }
  0xaa   : > { %3409 = vmatmul.mubr.msk.bf16.gmra.mrb[36].mxu0 %vm652_vm0, %v3608_v41  ;;  %3473 = vmatmul.mubr.msk.bf16.gmra.mrb[36].mxu1 %vm652_vm0, %v3609_v42 }
  0xab   : > { %3412 = vmatprep.mubr.msk.bf16.mxu0 %vm652_vm0, %v3610_v43  ;;  %3476 = vmatprep.mubr.msk.bf16.mxu1 %vm652_vm0, %v3611_v44 }
  0xb2   : > { %3413 = vmatmul.mubr.msk.bf16.gmra.mrb[40].mxu0 %vm652_vm0, %v3612_v45  ;;  %3477 = vmatmul.mubr.msk.bf16.gmra.mrb[40].mxu1 %vm652_vm0, %v3613_v46 }
  0xb3   : > { %3416 = vmatprep.mubr.msk.bf16.mxu0 %vm652_vm0, %v3614_v47  ;;  %3480 = vmatprep.mubr.msk.bf16.mxu1 %vm652_vm0, %v3615_v48 }
  0xba   : > { %3417 = vmatmul.mubr.msk.bf16.gmra.mrb[44].mxu0 %vm652_vm0, %v3616_v49  ;;  %3481 = vmatmul.mubr.msk.bf16.gmra.mrb[44].mxu1 %vm652_vm0, %v3617_v50 }
  0xbb   : > { %3420 = vmatprep.mubr.msk.bf16.mxu0 %vm652_vm0, %v3618_v51  ;;  %3484 = vmatprep.mubr.msk.bf16.mxu1 %vm652_vm0, %v3619_v52 }
  0xc2   : > { %3421 = vmatmul.mubr.msk.bf16.gmra.mrb[48].mxu0 %vm652_vm0, %v3620_v53  ;;  %3485 = vmatmul.mubr.msk.bf16.gmra.mrb[48].mxu1 %vm652_vm0, %v3621_v54 }
  0xc3   : > { %3424 = vmatprep.mubr.msk.bf16.mxu0 %vm652_vm0, %v3622_v55  ;;  %3488 = vmatprep.mubr.msk.bf16.mxu1 %vm652_vm0, %v3623_v56 }
  0xca   : > { %3425 = vmatmul.mubr.msk.bf16.gmra.mrb[52].mxu0 %vm652_vm0, %v3624_v57  ;;  %3489 = vmatmul.mubr.msk.bf16.gmra.mrb[52].mxu1 %vm652_vm0, %v3625_v58 }
  0xcb   : > { %3428 = vmatprep.mubr.msk.bf16.mxu0 %vm652_vm0, %v3626_v59  ;;  %3492 = vmatprep.mubr.msk.bf16.mxu1 %vm652_vm0, %v3627_v60 }
  0xd2   : > { %3429 = vmatmul.mubr.msk.bf16.gmra.mrb[56].mxu0 %vm652_vm0, %v3628_v61  ;;  %3493 = vmatmul.mubr.msk.bf16.gmra.mrb[56].mxu1 %vm652_vm0, %v3629_v62 }
  0xd3   : > { %3432 = vmatprep.mubr.msk.bf16.mxu0 %vm652_vm0, %v3630_v63  ;;  %3496 = vmatprep.mubr.msk.bf16.mxu1 %vm652_vm0, %v3631_v0 }
  0xda   : > { %3433 = vmatmul.mubr.msk.bf16.gmra.mrb[60].mxu0 %vm652_vm0, %v3632_v1  ;;  %3497 = vmatmul.mubr.msk.bf16.gmra.mrb[60].mxu1 %vm652_vm0, %v3633_v2 }
 0x135   : > { %v3374_v3 = vpop.f32.mrb[0].mxu0  ;;  %v3438_v4 = vpop.f32.mrb[0].mxu1 }
 0x136   : > { %vm1392_vm1 = vcmp.gt.f32.partialorder %v3374_v3, 0.0  ;;  %v1520_v5 = vmul.f32 0.2, %v3374_v3  ;;  %v1584_v6 = vmul.f32 0.2, %v3438_v4  ;;  %vm1456_vm2 = vcmp.gt.f32.partialorder %v3438_v4, 0.0 }
 0x137   : > { %v879_v7 = vpop.f32.mrb[1].mxu0  ;;  %v1135_v8 = vpop.f32.mrb[1].mxu1 }
 0x138   : > { %v1518_v9 = vmul.f32 0.2, %v879_v7  ;;  %v3375_v10 = vpop.f32.mrb[2].mxu0  ;;  %v3439_v11 = vpop.f32.mrb[2].mxu1  ;;  %v1648_v12 = vsel %vm1392_vm1, %v3374_v3, %v1520_v5  ;;  %v1582_v13 = vmul.f32 0.2, %v1135_v8  ;;  %v1712_v15 = vsel %vm1456_vm2, %v3438_v4, %v1584_v6 }
 0x139   : > { %vm1393_vm3 = vcmp.gt.f32.partialorder %v3375_v10, 0.0  ;;  %v1521_v14 = vmul.f32 0.2, %v3375_v10  ;;  %vm1390_vm4 = vcmp.gt.f32.partialorder %v879_v7, 0.0  ;;  %vm1457_vm5 = vcmp.gt.f32.partialorder %v3439_v11, 0.0  ;;  %v882_v17 = vpop.f32.mrb[3].mxu0 }
 0x13a   : > { %v1585_v16 = vmul.f32 0.2, %v3439_v11  ;;  %v1138_v18 = vpop.f32.mrb[3].mxu1  ;;  %vm1454_vm6 = vcmp.gt.f32.partialorder %v1135_v8, 0.0  ;;  %vm1391_vm7 = vcmp.gt.f32.partialorder %v882_v17, 0.0  ;;  %v1646_v24 = vsel %vm1390_vm4, %v879_v7, %v1518_v9 }
 0x13b   : > { %v1649_v19 = vsel %vm1393_vm3, %v3375_v10, %v1521_v14  ;;  %v1519_v20 = vmul.f32 0.2, %v882_v17  ;;  %vm1455_vm8 = vcmp.gt.f32.partialorder %v1138_v18, 0.0  ;;  %v1583_v23 = vmul.f32 0.2, %v1138_v18 }
 0x13c   : > { %v2924_v21 = vpack.c.bf16 %v1649_v19, %v1648_v12  ;;  %v1713_v22 = vsel %vm1457_vm5, %v3439_v11, %v1585_v16  ;;  %v1710_v29 = vsel %vm1454_vm6, %v1135_v8, %v1582_v13 }
 0x13d   : > { %v3084_v25 = vpack.c.bf16 %v1713_v22, %v1712_v15  ;;  %v1647_v26 = vsel %vm1391_vm7, %v882_v17, %v1519_v20  ;;  %v3378_v27 = vpop.f32.mrb[4].mxu0  ;;  %v3442_v28 = vpop.f32.mrb[4].mxu1  ;;  %v1711_v31 = vsel %vm1455_vm8, %v1138_v18, %v1583_v23 }
 0x13e   : > { %3236 = vst [vmem:[%s4077_s15 + $0x8] sm:$0xff] %v2924_v21   ;;  %v2919_v30 = vpack.c.bf16 %v1647_v26, %v1646_v24  ;;  %v1524_v32 = vmul.f32 0.2, %v3378_v27  ;;  %v895_v33 = vpop.f32.mrb[5].mxu0  ;;  %v1151_v34 = vpop.f32.mrb[5].mxu1  ;;  %v3079_v35 = vpack.c.bf16 %v1711_v31, %v1710_v29  ;;  %vm1396_vm9 = vcmp.gt.f32.partialorder %v3378_v27, 0.0 }
 0x13f   : > { %3268 = vst [vmem:[%s4077_s15 + $0x108] sm:$0xff] %v3084_v25   ;;  %v1588_v36 = vmul.f32 0.2, %v3442_v28  ;;  %v3379_v37 = vpop.f32.mrb[6].mxu0  ;;  %v3443_v38 = vpop.f32.mrb[6].mxu1  ;;  %vm1460_vm10 = vcmp.gt.f32.partialorder %v3442_v28, 0.0 }
 0x140   : > { %2920 = vst [vmem:[%s4077_s15] sm:$0xff] %v2919_v30   ;;  %v1522_v39 = vmul.f32 0.2, %v895_v33  ;;  %v1586_v40 = vmul.f32 0.2, %v1151_v34  ;;  %v898_v41 = vpop.f32.mrb[7].mxu0  ;;  %3267 = vst [vmem:[%s4077_s15 + $0x100] sm:$0xff] %v3079_v35   ;;  %v1652_v44 = vsel %vm1396_vm9, %v3378_v27, %v1524_v32 }
 0x141   : > { %vm1394_vm11 = vcmp.gt.f32.partialorder %v895_v33, 0.0  ;;  %vm1397_vm12 = vcmp.gt.f32.partialorder %v3379_v37, 0.0  ;;  %v1525_v42 = vmul.f32 0.2, %v3379_v37  ;;  %vm1461_vm13 = vcmp.gt.f32.partialorder %v3443_v38, 0.0  ;;  %v1154_v43 = vpop.f32.mrb[7].mxu1 }
 0x142   : > { %vm1458_vm14 = vcmp.gt.f32.partialorder %v1151_v34, 0.0  ;;  %v1589_v45 = vmul.f32 0.2, %v3443_v38  ;;  %vm1395_vm15 = vcmp.gt.f32.partialorder %v898_v41, 0.0  ;;  %v1523_v47 = vmul.f32 0.2, %v898_v41 }
 0x143   : > { %v1653_v46 = vsel %vm1397_vm12, %v3379_v37, %v1525_v42  ;;  %vm1459_vm0 = vcmp.gt.f32.partialorder %v1154_v43, 0.0  ;;  %v1587_v48 = vmul.f32 0.2, %v1154_v43  ;;  %v1716_v49 = vsel %vm1460_vm10, %v3442_v28, %v1588_v36 }
 0x144   : > { %v1650_v50 = vsel %vm1394_vm11, %v895_v33, %v1522_v39  ;;  %v2934_v51 = vpack.c.bf16 %v1653_v46, %v1652_v44  ;;  %v1717_v52 = vsel %vm1461_vm13, %v3443_v38, %v1589_v45  ;;  %v1714_v53 = vsel %vm1458_vm14, %v1151_v34, %v1586_v40 }
 0x145   : > { %v3094_v54 = vpack.c.bf16 %v1717_v52, %v1716_v49  ;;  %v1651_v55 = vsel %vm1395_vm15, %v898_v41, %v1523_v47  ;;  %v1715_v56 = vsel %vm1459_vm0, %v1154_v43, %v1587_v48  ;;  %v3382_v57 = vpop.f32.mrb[8].mxu0  ;;  %v3446_v58 = vpop.f32.mrb[8].mxu1 }
 0x146   : > { %3238 = vst [vmem:[%s4077_s15 + $0x18] sm:$0xff] %v2934_v51   ;;  %v2929_v59 = vpack.c.bf16 %v1651_v55, %v1650_v50  ;;  %v3089_v60 = vpack.c.bf16 %v1715_v56, %v1714_v53  ;;  %vm1400_vm1 = vcmp.gt.f32.partialorder %v3382_v57, 0.0  ;;  %v1528_v61 = vmul.f32 0.2, %v3382_v57  ;;  %v911_v62 = vpop.f32.mrb[9].mxu0  ;;  %v1167_v63 = vpop.f32.mrb[9].mxu1 }
 0x147   : > { %3270 = vst [vmem:[%s4077_s15 + $0x118] sm:$0xff] %v3094_v54   ;;  %vm1464_vm2 = vcmp.gt.f32.partialorder %v3446_v58, 0.0  ;;  %v1592_v0 = vmul.f32 0.2, %v3446_v58  ;;  %v1526_v1 = vmul.f32 0.2, %v911_v62 }
 0x148   : > { %3237 = vst [vmem:[%s4077_s15 + $0x10] sm:$0xff] %v2929_v59   ;;  %3269 = vst [vmem:[%s4077_s15 + $0x110] sm:$0xff] %v3089_v60   ;;  %v1590_v2 = vmul.f32 0.2, %v1167_v63  ;;  %v3383_v3 = vpop.f32.mrb[10].mxu0  ;;  %v3447_v4 = vpop.f32.mrb[10].mxu1  ;;  %v1656_v5 = vsel %vm1400_vm1, %v3382_v57, %v1528_v61 }
 0x149   : > { %vm1398_vm3 = vcmp.gt.f32.partialorder %v911_v62, 0.0  ;;  %vm1401_vm4 = vcmp.gt.f32.partialorder %v3383_v3, 0.0  ;;  %v1529_v6 = vmul.f32 0.2, %v3383_v3  ;;  %v914_v7 = vpop.f32.mrb[11].mxu0  ;;  %v1170_v8 = vpop.f32.mrb[11].mxu1  ;;  %v1720_v13 = vsel %vm1464_vm2, %v3446_v58, %v1592_v0 }
 0x14a   : > { %vm1462_vm5 = vcmp.gt.f32.partialorder %v1167_v63, 0.0  ;;  %vm1465_vm6 = vcmp.gt.f32.partialorder %v3447_v4, 0.0  ;;  %v1593_v9 = vmul.f32 0.2, %v3447_v4  ;;  %vm1399_vm7 = vcmp.gt.f32.partialorder %v914_v7, 0.0 }
 0x14b   : > { %v1657_v10 = vsel %vm1401_vm4, %v3383_v3, %v1529_v6  ;;  %v1527_v11 = vmul.f32 0.2, %v914_v7  ;;  %vm1463_vm8 = vcmp.gt.f32.partialorder %v1170_v8, 0.0  ;;  %v1591_v12 = vmul.f32 0.2, %v1170_v8 }
 0x14c   : > { %v1654_v14 = vsel %vm1398_vm3, %v911_v62, %v1526_v1  ;;  %v2944_v15 = vpack.c.bf16 %v1657_v10, %v1656_v5  ;;  %v1721_v16 = vsel %vm1465_vm6, %v3447_v4, %v1593_v9  ;;  %v1718_v17 = vsel %vm1462_vm5, %v1167_v63, %v1590_v2 }
 0x14d   : > { %v3104_v18 = vpack.c.bf16 %v1721_v16, %v1720_v13  ;;  %v1655_v19 = vsel %vm1399_vm7, %v914_v7, %v1527_v11  ;;  %v1719_v20 = vsel %vm1463_vm8, %v1170_v8, %v1591_v12  ;;  %v3386_v21 = vpop.f32.mrb[12].mxu0  ;;  %v3450_v22 = vpop.f32.mrb[12].mxu1 }
 0x14e   : > { %3240 = vst [vmem:[%s4077_s15 + $0x28] sm:$0xff] %v2944_v15   ;;  %v2939_v23 = vpack.c.bf16 %v1655_v19, %v1654_v14  ;;  %v3099_v24 = vpack.c.bf16 %v1719_v20, %v1718_v17  ;;  %vm1404_vm9 = vcmp.gt.f32.partialorder %v3386_v21, 0.0  ;;  %v1532_v25 = vmul.f32 0.2, %v3386_v21  ;;  %v927_v26 = vpop.f32.mrb[13].mxu0  ;;  %v1183_v27 = vpop.f32.mrb[13].mxu1 }
 0x14f   : > { %3272 = vst [vmem:[%s4077_s15 + $0x128] sm:$0xff] %v3104_v18   ;;  %vm1468_vm10 = vcmp.gt.f32.partialorder %v3450_v22, 0.0  ;;  %v1596_v28 = vmul.f32 0.2, %v3450_v22  ;;  %v1530_v29 = vmul.f32 0.2, %v927_v26 }
 0x150   : > { %3239 = vst [vmem:[%s4077_s15 + $0x20] sm:$0xff] %v2939_v23   ;;  %3271 = vst [vmem:[%s4077_s15 + $0x120] sm:$0xff] %v3099_v24   ;;  %v1594_v30 = vmul.f32 0.2, %v1183_v27  ;;  %v3387_v31 = vpop.f32.mrb[14].mxu0  ;;  %v3451_v32 = vpop.f32.mrb[14].mxu1  ;;  %v1660_v33 = vsel %vm1404_vm9, %v3386_v21, %v1532_v25 }
 0x151   : > { %vm1402_vm11 = vcmp.gt.f32.partialorder %v927_v26, 0.0  ;;  %vm1405_vm12 = vcmp.gt.f32.partialorder %v3387_v31, 0.0  ;;  %v1533_v34 = vmul.f32 0.2, %v3387_v31  ;;  %v930_v35 = vpop.f32.mrb[15].mxu0  ;;  %v1186_v36 = vpop.f32.mrb[15].mxu1  ;;  %v1724_v41 = vsel %vm1468_vm10, %v3450_v22, %v1596_v28 }
 0x152   : > { %vm1466_vm13 = vcmp.gt.f32.partialorder %v1183_v27, 0.0  ;;  %vm1469_vm14 = vcmp.gt.f32.partialorder %v3451_v32, 0.0  ;;  %v1597_v37 = vmul.f32 0.2, %v3451_v32  ;;  %vm1403_vm15 = vcmp.gt.f32.partialorder %v930_v35, 0.0 }
 0x153   : > { %v1661_v38 = vsel %vm1405_vm12, %v3387_v31, %v1533_v34  ;;  %v1531_v39 = vmul.f32 0.2, %v930_v35  ;;  %vm1467_vm0 = vcmp.gt.f32.partialorder %v1186_v36, 0.0  ;;  %v1595_v40 = vmul.f32 0.2, %v1186_v36 }
 0x154   : > { %v1658_v42 = vsel %vm1402_vm11, %v927_v26, %v1530_v29  ;;  %v2954_v43 = vpack.c.bf16 %v1661_v38, %v1660_v33  ;;  %v1725_v44 = vsel %vm1469_vm14, %v3451_v32, %v1597_v37  ;;  %v1722_v45 = vsel %vm1466_vm13, %v1183_v27, %v1594_v30 }
 0x155   : > { %v3114_v46 = vpack.c.bf16 %v1725_v44, %v1724_v41  ;;  %v1659_v47 = vsel %vm1403_vm15, %v930_v35, %v1531_v39  ;;  %v1723_v48 = vsel %vm1467_vm0, %v1186_v36, %v1595_v40  ;;  %v3390_v49 = vpop.f32.mrb[16].mxu0  ;;  %v3454_v50 = vpop.f32.mrb[16].mxu1 }
 0x156   : > { %3242 = vst [vmem:[%s4077_s15 + $0x38] sm:$0xff] %v2954_v43   ;;  %v2949_v51 = vpack.c.bf16 %v1659_v47, %v1658_v42  ;;  %v3109_v52 = vpack.c.bf16 %v1723_v48, %v1722_v45  ;;  %vm1408_vm1 = vcmp.gt.f32.partialorder %v3390_v49, 0.0  ;;  %v1536_v53 = vmul.f32 0.2, %v3390_v49  ;;  %v943_v54 = vpop.f32.mrb[17].mxu0  ;;  %v1199_v55 = vpop.f32.mrb[17].mxu1 }
 0x157   : > { %3274 = vst [vmem:[%s4077_s15 + $0x138] sm:$0xff] %v3114_v46   ;;  %vm1472_vm2 = vcmp.gt.f32.partialorder %v3454_v50, 0.0  ;;  %v1600_v56 = vmul.f32 0.2, %v3454_v50  ;;  %v1534_v57 = vmul.f32 0.2, %v943_v54 }
 0x158   : > { %3241 = vst [vmem:[%s4077_s15 + $0x30] sm:$0xff] %v2949_v51   ;;  %3273 = vst [vmem:[%s4077_s15 + $0x130] sm:$0xff] %v3109_v52   ;;  %v1598_v58 = vmul.f32 0.2, %v1199_v55  ;;  %v3391_v59 = vpop.f32.mrb[18].mxu0  ;;  %v3455_v60 = vpop.f32.mrb[18].mxu1  ;;  %v1664_v61 = vsel %vm1408_vm1, %v3390_v49, %v1536_v53 }
 0x159   : > { %vm1406_vm3 = vcmp.gt.f32.partialorder %v943_v54, 0.0  ;;  %vm1409_vm4 = vcmp.gt.f32.partialorder %v3391_v59, 0.0  ;;  %v1537_v62 = vmul.f32 0.2, %v3391_v59  ;;  %v946_v63 = vpop.f32.mrb[19].mxu0  ;;  %v1202_v0 = vpop.f32.mrb[19].mxu1  ;;  %v1728_v5 = vsel %vm1472_vm2, %v3454_v50, %v1600_v56 }
 0x15a   : > { %vm1470_vm5 = vcmp.gt.f32.partialorder %v1199_v55, 0.0  ;;  %vm1473_vm6 = vcmp.gt.f32.partialorder %v3455_v60, 0.0  ;;  %v1601_v1 = vmul.f32 0.2, %v3455_v60  ;;  %vm1407_vm7 = vcmp.gt.f32.partialorder %v946_v63, 0.0 }
 0x15b   : > { %v1665_v2 = vsel %vm1409_vm4, %v3391_v59, %v1537_v62  ;;  %v1535_v3 = vmul.f32 0.2, %v946_v63  ;;  %vm1471_vm8 = vcmp.gt.f32.partialorder %v1202_v0, 0.0  ;;  %v1599_v4 = vmul.f32 0.2, %v1202_v0 }
 0x15c   : > { %v1662_v6 = vsel %vm1406_vm3, %v943_v54, %v1534_v57  ;;  %v2964_v7 = vpack.c.bf16 %v1665_v2, %v1664_v61  ;;  %v1729_v8 = vsel %vm1473_vm6, %v3455_v60, %v1601_v1  ;;  %v1726_v9 = vsel %vm1470_vm5, %v1199_v55, %v1598_v58 }
 0x15d   : > { %v3124_v10 = vpack.c.bf16 %v1729_v8, %v1728_v5  ;;  %v1663_v11 = vsel %vm1407_vm7, %v946_v63, %v1535_v3  ;;  %v1727_v12 = vsel %vm1471_vm8, %v1202_v0, %v1599_v4  ;;  %v3394_v13 = vpop.f32.mrb[20].mxu0  ;;  %v3458_v14 = vpop.f32.mrb[20].mxu1 }
 0x15e   : > { %3244 = vst [vmem:[%s4077_s15 + $0x48] sm:$0xff] %v2964_v7   ;;  %v2959_v15 = vpack.c.bf16 %v1663_v11, %v1662_v6  ;;  %v3119_v16 = vpack.c.bf16 %v1727_v12, %v1726_v9  ;;  %vm1412_vm9 = vcmp.gt.f32.partialorder %v3394_v13, 0.0  ;;  %v1540_v17 = vmul.f32 0.2, %v3394_v13  ;;  %v959_v18 = vpop.f32.mrb[21].mxu0  ;;  %v1215_v19 = vpop.f32.mrb[21].mxu1 }
 0x15f   : > { %3276 = vst [vmem:[%s4077_s15 + $0x148] sm:$0xff] %v3124_v10   ;;  %vm1476_vm10 = vcmp.gt.f32.partialorder %v3458_v14, 0.0  ;;  %v1604_v20 = vmul.f32 0.2, %v3458_v14  ;;  %v1538_v21 = vmul.f32 0.2, %v959_v18 }
 0x160   : > { %3243 = vst [vmem:[%s4077_s15 + $0x40] sm:$0xff] %v2959_v15   ;;  %3275 = vst [vmem:[%s4077_s15 + $0x140] sm:$0xff] %v3119_v16   ;;  %v1602_v22 = vmul.f32 0.2, %v1215_v19  ;;  %v3395_v23 = vpop.f32.mrb[22].mxu0  ;;  %v3459_v24 = vpop.f32.mrb[22].mxu1  ;;  %v1668_v25 = vsel %vm1412_vm9, %v3394_v13, %v1540_v17 }
 0x161   : > { %vm1410_vm11 = vcmp.gt.f32.partialorder %v959_v18, 0.0  ;;  %vm1413_vm12 = vcmp.gt.f32.partialorder %v3395_v23, 0.0  ;;  %v1541_v26 = vmul.f32 0.2, %v3395_v23  ;;  %v962_v27 = vpop.f32.mrb[23].mxu0  ;;  %v1218_v28 = vpop.f32.mrb[23].mxu1  ;;  %v1732_v33 = vsel %vm1476_vm10, %v3458_v14, %v1604_v20 }
 0x162   : > { %vm1474_vm13 = vcmp.gt.f32.partialorder %v1215_v19, 0.0  ;;  %vm1477_vm14 = vcmp.gt.f32.partialorder %v3459_v24, 0.0  ;;  %v1605_v29 = vmul.f32 0.2, %v3459_v24  ;;  %vm1411_vm15 = vcmp.gt.f32.partialorder %v962_v27, 0.0 }
 0x163   : > { %v1669_v30 = vsel %vm1413_vm12, %v3395_v23, %v1541_v26  ;;  %v1539_v31 = vmul.f32 0.2, %v962_v27  ;;  %vm1475_vm0 = vcmp.gt.f32.partialorder %v1218_v28, 0.0  ;;  %v1603_v32 = vmul.f32 0.2, %v1218_v28 }
 0x164   : > { %v1666_v34 = vsel %vm1410_vm11, %v959_v18, %v1538_v21  ;;  %v2974_v35 = vpack.c.bf16 %v1669_v30, %v1668_v25  ;;  %v1733_v36 = vsel %vm1477_vm14, %v3459_v24, %v1605_v29  ;;  %v1730_v37 = vsel %vm1474_vm13, %v1215_v19, %v1602_v22 }
 0x165   : > { %v3134_v38 = vpack.c.bf16 %v1733_v36, %v1732_v33  ;;  %v1667_v39 = vsel %vm1411_vm15, %v962_v27, %v1539_v31  ;;  %v1731_v40 = vsel %vm1475_vm0, %v1218_v28, %v1603_v32  ;;  %v3398_v41 = vpop.f32.mrb[24].mxu0  ;;  %v3462_v42 = vpop.f32.mrb[24].mxu1 }
 0x166   : > { %3246 = vst [vmem:[%s4077_s15 + $0x58] sm:$0xff] %v2974_v35   ;;  %v2969_v43 = vpack.c.bf16 %v1667_v39, %v1666_v34  ;;  %v3129_v44 = vpack.c.bf16 %v1731_v40, %v1730_v37  ;;  %vm1416_vm1 = vcmp.gt.f32.partialorder %v3398_v41, 0.0  ;;  %v1544_v45 = vmul.f32 0.2, %v3398_v41  ;;  %v975_v46 = vpop.f32.mrb[25].mxu0  ;;  %v1231_v47 = vpop.f32.mrb[25].mxu1 }
 0x167   : > { %3278 = vst [vmem:[%s4077_s15 + $0x158] sm:$0xff] %v3134_v38   ;;  %vm1480_vm2 = vcmp.gt.f32.partialorder %v3462_v42, 0.0  ;;  %v1608_v48 = vmul.f32 0.2, %v3462_v42  ;;  %v1542_v49 = vmul.f32 0.2, %v975_v46 }
 0x168   : > { %3245 = vst [vmem:[%s4077_s15 + $0x50] sm:$0xff] %v2969_v43   ;;  %3277 = vst [vmem:[%s4077_s15 + $0x150] sm:$0xff] %v3129_v44   ;;  %v1606_v50 = vmul.f32 0.2, %v1231_v47  ;;  %v3399_v51 = vpop.f32.mrb[26].mxu0  ;;  %v3463_v52 = vpop.f32.mrb[26].mxu1  ;;  %v1672_v53 = vsel %vm1416_vm1, %v3398_v41, %v1544_v45 }
 0x169   : > { %vm1414_vm3 = vcmp.gt.f32.partialorder %v975_v46, 0.0  ;;  %vm1417_vm4 = vcmp.gt.f32.partialorder %v3399_v51, 0.0  ;;  %v1545_v54 = vmul.f32 0.2, %v3399_v51  ;;  %v978_v55 = vpop.f32.mrb[27].mxu0  ;;  %v1234_v56 = vpop.f32.mrb[27].mxu1  ;;  %v1736_v61 = vsel %vm1480_vm2, %v3462_v42, %v1608_v48 }
 0x16a   : > { %vm1478_vm5 = vcmp.gt.f32.partialorder %v1231_v47, 0.0  ;;  %vm1481_vm6 = vcmp.gt.f32.partialorder %v3463_v52, 0.0  ;;  %v1609_v57 = vmul.f32 0.2, %v3463_v52  ;;  %vm1415_vm7 = vcmp.gt.f32.partialorder %v978_v55, 0.0 }
 0x16b   : > { %v1673_v58 = vsel %vm1417_vm4, %v3399_v51, %v1545_v54  ;;  %v1543_v59 = vmul.f32 0.2, %v978_v55  ;;  %vm1479_vm8 = vcmp.gt.f32.partialorder %v1234_v56, 0.0  ;;  %v1607_v60 = vmul.f32 0.2, %v1234_v56 }
 0x16c   : > { %v1670_v62 = vsel %vm1414_vm3, %v975_v46, %v1542_v49  ;;  %v2984_v63 = vpack.c.bf16 %v1673_v58, %v1672_v53  ;;  %v1737_v0 = vsel %vm1481_vm6, %v3463_v52, %v1609_v57  ;;  %v1734_v1 = vsel %vm1478_vm5, %v1231_v47, %v1606_v50 }
 0x16d   : > { %v3144_v2 = vpack.c.bf16 %v1737_v0, %v1736_v61  ;;  %v1671_v3 = vsel %vm1415_vm7, %v978_v55, %v1543_v59  ;;  %v1735_v4 = vsel %vm1479_vm8, %v1234_v56, %v1607_v60  ;;  %v3402_v5 = vpop.f32.mrb[28].mxu0  ;;  %v3466_v6 = vpop.f32.mrb[28].mxu1 }
 0x16e   : > { %3248 = vst [vmem:[%s4077_s15 + $0x68] sm:$0xff] %v2984_v63   ;;  %v2979_v7 = vpack.c.bf16 %v1671_v3, %v1670_v62  ;;  %v3139_v8 = vpack.c.bf16 %v1735_v4, %v1734_v1  ;;  %vm1420_vm9 = vcmp.gt.f32.partialorder %v3402_v5, 0.0  ;;  %v1548_v9 = vmul.f32 0.2, %v3402_v5  ;;  %v991_v10 = vpop.f32.mrb[29].mxu0  ;;  %v1247_v11 = vpop.f32.mrb[29].mxu1 }
 0x16f   : > { %3280 = vst [vmem:[%s4077_s15 + $0x168] sm:$0xff] %v3144_v2   ;;  %vm1484_vm10 = vcmp.gt.f32.partialorder %v3466_v6, 0.0  ;;  %v1612_v12 = vmul.f32 0.2, %v3466_v6  ;;  %v1546_v13 = vmul.f32 0.2, %v991_v10 }
 0x170   : > { %3247 = vst [vmem:[%s4077_s15 + $0x60] sm:$0xff] %v2979_v7   ;;  %3279 = vst [vmem:[%s4077_s15 + $0x160] sm:$0xff] %v3139_v8   ;;  %v1610_v14 = vmul.f32 0.2, %v1247_v11  ;;  %v3403_v15 = vpop.f32.mrb[30].mxu0  ;;  %v3467_v16 = vpop.f32.mrb[30].mxu1  ;;  %v1676_v17 = vsel %vm1420_vm9, %v3402_v5, %v1548_v9 }
 0x171   : > { %vm1418_vm11 = vcmp.gt.f32.partialorder %v991_v10, 0.0  ;;  %vm1421_vm12 = vcmp.gt.f32.partialorder %v3403_v15, 0.0  ;;  %v1549_v18 = vmul.f32 0.2, %v3403_v15  ;;  %v994_v19 = vpop.f32.mrb[31].mxu0  ;;  %v1250_v20 = vpop.f32.mrb[31].mxu1  ;;  %v1740_v25 = vsel %vm1484_vm10, %v3466_v6, %v1612_v12 }
 0x172   : > { %vm1482_vm13 = vcmp.gt.f32.partialorder %v1247_v11, 0.0  ;;  %vm1485_vm14 = vcmp.gt.f32.partialorder %v3467_v16, 0.0  ;;  %v1613_v21 = vmul.f32 0.2, %v3467_v16  ;;  %vm1419_vm15 = vcmp.gt.f32.partialorder %v994_v19, 0.0 }
 0x173   : > { %v1677_v22 = vsel %vm1421_vm12, %v3403_v15, %v1549_v18  ;;  %v1547_v23 = vmul.f32 0.2, %v994_v19  ;;  %vm1483_vm0 = vcmp.gt.f32.partialorder %v1250_v20, 0.0  ;;  %v1611_v24 = vmul.f32 0.2, %v1250_v20 }
 0x174   : > { %v1674_v26 = vsel %vm1418_vm11, %v991_v10, %v1546_v13  ;;  %v2994_v27 = vpack.c.bf16 %v1677_v22, %v1676_v17  ;;  %v1741_v28 = vsel %vm1485_vm14, %v3467_v16, %v1613_v21  ;;  %v1738_v29 = vsel %vm1482_vm13, %v1247_v11, %v1610_v14 }
 0x175   : > { %v3154_v30 = vpack.c.bf16 %v1741_v28, %v1740_v25  ;;  %v1675_v31 = vsel %vm1419_vm15, %v994_v19, %v1547_v23  ;;  %v1739_v32 = vsel %vm1483_vm0, %v1250_v20, %v1611_v24  ;;  %v3406_v33 = vpop.f32.mrb[32].mxu0  ;;  %v3470_v34 = vpop.f32.mrb[32].mxu1 }
 0x176   : > { %3250 = vst [vmem:[%s4077_s15 + $0x78] sm:$0xff] %v2994_v27   ;;  %v2989_v35 = vpack.c.bf16 %v1675_v31, %v1674_v26  ;;  %v3149_v36 = vpack.c.bf16 %v1739_v32, %v1738_v29  ;;  %vm1424_vm1 = vcmp.gt.f32.partialorder %v3406_v33, 0.0  ;;  %v1552_v37 = vmul.f32 0.2, %v3406_v33  ;;  %v1007_v38 = vpop.f32.mrb[33].mxu0  ;;  %v1263_v39 = vpop.f32.mrb[33].mxu1 }
 0x177   : > { %3282 = vst [vmem:[%s4077_s15 + $0x178] sm:$0xff] %v3154_v30   ;;  %vm1488_vm2 = vcmp.gt.f32.partialorder %v3470_v34, 0.0  ;;  %v1616_v40 = vmul.f32 0.2, %v3470_v34  ;;  %v1550_v41 = vmul.f32 0.2, %v1007_v38 }
 0x178   : > { %3249 = vst [vmem:[%s4077_s15 + $0x70] sm:$0xff] %v2989_v35   ;;  %3281 = vst [vmem:[%s4077_s15 + $0x170] sm:$0xff] %v3149_v36   ;;  %v1614_v42 = vmul.f32 0.2, %v1263_v39  ;;  %v3407_v43 = vpop.f32.mrb[34].mxu0  ;;  %v3471_v44 = vpop.f32.mrb[34].mxu1  ;;  %v1680_v45 = vsel %vm1424_vm1, %v3406_v33, %v1552_v37 }
 0x179   : > { %vm1422_vm3 = vcmp.gt.f32.partialorder %v1007_v38, 0.0  ;;  %vm1425_vm4 = vcmp.gt.f32.partialorder %v3407_v43, 0.0  ;;  %v1553_v46 = vmul.f32 0.2, %v3407_v43  ;;  %v1010_v47 = vpop.f32.mrb[35].mxu0  ;;  %v1266_v48 = vpop.f32.mrb[35].mxu1  ;;  %v1744_v53 = vsel %vm1488_vm2, %v3470_v34, %v1616_v40 }
 0x17a   : > { %vm1486_vm5 = vcmp.gt.f32.partialorder %v1263_v39, 0.0  ;;  %vm1489_vm6 = vcmp.gt.f32.partialorder %v3471_v44, 0.0  ;;  %v1617_v49 = vmul.f32 0.2, %v3471_v44  ;;  %vm1423_vm7 = vcmp.gt.f32.partialorder %v1010_v47, 0.0 }
 0x17b   : > { %v1681_v50 = vsel %vm1425_vm4, %v3407_v43, %v1553_v46  ;;  %v1551_v51 = vmul.f32 0.2, %v1010_v47  ;;  %vm1487_vm8 = vcmp.gt.f32.partialorder %v1266_v48, 0.0  ;;  %v1615_v52 = vmul.f32 0.2, %v1266_v48 }
 0x17c   : > { %v1678_v54 = vsel %vm1422_vm3, %v1007_v38, %v1550_v41  ;;  %v3004_v55 = vpack.c.bf16 %v1681_v50, %v1680_v45  ;;  %v1745_v56 = vsel %vm1489_vm6, %v3471_v44, %v1617_v49  ;;  %v1742_v57 = vsel %vm1486_vm5, %v1263_v39, %v1614_v42 }
 0x17d   : > { %v3164_v58 = vpack.c.bf16 %v1745_v56, %v1744_v53  ;;  %v1679_v59 = vsel %vm1423_vm7, %v1010_v47, %v1551_v51  ;;  %v1743_v60 = vsel %vm1487_vm8, %v1266_v48, %v1615_v52  ;;  %v3410_v61 = vpop.f32.mrb[36].mxu0  ;;  %v3474_v62 = vpop.f32.mrb[36].mxu1 }
 0x17e   : > { %3252 = vst [vmem:[%s4077_s15 + $0x88] sm:$0xff] %v3004_v55   ;;  %v2999_v63 = vpack.c.bf16 %v1679_v59, %v1678_v54  ;;  %v3159_v0 = vpack.c.bf16 %v1743_v60, %v1742_v57  ;;  %vm1428_vm9 = vcmp.gt.f32.partialorder %v3410_v61, 0.0  ;;  %v1556_v1 = vmul.f32 0.2, %v3410_v61  ;;  %v1023_v2 = vpop.f32.mrb[37].mxu0  ;;  %v1279_v3 = vpop.f32.mrb[37].mxu1 }
 0x17f   : > { %3284 = vst [vmem:[%s4077_s15 + $0x188] sm:$0xff] %v3164_v58   ;;  %vm1492_vm10 = vcmp.gt.f32.partialorder %v3474_v62, 0.0  ;;  %v1620_v4 = vmul.f32 0.2, %v3474_v62  ;;  %v1554_v5 = vmul.f32 0.2, %v1023_v2 }
 0x180   : > { %3251 = vst [vmem:[%s4077_s15 + $0x80] sm:$0xff] %v2999_v63   ;;  %3283 = vst [vmem:[%s4077_s15 + $0x180] sm:$0xff] %v3159_v0   ;;  %v1618_v6 = vmul.f32 0.2, %v1279_v3  ;;  %v3411_v7 = vpop.f32.mrb[38].mxu0  ;;  %v3475_v8 = vpop.f32.mrb[38].mxu1  ;;  %v1684_v9 = vsel %vm1428_vm9, %v3410_v61, %v1556_v1 }
 0x181   : > { %vm1426_vm11 = vcmp.gt.f32.partialorder %v1023_v2, 0.0  ;;  %vm1429_vm12 = vcmp.gt.f32.partialorder %v3411_v7, 0.0  ;;  %v1557_v10 = vmul.f32 0.2, %v3411_v7  ;;  %v1026_v11 = vpop.f32.mrb[39].mxu0  ;;  %v1282_v12 = vpop.f32.mrb[39].mxu1  ;;  %v1748_v17 = vsel %vm1492_vm10, %v3474_v62, %v1620_v4 }
 0x182   : > { %vm1490_vm13 = vcmp.gt.f32.partialorder %v1279_v3, 0.0  ;;  %vm1493_vm14 = vcmp.gt.f32.partialorder %v3475_v8, 0.0  ;;  %v1621_v13 = vmul.f32 0.2, %v3475_v8  ;;  %vm1427_vm15 = vcmp.gt.f32.partialorder %v1026_v11, 0.0 }
 0x183   : > { %v1685_v14 = vsel %vm1429_vm12, %v3411_v7, %v1557_v10  ;;  %v1555_v15 = vmul.f32 0.2, %v1026_v11  ;;  %vm1491_vm0 = vcmp.gt.f32.partialorder %v1282_v12, 0.0  ;;  %v1619_v16 = vmul.f32 0.2, %v1282_v12 }
 0x184   : > { %v1682_v18 = vsel %vm1426_vm11, %v1023_v2, %v1554_v5  ;;  %v3014_v19 = vpack.c.bf16 %v1685_v14, %v1684_v9  ;;  %v1749_v20 = vsel %vm1493_vm14, %v3475_v8, %v1621_v13  ;;  %v1746_v21 = vsel %vm1490_vm13, %v1279_v3, %v1618_v6 }
 0x185   : > { %v3174_v22 = vpack.c.bf16 %v1749_v20, %v1748_v17  ;;  %v1683_v23 = vsel %vm1427_vm15, %v1026_v11, %v1555_v15  ;;  %v1747_v24 = vsel %vm1491_vm0, %v1282_v12, %v1619_v16  ;;  %v3414_v25 = vpop.f32.mrb[40].mxu0  ;;  %v3478_v26 = vpop.f32.mrb[40].mxu1 }
 0x186   : > { %3254 = vst [vmem:[%s4077_s15 + $0x98] sm:$0xff] %v3014_v19   ;;  %v3009_v27 = vpack.c.bf16 %v1683_v23, %v1682_v18  ;;  %v3169_v28 = vpack.c.bf16 %v1747_v24, %v1746_v21  ;;  %vm1432_vm1 = vcmp.gt.f32.partialorder %v3414_v25, 0.0  ;;  %v1560_v29 = vmul.f32 0.2, %v3414_v25  ;;  %v1039_v30 = vpop.f32.mrb[41].mxu0  ;;  %v1295_v31 = vpop.f32.mrb[41].mxu1 }
 0x187   : > { %3286 = vst [vmem:[%s4077_s15 + $0x198] sm:$0xff] %v3174_v22   ;;  %vm1496_vm2 = vcmp.gt.f32.partialorder %v3478_v26, 0.0  ;;  %v1624_v32 = vmul.f32 0.2, %v3478_v26  ;;  %v1558_v33 = vmul.f32 0.2, %v1039_v30 }
 0x188   : > { %3253 = vst [vmem:[%s4077_s15 + $0x90] sm:$0xff] %v3009_v27   ;;  %3285 = vst [vmem:[%s4077_s15 + $0x190] sm:$0xff] %v3169_v28   ;;  %v1622_v34 = vmul.f32 0.2, %v1295_v31  ;;  %v3415_v35 = vpop.f32.mrb[42].mxu0  ;;  %v3479_v36 = vpop.f32.mrb[42].mxu1  ;;  %v1688_v37 = vsel %vm1432_vm1, %v3414_v25, %v1560_v29 }
 0x189   : > { %vm1430_vm3 = vcmp.gt.f32.partialorder %v1039_v30, 0.0  ;;  %vm1433_vm4 = vcmp.gt.f32.partialorder %v3415_v35, 0.0  ;;  %v1561_v38 = vmul.f32 0.2, %v3415_v35  ;;  %v1042_v39 = vpop.f32.mrb[43].mxu0  ;;  %v1298_v40 = vpop.f32.mrb[43].mxu1  ;;  %v1752_v45 = vsel %vm1496_vm2, %v3478_v26, %v1624_v32 }
 0x18a   : > { %vm1494_vm5 = vcmp.gt.f32.partialorder %v1295_v31, 0.0  ;;  %vm1497_vm6 = vcmp.gt.f32.partialorder %v3479_v36, 0.0  ;;  %v1625_v41 = vmul.f32 0.2, %v3479_v36  ;;  %vm1431_vm7 = vcmp.gt.f32.partialorder %v1042_v39, 0.0 }
 0x18b   : > { %v1689_v42 = vsel %vm1433_vm4, %v3415_v35, %v1561_v38  ;;  %v1559_v43 = vmul.f32 0.2, %v1042_v39  ;;  %vm1495_vm8 = vcmp.gt.f32.partialorder %v1298_v40, 0.0  ;;  %v1623_v44 = vmul.f32 0.2, %v1298_v40 }
 0x18c   : > { %v1686_v46 = vsel %vm1430_vm3, %v1039_v30, %v1558_v33  ;;  %v3024_v47 = vpack.c.bf16 %v1689_v42, %v1688_v37  ;;  %v1753_v48 = vsel %vm1497_vm6, %v3479_v36, %v1625_v41  ;;  %v1750_v49 = vsel %vm1494_vm5, %v1295_v31, %v1622_v34 }
 0x18d   : > { %v3184_v50 = vpack.c.bf16 %v1753_v48, %v1752_v45  ;;  %v1687_v51 = vsel %vm1431_vm7, %v1042_v39, %v1559_v43  ;;  %v1751_v52 = vsel %vm1495_vm8, %v1298_v40, %v1623_v44  ;;  %v3418_v53 = vpop.f32.mrb[44].mxu0  ;;  %v3482_v54 = vpop.f32.mrb[44].mxu1 }
 0x18e   : > { %3256 = vst [vmem:[%s4077_s15 + $0xa8] sm:$0xff] %v3024_v47   ;;  %v3019_v55 = vpack.c.bf16 %v1687_v51, %v1686_v46  ;;  %v3179_v56 = vpack.c.bf16 %v1751_v52, %v1750_v49  ;;  %vm1436_vm9 = vcmp.gt.f32.partialorder %v3418_v53, 0.0  ;;  %v1564_v57 = vmul.f32 0.2, %v3418_v53  ;;  %v1055_v58 = vpop.f32.mrb[45].mxu0  ;;  %v1311_v59 = vpop.f32.mrb[45].mxu1 }
 0x18f   : > { %3288 = vst [vmem:[%s4077_s15 + $0x1a8] sm:$0xff] %v3184_v50   ;;  %vm1500_vm10 = vcmp.gt.f32.partialorder %v3482_v54, 0.0  ;;  %v1628_v60 = vmul.f32 0.2, %v3482_v54  ;;  %v1562_v61 = vmul.f32 0.2, %v1055_v58 }
 0x190   : > { %3255 = vst [vmem:[%s4077_s15 + $0xa0] sm:$0xff] %v3019_v55   ;;  %3287 = vst [vmem:[%s4077_s15 + $0x1a0] sm:$0xff] %v3179_v56   ;;  %v1626_v62 = vmul.f32 0.2, %v1311_v59  ;;  %v3419_v63 = vpop.f32.mrb[46].mxu0  ;;  %v3483_v0 = vpop.f32.mrb[46].mxu1  ;;  %v1692_v1 = vsel %vm1436_vm9, %v3418_v53, %v1564_v57 }
 0x191   : > { %vm1434_vm11 = vcmp.gt.f32.partialorder %v1055_v58, 0.0  ;;  %vm1437_vm12 = vcmp.gt.f32.partialorder %v3419_v63, 0.0  ;;  %v1565_v2 = vmul.f32 0.2, %v3419_v63  ;;  %v1058_v3 = vpop.f32.mrb[47].mxu0  ;;  %v1314_v4 = vpop.f32.mrb[47].mxu1  ;;  %v1756_v9 = vsel %vm1500_vm10, %v3482_v54, %v1628_v60 }
 0x192   : > { %vm1498_vm13 = vcmp.gt.f32.partialorder %v1311_v59, 0.0  ;;  %vm1501_vm14 = vcmp.gt.f32.partialorder %v3483_v0, 0.0  ;;  %v1629_v5 = vmul.f32 0.2, %v3483_v0  ;;  %vm1435_vm15 = vcmp.gt.f32.partialorder %v1058_v3, 0.0 }
 0x193   : > { %v1693_v6 = vsel %vm1437_vm12, %v3419_v63, %v1565_v2  ;;  %v1563_v7 = vmul.f32 0.2, %v1058_v3  ;;  %vm1499_vm0 = vcmp.gt.f32.partialorder %v1314_v4, 0.0  ;;  %v1627_v8 = vmul.f32 0.2, %v1314_v4 }
 0x194   : > { %v1690_v10 = vsel %vm1434_vm11, %v1055_v58, %v1562_v61  ;;  %v3034_v11 = vpack.c.bf16 %v1693_v6, %v1692_v1  ;;  %v1757_v12 = vsel %vm1501_vm14, %v3483_v0, %v1629_v5  ;;  %v1754_v13 = vsel %vm1498_vm13, %v1311_v59, %v1626_v62 }
 0x195   : > { %v3194_v14 = vpack.c.bf16 %v1757_v12, %v1756_v9  ;;  %v1691_v15 = vsel %vm1435_vm15, %v1058_v3, %v1563_v7  ;;  %v1755_v16 = vsel %vm1499_vm0, %v1314_v4, %v1627_v8  ;;  %v3422_v17 = vpop.f32.mrb[48].mxu0  ;;  %v3486_v18 = vpop.f32.mrb[48].mxu1 }
 0x196   : > { %3258 = vst [vmem:[%s4077_s15 + $0xb8] sm:$0xff] %v3034_v11   ;;  %v3029_v19 = vpack.c.bf16 %v1691_v15, %v1690_v10  ;;  %v3189_v20 = vpack.c.bf16 %v1755_v16, %v1754_v13  ;;  %vm1440_vm1 = vcmp.gt.f32.partialorder %v3422_v17, 0.0  ;;  %v1568_v21 = vmul.f32 0.2, %v3422_v17  ;;  %v1071_v22 = vpop.f32.mrb[49].mxu0  ;;  %v1327_v23 = vpop.f32.mrb[49].mxu1 }
 0x197   : > { %3290 = vst [vmem:[%s4077_s15 + $0x1b8] sm:$0xff] %v3194_v14   ;;  %vm1504_vm2 = vcmp.gt.f32.partialorder %v3486_v18, 0.0  ;;  %v1632_v24 = vmul.f32 0.2, %v3486_v18  ;;  %v1566_v25 = vmul.f32 0.2, %v1071_v22 }
 0x198   : > { %3257 = vst [vmem:[%s4077_s15 + $0xb0] sm:$0xff] %v3029_v19   ;;  %3289 = vst [vmem:[%s4077_s15 + $0x1b0] sm:$0xff] %v3189_v20   ;;  %v1630_v26 = vmul.f32 0.2, %v1327_v23  ;;  %v3423_v27 = vpop.f32.mrb[50].mxu0  ;;  %v3487_v28 = vpop.f32.mrb[50].mxu1  ;;  %v1696_v29 = vsel %vm1440_vm1, %v3422_v17, %v1568_v21 }
 0x199   : > { %vm1438_vm3 = vcmp.gt.f32.partialorder %v1071_v22, 0.0  ;;  %vm1441_vm4 = vcmp.gt.f32.partialorder %v3423_v27, 0.0  ;;  %v1569_v30 = vmul.f32 0.2, %v3423_v27  ;;  %v1074_v31 = vpop.f32.mrb[51].mxu0  ;;  %v1330_v32 = vpop.f32.mrb[51].mxu1  ;;  %v1760_v37 = vsel %vm1504_vm2, %v3486_v18, %v1632_v24 }
 0x19a   : > { %vm1502_vm5 = vcmp.gt.f32.partialorder %v1327_v23, 0.0  ;;  %vm1505_vm6 = vcmp.gt.f32.partialorder %v3487_v28, 0.0  ;;  %v1633_v33 = vmul.f32 0.2, %v3487_v28  ;;  %vm1439_vm7 = vcmp.gt.f32.partialorder %v1074_v31, 0.0 }
 0x19b   : > { %v1697_v34 = vsel %vm1441_vm4, %v3423_v27, %v1569_v30  ;;  %v1567_v35 = vmul.f32 0.2, %v1074_v31  ;;  %vm1503_vm8 = vcmp.gt.f32.partialorder %v1330_v32, 0.0  ;;  %v1631_v36 = vmul.f32 0.2, %v1330_v32 }
 0x19c   : > { %v1694_v38 = vsel %vm1438_vm3, %v1071_v22, %v1566_v25  ;;  %v3044_v39 = vpack.c.bf16 %v1697_v34, %v1696_v29  ;;  %v1761_v40 = vsel %vm1505_vm6, %v3487_v28, %v1633_v33  ;;  %v1758_v41 = vsel %vm1502_vm5, %v1327_v23, %v1630_v26 }
 0x19d   : > { %v3204_v42 = vpack.c.bf16 %v1761_v40, %v1760_v37  ;;  %v1695_v43 = vsel %vm1439_vm7, %v1074_v31, %v1567_v35  ;;  %v1759_v44 = vsel %vm1503_vm8, %v1330_v32, %v1631_v36  ;;  %v3426_v45 = vpop.f32.mrb[52].mxu0  ;;  %v3490_v46 = vpop.f32.mrb[52].mxu1 }
 0x19e   : > { %3260 = vst [vmem:[%s4077_s15 + $0xc8] sm:$0xff] %v3044_v39   ;;  %v3039_v47 = vpack.c.bf16 %v1695_v43, %v1694_v38  ;;  %v3199_v48 = vpack.c.bf16 %v1759_v44, %v1758_v41  ;;  %vm1444_vm9 = vcmp.gt.f32.partialorder %v3426_v45, 0.0  ;;  %v1572_v49 = vmul.f32 0.2, %v3426_v45  ;;  %v1087_v50 = vpop.f32.mrb[53].mxu0  ;;  %v1343_v51 = vpop.f32.mrb[53].mxu1 }
 0x19f   : > { %3292 = vst [vmem:[%s4077_s15 + $0x1c8] sm:$0xff] %v3204_v42   ;;  %vm1508_vm10 = vcmp.gt.f32.partialorder %v3490_v46, 0.0  ;;  %v1636_v52 = vmul.f32 0.2, %v3490_v46  ;;  %v1570_v53 = vmul.f32 0.2, %v1087_v50 }
 0x1a0   : > { %3259 = vst [vmem:[%s4077_s15 + $0xc0] sm:$0xff] %v3039_v47   ;;  %3291 = vst [vmem:[%s4077_s15 + $0x1c0] sm:$0xff] %v3199_v48   ;;  %v1634_v54 = vmul.f32 0.2, %v1343_v51  ;;  %v3427_v55 = vpop.f32.mrb[54].mxu0  ;;  %v3491_v56 = vpop.f32.mrb[54].mxu1  ;;  %v1700_v57 = vsel %vm1444_vm9, %v3426_v45, %v1572_v49 }
 0x1a1   : > { %vm1442_vm11 = vcmp.gt.f32.partialorder %v1087_v50, 0.0  ;;  %vm1445_vm12 = vcmp.gt.f32.partialorder %v3427_v55, 0.0  ;;  %v1573_v58 = vmul.f32 0.2, %v3427_v55  ;;  %v1090_v59 = vpop.f32.mrb[55].mxu0  ;;  %v1346_v60 = vpop.f32.mrb[55].mxu1  ;;  %v1764_v1 = vsel %vm1508_vm10, %v3490_v46, %v1636_v52 }
 0x1a2   : > { %vm1506_vm13 = vcmp.gt.f32.partialorder %v1343_v51, 0.0  ;;  %vm1509_vm14 = vcmp.gt.f32.partialorder %v3491_v56, 0.0  ;;  %v1637_v61 = vmul.f32 0.2, %v3491_v56  ;;  %vm1443_vm15 = vcmp.gt.f32.partialorder %v1090_v59, 0.0 }
 0x1a3   : > { %v1701_v62 = vsel %vm1445_vm12, %v3427_v55, %v1573_v58  ;;  %v1571_v63 = vmul.f32 0.2, %v1090_v59  ;;  %vm1507_vm0 = vcmp.gt.f32.partialorder %v1346_v60, 0.0  ;;  %v1635_v0 = vmul.f32 0.2, %v1346_v60 }
 0x1a4   : > { %v1698_v2 = vsel %vm1442_vm11, %v1087_v50, %v1570_v53  ;;  %v3054_v3 = vpack.c.bf16 %v1701_v62, %v1700_v57  ;;  %v1765_v4 = vsel %vm1509_vm14, %v3491_v56, %v1637_v61  ;;  %v1762_v5 = vsel %vm1506_vm13, %v1343_v51, %v1634_v54 }
 0x1a5   : > { %v3214_v6 = vpack.c.bf16 %v1765_v4, %v1764_v1  ;;  %v1699_v7 = vsel %vm1443_vm15, %v1090_v59, %v1571_v63  ;;  %v1763_v8 = vsel %vm1507_vm0, %v1346_v60, %v1635_v0  ;;  %v3430_v9 = vpop.f32.mrb[56].mxu0  ;;  %v3494_v10 = vpop.f32.mrb[56].mxu1 }
 0x1a6   : > { %3262 = vst [vmem:[%s4077_s15 + $0xd8] sm:$0xff] %v3054_v3   ;;  %v3049_v11 = vpack.c.bf16 %v1699_v7, %v1698_v2  ;;  %v3209_v12 = vpack.c.bf16 %v1763_v8, %v1762_v5  ;;  %vm1448_vm1 = vcmp.gt.f32.partialorder %v3430_v9, 0.0  ;;  %v1576_v13 = vmul.f32 0.2, %v3430_v9  ;;  %v1103_v14 = vpop.f32.mrb[57].mxu0  ;;  %v1359_v15 = vpop.f32.mrb[57].mxu1 }
 0x1a7   : > { %3294 = vst [vmem:[%s4077_s15 + $0x1d8] sm:$0xff] %v3214_v6   ;;  %vm1512_vm2 = vcmp.gt.f32.partialorder %v3494_v10, 0.0  ;;  %v1640_v16 = vmul.f32 0.2, %v3494_v10  ;;  %v1574_v17 = vmul.f32 0.2, %v1103_v14 }
 0x1a8   : > { %3261 = vst [vmem:[%s4077_s15 + $0xd0] sm:$0xff] %v3049_v11   ;;  %3293 = vst [vmem:[%s4077_s15 + $0x1d0] sm:$0xff] %v3209_v12   ;;  %v1638_v18 = vmul.f32 0.2, %v1359_v15  ;;  %v3431_v19 = vpop.f32.mrb[58].mxu0  ;;  %v3495_v20 = vpop.f32.mrb[58].mxu1  ;;  %v1704_v21 = vsel %vm1448_vm1, %v3430_v9, %v1576_v13 }
 0x1a9   : > { %vm1446_vm3 = vcmp.gt.f32.partialorder %v1103_v14, 0.0  ;;  %vm1449_vm4 = vcmp.gt.f32.partialorder %v3431_v19, 0.0  ;;  %v1577_v22 = vmul.f32 0.2, %v3431_v19  ;;  %v1106_v23 = vpop.f32.mrb[59].mxu0  ;;  %v1362_v24 = vpop.f32.mrb[59].mxu1  ;;  %v1768_v29 = vsel %vm1512_vm2, %v3494_v10, %v1640_v16 }
 0x1aa   : > { %vm1510_vm5 = vcmp.gt.f32.partialorder %v1359_v15, 0.0  ;;  %vm1513_vm6 = vcmp.gt.f32.partialorder %v3495_v20, 0.0  ;;  %v1641_v25 = vmul.f32 0.2, %v3495_v20  ;;  %vm1447_vm7 = vcmp.gt.f32.partialorder %v1106_v23, 0.0 }
 0x1ab   : > { %v1705_v26 = vsel %vm1449_vm4, %v3431_v19, %v1577_v22  ;;  %v1575_v27 = vmul.f32 0.2, %v1106_v23  ;;  %vm1511_vm8 = vcmp.gt.f32.partialorder %v1362_v24, 0.0  ;;  %v1639_v28 = vmul.f32 0.2, %v1362_v24 }
 0x1ac   : > { %v1702_v30 = vsel %vm1446_vm3, %v1103_v14, %v1574_v17  ;;  %v3064_v31 = vpack.c.bf16 %v1705_v26, %v1704_v21  ;;  %v1769_v32 = vsel %vm1513_vm6, %v3495_v20, %v1641_v25  ;;  %v1766_v33 = vsel %vm1510_vm5, %v1359_v15, %v1638_v18 }
 0x1ad   : > { %v3224_v34 = vpack.c.bf16 %v1769_v32, %v1768_v29  ;;  %v1703_v35 = vsel %vm1447_vm7, %v1106_v23, %v1575_v27  ;;  %v1767_v36 = vsel %vm1511_vm8, %v1362_v24, %v1639_v28  ;;  %v3434_v37 = vpop.f32.mrb[60].mxu0  ;;  %v3498_v38 = vpop.f32.mrb[60].mxu1 }
 0x1ae   : > { %3264 = vst [vmem:[%s4077_s15 + $0xe8] sm:$0xff] %v3064_v31   ;;  %v3059_v39 = vpack.c.bf16 %v1703_v35, %v1702_v30  ;;  %v3219_v40 = vpack.c.bf16 %v1767_v36, %v1766_v33  ;;  %vm1452_vm9 = vcmp.gt.f32.partialorder %v3434_v37, 0.0  ;;  %v1580_v41 = vmul.f32 0.2, %v3434_v37  ;;  %v1119_v42 = vpop.f32.mrb[61].mxu0  ;;  %v1375_v43 = vpop.f32.mrb[61].mxu1 }
 0x1af   : > { %3296 = vst [vmem:[%s4077_s15 + $0x1e8] sm:$0xff] %v3224_v34   ;;  %vm1516_vm10 = vcmp.gt.f32.partialorder %v3498_v38, 0.0  ;;  %v1644_v44 = vmul.f32 0.2, %v3498_v38  ;;  %v1578_v45 = vmul.f32 0.2, %v1119_v42 }
 0x1b0   : > { %3263 = vst [vmem:[%s4077_s15 + $0xe0] sm:$0xff] %v3059_v39   ;;  %3295 = vst [vmem:[%s4077_s15 + $0x1e0] sm:$0xff] %v3219_v40   ;;  %v1642_v46 = vmul.f32 0.2, %v1375_v43  ;;  %v3435_v47 = vpop.f32.mrb[62].mxu0  ;;  %v3499_v48 = vpop.f32.mrb[62].mxu1  ;;  %v1708_v49 = vsel %vm1452_vm9, %v3434_v37, %v1580_v41 }
 0x1b1   : > { %vm1450_vm11 = vcmp.gt.f32.partialorder %v1119_v42, 0.0  ;;  %vm1453_vm12 = vcmp.gt.f32.partialorder %v3435_v47, 0.0  ;;  %v1581_v50 = vmul.f32 0.2, %v3435_v47  ;;  %v1122_v51 = vpop.f32.mrb[63].mxu0  ;;  %v1378_v52 = vpop.f32.mrb[63].mxu1  ;;  %v1772_v57 = vsel %vm1516_vm10, %v3498_v38, %v1644_v44 }
 0x1b2   : > { %vm1514_vm13 = vcmp.gt.f32.partialorder %v1375_v43, 0.0  ;;  %vm1517_vm14 = vcmp.gt.f32.partialorder %v3499_v48, 0.0  ;;  %v1645_v53 = vmul.f32 0.2, %v3499_v48  ;;  %vm1451_vm15 = vcmp.gt.f32.partialorder %v1122_v51, 0.0 }
 0x1b3   : > { %v1709_v54 = vsel %vm1453_vm12, %v3435_v47, %v1581_v50  ;;  %v1579_v55 = vmul.f32 0.2, %v1122_v51  ;;  %vm1515_vm0 = vcmp.gt.f32.partialorder %v1378_v52, 0.0  ;;  %v1643_v56 = vmul.f32 0.2, %v1378_v52 }
 0x1b4   : > { %v1706_v58 = vsel %vm1450_vm11, %v1119_v42, %v1578_v45  ;;  %v3074_v59 = vpack.c.bf16 %v1709_v54, %v1708_v49  ;;  %v1773_v60 = vsel %vm1517_vm14, %v3499_v48, %v1645_v53  ;;  %v1770_v61 = vsel %vm1514_vm13, %v1375_v43, %v1642_v46 }
 0x1b5   : > { %v3234_v62 = vpack.c.bf16 %v1773_v60, %v1772_v57  ;;  %v1707_v63 = vsel %vm1451_vm15, %v1122_v51, %v1579_v55  ;;  %v1771_v0 = vsel %vm1515_vm0, %v1378_v52, %v1643_v56 }
 0x1b6   : > { %3266 = vst [vmem:[%s4077_s15 + $0xf8] sm:$0xff] %v3074_v59   ;;  %v3069_v1 = vpack.c.bf16 %v1707_v63, %v1706_v58  ;;  %v3229_v2 = vpack.c.bf16 %v1771_v0, %v1770_v61 }
 0x1b7   : > { %3298 = vst [vmem:[%s4077_s15 + $0x1f8] sm:$0xff] %v3234_v62  }
 0x1b8   : > { %3265 = vst [vmem:[%s4077_s15 + $0xf0] sm:$0xff] %v3069_v1   ;;  %3297 = vst [vmem:[%s4077_s15 + $0x1f0] sm:$0xff] %v3229_v2  }
 0x1b9   : > { %3705 = shalt.err (!%p3702_p7)
}
 0x1ba   : > { %s3706_s20 = scalar_lea.hbm %s4161_s22, 8192  ;;  %s3710_s25 = scalar_lea.hbm %s4213_s2, 16384 }
 0x1bb   : > { %p3707_p9 = scmp.ne.s32.totalorder %s4161_s22, %s3706_s20  ;;  %p3711_p5 = scmp.lt.u32.totalorder %s4161_s22, %s4213_s2 }
 0x1bc   : > { %p3712_p11 = scmp.lt.u32.totalorder %s3710_s25, %s3706_s20  ;;  %p3714_p4 = scmp.lt.u32.totalorder %s3706_s20, %s4161_s22 }
 0x1bd   : > { %p3708_p1 = pnand %p3707_p9, %p3880_p12 }
 0x1be   : > { %p3713_p2 = por %p3712_p11, %p3711_p5 }
 0x1bf   : > { %p3709_p0 = pneg %p3708_p1 }
 0x1c0   : > { %p3715_p6 = por %p3714_p4, %p3713_p2 }
 0x1c2   : > { %p3716_p8 = pnand %p3715_p6, %p3709_p0 }
 0x1c4   : > { %3719 = shalt.err (!%p3716_p8)
}
 0x1c5   : > { %s3769_s30 = smov 64   ;;  %s3770_s23 = smov 4  }
 0x1c6   : > { %3512 = dma.vmem_to_hbm [thread:$0]  (%p3880_p12), %s4163_s4, 8192, %s4161_s22, %s2415_s28, %s3769_s30, %s3769_s30, %s3770_s23  }
 0x1c7 PF: > { %s2443_s15 = sand.u32 1, %s3750_s9   ;;  %p4228_p10 = scmp.ne.s32.totalorder %s4218_s16, 0 }
 0x1c8   : > { %p4229_p13 = scmp.ge.s32.totalorder %s3762_s12, 2  ;;  %s2444_s17 = scalar_lea.sflag [#allocation4], %s2443_s15 }
 0x1ca   : > { %p3523_p3 = pnand %p4229_p13, %p4228_p10 }
 0x1cc   : > { %3745 = dma.done.wait (!%p3523_p3), %s2444_s17, 8192  }
 0x1cd   : > { %3747 = vsyncadd (!%p3523_p3), %s2444_s17, 4294959104  ;;  %p16_p7 = scmp.ge.s32.totalorder %s3842_s21, 4   ;;  %s4230_s9 = smov %s3754_s10 }
 0x1ce   : > { %s4231_s10 = smov %s3758_s11  ;;  %s4232_s11 = smov %s3876_s8 }
 0x1cf   : > { %s4233_s12 = smov %s3842_s21  ;;  %18 = sbr.rel (!%p16_p7) target bundleno = 6 (0x6), region = 77 }
 0x1d6   :  { %2449 = vsyncpa [#allocation3], 1 }
 0x1d7   :  { %2451 = vsyncpa [#allocation3 + $0x1], 1 }
 0x1d8   :  { %2452 = vsyncpa [#allocation6], 1 }
 0x1d9   :  { %2453 = vsyncpa [#allocation4], 1 }
 0x1da   :  { %2455 = vsyncpa [#allocation4 + $0x1], 1 }

// kernel: discriminator_forward.6
= control target key start
LH: loop header
LB: loop body
LE: loop exit
PB: predicated region body
PF: predicated region fallthrough
CT: control target
= control target key end

     0   :  { %10 = vsyncpa [#allocation3], 0  ;;  %s2571_s0 = inlined_call_operand.hbm [shape: bf16[512,128], index: 0, kind: input, shape index: {}]   ;;  %s2572_s1 = inlined_call_operand.hbm [shape: bf16[128,128], index: 1, kind: input, shape index: {}]   ;;  %s2573_s2 = inlined_call_operand.hbm [shape: bf16[512,128], index: 2, kind: output, shape index: {0}]   ;;  %s2574_s3 = inlined_call_operand.hbm [shape: f32[1,1,128], index: 3, kind: output, shape index: {1}]   ;;  %s2575_s4 = inlined_call_operand.hbm [shape: f32[1,1,128], index: 4, kind: output, shape index: {2}]  }
   0x1   :  { %11 = vsyncpa [#allocation6], 0 }
   0x2   :  { %12 = vsyncpa [#allocation4], 0 }
   0x3   :  { %13 = vsyncpa [#allocation9], 0  ;;  %s2270_s15 = smov [#allocation2]   ;;  %s2152_s19 = scalar_lea.hbm %s2571_s0, 4096 }
   0x4   :  { %s19_s16 = sshll.u32 %s2270_s15, 4  ;;  %p2153_p0 = scmp.ne.s32.totalorder %s2571_s0, %s2152_s19  ;;  %s20_s16 = int_to_ptr.vmem [resolvable:$true] %s19_s16 }
   0x5   :  { %p2156_p1 = scmp.lt.u32.totalorder %s2152_s19, %s2571_s0 }
   0x7   :  { %p2158_p2 = pnand %p2156_p1, %p2153_p0 }
   0x9   :  { %2161 = shalt.err (!%p2158_p2)
}
   0xa   :  { %s2162_s24 = scalar_lea.vmem %s20_s16, 4096  ;;  %p2167_p4 = scmp.lt.s32.totalorder %s20_s16, %s20_s16 }
   0xb   :  { %p2163_p3 = scmp.ne.s32.totalorder %s20_s16, %s2162_s24  ;;  %p2168_p5 = scmp.lt.s32.totalorder %s2162_s24, %s2162_s24 }
   0xd   :  { %p2169_p6 = por %p2168_p5, %p2167_p4 }
   0xf   :  { %p2170_p7 = pnand %p2169_p6, %p2163_p3 }
  0x11   :  { %2173 = shalt.err (!%p2170_p7)
}
  0x12   :  { %s2271_s25 = smov 64   ;;  %s2272_s26 = smov 4  }
  0x13   :  { %25 = dma.hbm_to_vmem [thread:$0]  %s2571_s0, 4096, %s20_s16, [#allocation3], %s2271_s25, %s2271_s25, %s2272_s26  }
  0x14   :  { %s2273_s29 = smov [#allocation5]   ;;  %s2174_s7 = scalar_lea.hbm %s2572_s1, 1024 }
  0x15   :  { %s31_s30 = sshll.u32 %s2273_s29, 4  ;;  %p2175_p8 = scmp.ne.s32.totalorder %s2572_s1, %s2174_s7  ;;  %s32_s30 = int_to_ptr.vmem [resolvable:$true] %s31_s30 }
  0x16   :  { %p2178_p9 = scmp.lt.u32.totalorder %s2174_s7, %s2572_s1 }
  0x18   :  { %p2180_p10 = pnand %p2178_p9, %p2175_p8 }
  0x1a   :  { %2183 = shalt.err (!%p2180_p10)
}
  0x1b   :  { %s2184_s12 = scalar_lea.vmem %s32_s30, 1024  ;;  %p2189_p12 = scmp.lt.s32.totalorder %s32_s30, %s32_s30 }
  0x1c   :  { %p2185_p11 = scmp.ne.s32.totalorder %s32_s30, %s2184_s12  ;;  %p2190_p13 = scmp.lt.s32.totalorder %s2184_s12, %s2184_s12 }
  0x1e   :  { %p2191_p0 = por %p2190_p13, %p2189_p12 }
  0x20   :  { %p2192_p1 = pnand %p2191_p0, %p2185_p11 }
  0x22   :  { %2195 = shalt.err (!%p2192_p1)
}
  0x23   :  { %37 = dma.hbm_to_vmem [thread:$0]  %s2572_s1, 1024, %s32_s30, [#allocation6], %s2271_s25, %s2271_s25, %s2272_s26  }
  0x24   :  { %2262 = dma.done.wait [#allocation3], 4096  }
  0x25   :  { %2263 = vsyncadd [#allocation3], 4294963200 }
  0x26   :  { %2264 = dma.done.wait [#allocation6], 1024  }
  0x27   :  { %2265 = vsyncadd [#allocation6], 4294966272  ;;  %v2112_v0 = vld [vmem:[#allocation5] sm:$0xff]   ;;  %v2113_v1 = vld [vmem:[#allocation5 + $0x8] sm:$0xff]   ;;  %s2274_s1 = smov [#allocation7]  }
  0x28   :  { %2009 = vmatprep.subr.bf16.mxu0 %v2112_v0  ;;  %2089 = vmatprep.subr.bf16.mxu1 %v2112_v0  ;;  %v2114_v2 = vld [vmem:[#allocation5 + $0x10] sm:$0xff]   ;;  %v2115_v3 = vld [vmem:[#allocation5 + $0x18] sm:$0xff]   ;;  %v2120_v4 = vld [vmem:[#allocation2] sm:$0xff]   ;;  %s1570_s14 = sshll.u32 %s2274_s1, 4  ;;  %s1571_s14 = int_to_ptr.vmem [resolvable:$true] %s1570_s14 }
  0x29   :  { %2010 = vmatpush3.bf16.msra.mxu0 %v2112_v0  ;;  %2097 = vmatpush3.bf16.msra.mxu1 %v2112_v0  ;;  %v2116_v5 = vld [vmem:[#allocation5 + $0x20] sm:$0xff]   ;;  %v2117_v6 = vld [vmem:[#allocation5 + $0x28] sm:$0xff]   ;;  %v2118_v7 = vld [vmem:[#allocation5 + $0x30] sm:$0xff]   ;;  %s2196_s15 = scalar_lea.vmem %s1571_s14, 4096  ;;  %p2201_p3 = scmp.lt.s32.totalorder %s1571_s14, %s1571_s14 }
  0x2a   :  { %2011 = vmatprep.subr.bf16.mxu0 %v2113_v1  ;;  %2090 = vmatprep.subr.bf16.mxu1 %v2113_v1  ;;  %v2119_v8 = vld [vmem:[#allocation5 + $0x38] sm:$0xff]   ;;  %v2136_v9 = vld [vmem:[#allocation2 + $0x80] sm:$0xff]   ;;  %v2121_v10 = vld [vmem:[#allocation2 + $0x8] sm:$0xff]   ;;  %p2197_p2 = scmp.ne.s32.totalorder %s1571_s14, %s2196_s15  ;;  %p2202_p4 = scmp.lt.s32.totalorder %s2196_s15, %s2196_s15 }
  0x2b   :  { %2025 = vmatprep.mubr.bf16.mxu0 %v2120_v4  ;;  %2057 = vmatprep.mubr.bf16.mxu1 %v2136_v9  ;;  %v2122_v11 = vld [vmem:[#allocation2 + $0x10] sm:$0xff]   ;;  %v2137_v12 = vld [vmem:[#allocation2 + $0x88] sm:$0xff]   ;;  %v2123_v14 = vld [vmem:[#allocation2 + $0x18] sm:$0xff]  }
  0x2c   :  { %v2138_v13 = vld [vmem:[#allocation2 + $0x90] sm:$0xff]   ;;  %v2124_v15 = vld [vmem:[#allocation2 + $0x20] sm:$0xff]   ;;  %v2139_v16 = vld [vmem:[#allocation2 + $0x98] sm:$0xff]   ;;  %p2203_p5 = por %p2202_p4, %p2201_p3 }
  0x2d   :  { %2012 = vmatpush3.bf16.msra.mxu0 %v2113_v1  ;;  %2098 = vmatpush3.bf16.msra.mxu1 %v2113_v1  ;;  %v2140_v17 = vld [vmem:[#allocation2 + $0xa0] sm:$0xff]   ;;  %v2125_v18 = vld [vmem:[#allocation2 + $0x28] sm:$0xff]   ;;  %v2126_v20 = vld [vmem:[#allocation2 + $0x30] sm:$0xff]  }
  0x2e   :  { %2013 = vmatprep.subr.bf16.mxu0 %v2114_v2  ;;  %2091 = vmatprep.subr.bf16.mxu1 %v2114_v2  ;;  %v2141_v19 = vld [vmem:[#allocation2 + $0xa8] sm:$0xff]   ;;  %v2142_v21 = vld [vmem:[#allocation2 + $0xb0] sm:$0xff]   ;;  %v2127_v22 = vld [vmem:[#allocation2 + $0x38] sm:$0xff]   ;;  %p2204_p6 = pnand %p2203_p5, %p2197_p2 }
  0x2f   :  { %v2143_v23 = vld [vmem:[#allocation2 + $0xb8] sm:$0xff]   ;;  %v2128_v24 = vld [vmem:[#allocation2 + $0x40] sm:$0xff]   ;;  %v2129_v26 = vld [vmem:[#allocation2 + $0x48] sm:$0xff]  }
  0x30   :  { %v2144_v25 = vld [vmem:[#allocation2 + $0xc0] sm:$0xff]   ;;  %v2145_v27 = vld [vmem:[#allocation2 + $0xc8] sm:$0xff]   ;;  %v2130_v28 = vld [vmem:[#allocation2 + $0x50] sm:$0xff]  }
  0x31   :  { %2014 = vmatpush3.bf16.msra.mxu0 %v2114_v2  ;;  %2099 = vmatpush3.bf16.msra.mxu1 %v2114_v2  ;;  %v2146_v29 = vld [vmem:[#allocation2 + $0xd0] sm:$0xff]   ;;  %v2131_v30 = vld [vmem:[#allocation2 + $0x58] sm:$0xff]   ;;  %v2132_v32 = vld [vmem:[#allocation2 + $0x60] sm:$0xff]  }
  0x32   :  { %2015 = vmatprep.subr.bf16.mxu0 %v2115_v3  ;;  %2092 = vmatprep.subr.bf16.mxu1 %v2115_v3  ;;  %v2147_v31 = vld [vmem:[#allocation2 + $0xd8] sm:$0xff]   ;;  %v2148_v33 = vld [vmem:[#allocation2 + $0xe0] sm:$0xff]   ;;  %v2133_v34 = vld [vmem:[#allocation2 + $0x68] sm:$0xff]  }
  0x33   :  { %v2149_v35 = vld [vmem:[#allocation2 + $0xe8] sm:$0xff]   ;;  %v2134_v36 = vld [vmem:[#allocation2 + $0x70] sm:$0xff]   ;;  %v2135_v38 = vld [vmem:[#allocation2 + $0x78] sm:$0xff]  }
  0x34   :  { %v2150_v37 = vld [vmem:[#allocation2 + $0xf0] sm:$0xff]   ;;  %v2151_v39 = vld [vmem:[#allocation2 + $0xf8] sm:$0xff]  }
  0x35   :  { %2016 = vmatpush3.bf16.msra.mxu0 %v2115_v3  ;;  %2100 = vmatpush3.bf16.msra.mxu1 %v2115_v3 }
  0x36   :  { %2017 = vmatprep.subr.bf16.mxu0 %v2116_v5  ;;  %2093 = vmatprep.subr.bf16.mxu1 %v2116_v5 }
  0x39   :  { %2018 = vmatpush3.bf16.msra.mxu0 %v2116_v5  ;;  %2101 = vmatpush3.bf16.msra.mxu1 %v2116_v5 }
  0x3a   :  { %2019 = vmatprep.subr.bf16.mxu0 %v2117_v6  ;;  %2094 = vmatprep.subr.bf16.mxu1 %v2117_v6 }
  0x3d   :  { %2020 = vmatpush3.bf16.msra.mxu0 %v2117_v6  ;;  %2102 = vmatpush3.bf16.msra.mxu1 %v2117_v6 }
  0x3e   :  { %2021 = vmatprep.subr.bf16.mxu0 %v2118_v7  ;;  %2095 = vmatprep.subr.bf16.mxu1 %v2118_v7 }
  0x41   :  { %2022 = vmatpush3.bf16.msra.mxu0 %v2118_v7  ;;  %2103 = vmatpush3.bf16.msra.mxu1 %v2118_v7 }
  0x42   :  { %2023 = vmatprep.subr.bf16.mxu0 %v2119_v8  ;;  %2096 = vmatprep.subr.bf16.mxu1 %v2119_v8 }
  0x45   :  { %2024 = vmatpush3.bf16.msra.mxu0 %v2119_v8  ;;  %2104 = vmatpush3.bf16.msra.mxu1 %v2119_v8 }
  0x48   :  { %2026 = vmatmul.mubr.bf16.vlgmr.msra.gmra.mrb[0].mxu0 %v2121_v10  ;;  %2058 = vmatmul.mubr.bf16.vlgmr.msra.gmra.mrb[0].mxu1 %v2137_v12 }
  0x49   :  { %2029 = vmatprep.mubr.bf16.mxu0 %v2122_v11  ;;  %2061 = vmatprep.mubr.bf16.mxu1 %v2138_v13 }
  0x50   :  { %2030 = vmatmul.mubr.bf16.gmra.mrb[4].mxu0 %v2123_v14  ;;  %2062 = vmatmul.mubr.bf16.gmra.mrb[4].mxu1 %v2139_v16 }
  0x51   :  { %2033 = vmatprep.mubr.bf16.mxu0 %v2124_v15  ;;  %2065 = vmatprep.mubr.bf16.mxu1 %v2140_v17 }
  0x58   :  { %2034 = vmatmul.mubr.bf16.gmra.mrb[8].mxu0 %v2125_v18  ;;  %2066 = vmatmul.mubr.bf16.gmra.mrb[8].mxu1 %v2141_v19 }
  0x59   :  { %2037 = vmatprep.mubr.bf16.mxu0 %v2126_v20  ;;  %2069 = vmatprep.mubr.bf16.mxu1 %v2142_v21 }
  0x60   :  { %2038 = vmatmul.mubr.bf16.gmra.mrb[12].mxu0 %v2127_v22  ;;  %2070 = vmatmul.mubr.bf16.gmra.mrb[12].mxu1 %v2143_v23 }
  0x61   :  { %2041 = vmatprep.mubr.bf16.mxu0 %v2128_v24  ;;  %2073 = vmatprep.mubr.bf16.mxu1 %v2144_v25 }
  0x68   :  { %2042 = vmatmul.mubr.bf16.gmra.mrb[16].mxu0 %v2129_v26  ;;  %2074 = vmatmul.mubr.bf16.gmra.mrb[16].mxu1 %v2145_v27 }
  0x69   :  { %2045 = vmatprep.mubr.bf16.mxu0 %v2130_v28  ;;  %2077 = vmatprep.mubr.bf16.mxu1 %v2146_v29 }
  0x70   :  { %2046 = vmatmul.mubr.bf16.gmra.mrb[20].mxu0 %v2131_v30  ;;  %2078 = vmatmul.mubr.bf16.gmra.mrb[20].mxu1 %v2147_v31 }
  0x71   :  { %2049 = vmatprep.mubr.bf16.mxu0 %v2132_v32  ;;  %2081 = vmatprep.mubr.bf16.mxu1 %v2148_v33 }
  0x78   :  { %2050 = vmatmul.mubr.bf16.gmra.mrb[24].mxu0 %v2133_v34  ;;  %2082 = vmatmul.mubr.bf16.gmra.mrb[24].mxu1 %v2149_v35 }
  0x79   :  { %2053 = vmatprep.mubr.bf16.mxu0 %v2134_v36  ;;  %2085 = vmatprep.mubr.bf16.mxu1 %v2150_v37 }
  0x80   :  { %2054 = vmatmul.mubr.bf16.gmra.mrb[28].mxu0 %v2135_v38  ;;  %2086 = vmatmul.mubr.bf16.gmra.mrb[28].mxu1 %v2151_v39 }
 0x11b   :  { %v2027_v40 = vpop.f32.mrb[0].mxu0  ;;  %v2332_v41 = vpop.f32.mrb[0].mxu1 }
 0x11c   :  { %v399_v42 = vpop.f32.mrb[1].mxu0  ;;  %v2334_v43 = vpop.f32.mrb[1].mxu1  ;;  %v1432_v55 = vmul.f32 %v2027_v40, %v2027_v40 }
 0x11d   :  { %v2028_v44 = vpop.f32.mrb[2].mxu0  ;;  %v2336_v45 = vpop.f32.mrb[2].mxu1  ;;  %v1430_v46 = vmul.f32 %v399_v42, %v399_v42 }
 0x11e   :  { %v1786_v47 = vpack.c.bf16 %v2028_v44, %v2027_v40  ;;  %v402_v48 = vpop.f32.mrb[3].mxu0  ;;  %v1866_v49 = vpack.c.bf16 %v2336_v45, %v2332_v41  ;;  %v2340_v50 = vpop.f32.mrb[3].mxu1  ;;  %v1433_v58 = vmul.f32 %v2028_v44, %v2028_v44 }
 0x11f   :  { %v1781_v51 = vpack.c.bf16 %v402_v48, %v399_v42  ;;  %v1361_v52 = vadd.f32 %v402_v48, %v399_v42  ;;  %v1431_v53 = vmul.f32 %v402_v48, %v402_v48  ;;  %v1861_v54 = vpack.c.bf16 %v2340_v50, %v2334_v43 }
 0x120   :  { %1938 = vst [vmem:[#allocation7 + $0x8] sm:$0xff] %v1786_v47   ;;  %1954 = vst [vmem:[#allocation7 + $0x88] sm:$0xff] %v1866_v49  }
 0x121   :  { %1782 = vst [vmem:[#allocation7] sm:$0xff] %v1781_v51   ;;  %v1362_v56 = vadd.f32 %v2027_v40, %v1361_v52  ;;  %v1494_v57 = vadd.f32 %v1431_v53, %v1430_v46  ;;  %1953 = vst [vmem:[#allocation7 + $0x80] sm:$0xff] %v1861_v54  }
 0x123   :  { %v1495_v59 = vadd.f32 %v1494_v57, %v1432_v55  ;;  %v2031_v60 = vpop.f32.mrb[4].mxu0  ;;  %v1363_v61 = vadd.f32 %v2028_v44, %v1362_v56  ;;  %v2344_v62 = vpop.f32.mrb[4].mxu1 }
 0x124   :  { %v415_v63 = vpop.f32.mrb[5].mxu0  ;;  %v2346_v0 = vpop.f32.mrb[5].mxu1  ;;  %v1436_v15 = vmul.f32 %v2031_v60, %v2031_v60 }
 0x125   :  { %v1364_v1 = vadd.f32 %v1363_v61, %v415_v63  ;;  %v1434_v2 = vmul.f32 %v415_v63, %v415_v63  ;;  %v1496_v3 = vadd.f32 %v1495_v59, %v1433_v58  ;;  %v2032_v4 = vpop.f32.mrb[6].mxu0  ;;  %v2348_v5 = vpop.f32.mrb[6].mxu1 }
 0x126   :  { %v1796_v6 = vpack.c.bf16 %v2032_v4, %v2031_v60  ;;  %v418_v7 = vpop.f32.mrb[7].mxu0  ;;  %v1876_v8 = vpack.c.bf16 %v2348_v5, %v2344_v62  ;;  %v2352_v9 = vpop.f32.mrb[7].mxu1  ;;  %v1437_v18 = vmul.f32 %v2032_v4, %v2032_v4 }
 0x127   :  { %v1497_v10 = vadd.f32 %v1496_v3, %v1434_v2  ;;  %v1791_v11 = vpack.c.bf16 %v418_v7, %v415_v63  ;;  %v1365_v12 = vadd.f32 %v1364_v1, %v418_v7  ;;  %v1435_v13 = vmul.f32 %v418_v7, %v418_v7 }
 0x128   :  { %1940 = vst [vmem:[#allocation7 + $0x18] sm:$0xff] %v1796_v6   ;;  %1956 = vst [vmem:[#allocation7 + $0x98] sm:$0xff] %v1876_v8   ;;  %v1871_v14 = vpack.c.bf16 %v2352_v9, %v2346_v0 }
 0x129   :  { %1939 = vst [vmem:[#allocation7 + $0x10] sm:$0xff] %v1791_v11   ;;  %v1366_v16 = vadd.f32 %v2031_v60, %v1365_v12  ;;  %v1498_v17 = vadd.f32 %v1497_v10, %v1435_v13 }
 0x12a   :  { %1955 = vst [vmem:[#allocation7 + $0x90] sm:$0xff] %v1871_v14  }
 0x12b   :  { %v1499_v19 = vadd.f32 %v1498_v17, %v1436_v15  ;;  %v2035_v20 = vpop.f32.mrb[8].mxu0  ;;  %v1367_v21 = vadd.f32 %v2032_v4, %v1366_v16  ;;  %v2356_v22 = vpop.f32.mrb[8].mxu1 }
 0x12c   :  { %v431_v23 = vpop.f32.mrb[9].mxu0  ;;  %v2358_v24 = vpop.f32.mrb[9].mxu1  ;;  %v1440_v39 = vmul.f32 %v2035_v20, %v2035_v20 }
 0x12d   :  { %v1368_v25 = vadd.f32 %v1367_v21, %v431_v23  ;;  %v1438_v26 = vmul.f32 %v431_v23, %v431_v23  ;;  %v1500_v27 = vadd.f32 %v1499_v19, %v1437_v18  ;;  %v2036_v28 = vpop.f32.mrb[10].mxu0  ;;  %v2360_v29 = vpop.f32.mrb[10].mxu1 }
 0x12e   :  { %v1806_v30 = vpack.c.bf16 %v2036_v28, %v2035_v20  ;;  %v434_v31 = vpop.f32.mrb[11].mxu0  ;;  %v1886_v32 = vpack.c.bf16 %v2360_v29, %v2356_v22  ;;  %v2364_v33 = vpop.f32.mrb[11].mxu1  ;;  %v1441_v44 = vmul.f32 %v2036_v28, %v2036_v28 }
 0x12f   :  { %v1501_v34 = vadd.f32 %v1500_v27, %v1438_v26  ;;  %v1801_v35 = vpack.c.bf16 %v434_v31, %v431_v23  ;;  %v1369_v36 = vadd.f32 %v1368_v25, %v434_v31  ;;  %v1439_v37 = vmul.f32 %v434_v31, %v434_v31 }
 0x130   :  { %1942 = vst [vmem:[#allocation7 + $0x28] sm:$0xff] %v1806_v30   ;;  %1958 = vst [vmem:[#allocation7 + $0xa8] sm:$0xff] %v1886_v32   ;;  %v1881_v38 = vpack.c.bf16 %v2364_v33, %v2358_v24 }
 0x131   :  { %1941 = vst [vmem:[#allocation7 + $0x20] sm:$0xff] %v1801_v35   ;;  %v1370_v40 = vadd.f32 %v2035_v20, %v1369_v36  ;;  %v1502_v42 = vadd.f32 %v1501_v34, %v1439_v37 }
 0x132   :  { %1957 = vst [vmem:[#allocation7 + $0xa0] sm:$0xff] %v1881_v38  }
 0x133   :  { %v1503_v46 = vadd.f32 %v1502_v42, %v1440_v39  ;;  %v2039_v47 = vpop.f32.mrb[12].mxu0  ;;  %v1371_v48 = vadd.f32 %v2036_v28, %v1370_v40  ;;  %v2368_v49 = vpop.f32.mrb[12].mxu1 }
 0x134   :  { %v447_v51 = vpop.f32.mrb[13].mxu0  ;;  %v2370_v52 = vpop.f32.mrb[13].mxu1  ;;  %v1444_v6 = vmul.f32 %v2039_v47, %v2039_v47 }
 0x135   :  { %v1372_v53 = vadd.f32 %v1371_v48, %v447_v51  ;;  %v1442_v54 = vmul.f32 %v447_v51, %v447_v51  ;;  %v1504_v55 = vadd.f32 %v1503_v46, %v1441_v44  ;;  %v2040_v56 = vpop.f32.mrb[14].mxu0  ;;  %v2372_v57 = vpop.f32.mrb[14].mxu1 }
 0x136   :  { %v1816_v58 = vpack.c.bf16 %v2040_v56, %v2039_v47  ;;  %v450_v59 = vpop.f32.mrb[15].mxu0  ;;  %v1896_v60 = vpack.c.bf16 %v2372_v57, %v2368_v49  ;;  %v2376_v61 = vpop.f32.mrb[15].mxu1  ;;  %v1445_v10 = vmul.f32 %v2040_v56, %v2040_v56 }
 0x137   :  { %v1505_v63 = vadd.f32 %v1504_v55, %v1442_v54  ;;  %v1811_v1 = vpack.c.bf16 %v450_v59, %v447_v51  ;;  %v1373_v2 = vadd.f32 %v1372_v53, %v450_v59  ;;  %v1443_v3 = vmul.f32 %v450_v59, %v450_v59 }
 0x138   :  { %1944 = vst [vmem:[#allocation7 + $0x38] sm:$0xff] %v1816_v58   ;;  %1960 = vst [vmem:[#allocation7 + $0xb8] sm:$0xff] %v1896_v60   ;;  %v1891_v4 = vpack.c.bf16 %v2376_v61, %v2370_v52 }
 0x139   :  { %1943 = vst [vmem:[#allocation7 + $0x30] sm:$0xff] %v1811_v1   ;;  %v1374_v7 = vadd.f32 %v2039_v47, %v1373_v2  ;;  %v1506_v8 = vadd.f32 %v1505_v63, %v1443_v3 }
 0x13a   :  { %1959 = vst [vmem:[#allocation7 + $0xb0] sm:$0xff] %v1891_v4  }
 0x13b   :  { %v1507_v11 = vadd.f32 %v1506_v8, %v1444_v6  ;;  %v2043_v12 = vpop.f32.mrb[16].mxu0  ;;  %v1375_v13 = vadd.f32 %v2040_v56, %v1374_v7  ;;  %v2380_v14 = vpop.f32.mrb[16].mxu1 }
 0x13c   :  { %v463_v15 = vpop.f32.mrb[17].mxu0  ;;  %v2382_v16 = vpop.f32.mrb[17].mxu1  ;;  %v1448_v35 = vmul.f32 %v2043_v12, %v2043_v12 }
 0x13d   :  { %v1376_v17 = vadd.f32 %v1375_v13, %v463_v15  ;;  %v1446_v18 = vmul.f32 %v463_v15, %v463_v15  ;;  %v1508_v19 = vadd.f32 %v1507_v11, %v1445_v10  ;;  %v2044_v20 = vpop.f32.mrb[18].mxu0  ;;  %v2384_v21 = vpop.f32.mrb[18].mxu1 }
 0x13e   :  { %v1826_v23 = vpack.c.bf16 %v2044_v20, %v2043_v12  ;;  %v466_v25 = vpop.f32.mrb[19].mxu0  ;;  %v1906_v26 = vpack.c.bf16 %v2384_v21, %v2380_v14  ;;  %v2388_v27 = vpop.f32.mrb[19].mxu1  ;;  %v1449_v38 = vmul.f32 %v2044_v20, %v2044_v20 }
 0x13f   :  { %v1509_v28 = vadd.f32 %v1508_v19, %v1446_v18  ;;  %v1821_v30 = vpack.c.bf16 %v466_v25, %v463_v15  ;;  %v1377_v31 = vadd.f32 %v1376_v17, %v466_v25  ;;  %v1447_v32 = vmul.f32 %v466_v25, %v466_v25 }
 0x140   :  { %1946 = vst [vmem:[#allocation7 + $0x48] sm:$0xff] %v1826_v23   ;;  %1962 = vst [vmem:[#allocation7 + $0xc8] sm:$0xff] %v1906_v26   ;;  %v1901_v34 = vpack.c.bf16 %v2388_v27, %v2382_v16 }
 0x141   :  { %1945 = vst [vmem:[#allocation7 + $0x40] sm:$0xff] %v1821_v30   ;;  %v1378_v36 = vadd.f32 %v2043_v12, %v1377_v31  ;;  %v1510_v37 = vadd.f32 %v1509_v28, %v1447_v32 }
 0x142   :  { %1961 = vst [vmem:[#allocation7 + $0xc0] sm:$0xff] %v1901_v34  }
 0x143   :  { %v1511_v39 = vadd.f32 %v1510_v37, %v1448_v35  ;;  %v2047_v40 = vpop.f32.mrb[20].mxu0  ;;  %v1379_v42 = vadd.f32 %v2044_v20, %v1378_v36  ;;  %v2392_v44 = vpop.f32.mrb[20].mxu1 }
 0x144   :  { %v479_v46 = vpop.f32.mrb[21].mxu0  ;;  %v2394_v47 = vpop.f32.mrb[21].mxu1  ;;  %v1452_v6 = vmul.f32 %v2047_v40, %v2047_v40 }
 0x145   :  { %v1380_v48 = vadd.f32 %v1379_v42, %v479_v46  ;;  %v1450_v51 = vmul.f32 %v479_v46, %v479_v46  ;;  %v1512_v53 = vadd.f32 %v1511_v39, %v1449_v38  ;;  %v2048_v54 = vpop.f32.mrb[22].mxu0  ;;  %v2396_v55 = vpop.f32.mrb[22].mxu1 }
 0x146   :  { %v1836_v56 = vpack.c.bf16 %v2048_v54, %v2047_v40  ;;  %v482_v58 = vpop.f32.mrb[23].mxu0  ;;  %v1916_v59 = vpack.c.bf16 %v2396_v55, %v2392_v44  ;;  %v2400_v60 = vpop.f32.mrb[23].mxu1  ;;  %v1453_v10 = vmul.f32 %v2048_v54, %v2048_v54 }
 0x147   :  { %v1513_v63 = vadd.f32 %v1512_v53, %v1450_v51  ;;  %v1831_v1 = vpack.c.bf16 %v482_v58, %v479_v46  ;;  %v1381_v2 = vadd.f32 %v1380_v48, %v482_v58  ;;  %v1451_v3 = vmul.f32 %v482_v58, %v482_v58 }
 0x148   :  { %1948 = vst [vmem:[#allocation7 + $0x58] sm:$0xff] %v1836_v56   ;;  %1964 = vst [vmem:[#allocation7 + $0xd8] sm:$0xff] %v1916_v59   ;;  %v1911_v4 = vpack.c.bf16 %v2400_v60, %v2394_v47 }
 0x149   :  { %1947 = vst [vmem:[#allocation7 + $0x50] sm:$0xff] %v1831_v1   ;;  %v1382_v7 = vadd.f32 %v2047_v40, %v1381_v2  ;;  %v1514_v8 = vadd.f32 %v1513_v63, %v1451_v3 }
 0x14a   :  { %1963 = vst [vmem:[#allocation7 + $0xd0] sm:$0xff] %v1911_v4  }
 0x14b   :  { %v1515_v11 = vadd.f32 %v1514_v8, %v1452_v6  ;;  %v2051_v12 = vpop.f32.mrb[24].mxu0  ;;  %v1383_v13 = vadd.f32 %v2048_v54, %v1382_v7  ;;  %v2404_v15 = vpop.f32.mrb[24].mxu1 }
 0x14c   :  { %v495_v17 = vpop.f32.mrb[25].mxu0  ;;  %v2406_v18 = vpop.f32.mrb[25].mxu1  ;;  %v1456_v39 = vmul.f32 %v2051_v12, %v2051_v12 }
 0x14d   :  { %v1384_v19 = vadd.f32 %v1383_v13, %v495_v17  ;;  %v1454_v20 = vmul.f32 %v495_v17, %v495_v17  ;;  %v1516_v23 = vadd.f32 %v1515_v11, %v1453_v10  ;;  %v2052_v25 = vpop.f32.mrb[26].mxu0  ;;  %v2408_v26 = vpop.f32.mrb[26].mxu1 }
 0x14e   :  { %v1846_v28 = vpack.c.bf16 %v2052_v25, %v2051_v12  ;;  %v498_v30 = vpop.f32.mrb[27].mxu0  ;;  %v1926_v31 = vpack.c.bf16 %v2408_v26, %v2404_v15  ;;  %v2412_v32 = vpop.f32.mrb[27].mxu1  ;;  %v1457_v46 = vmul.f32 %v2052_v25, %v2052_v25 }
 0x14f   :  { %v1517_v34 = vadd.f32 %v1516_v23, %v1454_v20  ;;  %v1841_v35 = vpack.c.bf16 %v498_v30, %v495_v17  ;;  %v1385_v36 = vadd.f32 %v1384_v19, %v498_v30  ;;  %v1455_v37 = vmul.f32 %v498_v30, %v498_v30 }
 0x150   :  { %1950 = vst [vmem:[#allocation7 + $0x68] sm:$0xff] %v1846_v28   ;;  %1966 = vst [vmem:[#allocation7 + $0xe8] sm:$0xff] %v1926_v31   ;;  %v1921_v38 = vpack.c.bf16 %v2412_v32, %v2406_v18  ;;  %v1462_v31 = vmul.f32 %v2334_v43, %v2334_v43 }
 0x151   :  { %1949 = vst [vmem:[#allocation7 + $0x60] sm:$0xff] %v1841_v35   ;;  %v1386_v40 = vadd.f32 %v2051_v12, %v1385_v36  ;;  %v1518_v42 = vadd.f32 %v1517_v34, %v1455_v37 }
 0x152   :  { %1965 = vst [vmem:[#allocation7 + $0xe0] sm:$0xff] %v1921_v38  }
 0x153   :  { %v1519_v48 = vadd.f32 %v1518_v42, %v1456_v39  ;;  %v2055_v51 = vpop.f32.mrb[28].mxu0  ;;  %v1387_v53 = vadd.f32 %v2052_v25, %v1386_v40  ;;  %v2416_v54 = vpop.f32.mrb[28].mxu1 }
 0x154   :  { %v511_v56 = vpop.f32.mrb[29].mxu0  ;;  %v2418_v58 = vpop.f32.mrb[29].mxu1  ;;  %v1460_v19 = vmul.f32 %v2055_v51, %v2055_v51 }
 0x155   :  { %v1388_v59 = vadd.f32 %v1387_v53, %v511_v56  ;;  %v1458_v63 = vmul.f32 %v511_v56, %v511_v56  ;;  %v1520_v1 = vadd.f32 %v1519_v48, %v1457_v46  ;;  %v2056_v2 = vpop.f32.mrb[30].mxu0  ;;  %v2420_v3 = vpop.f32.mrb[30].mxu1 }
 0x156   :  { %v1856_v4 = vpack.c.bf16 %v2056_v2, %v2055_v51  ;;  %v514_v6 = vpop.f32.mrb[31].mxu0  ;;  %v1936_v7 = vpack.c.bf16 %v2420_v3, %v2416_v54  ;;  %v2424_v8 = vpop.f32.mrb[31].mxu1  ;;  %v1461_v25 = vmul.f32 %v2056_v2, %v2056_v2 }
 0x157   :  { %v1521_v10 = vadd.f32 %v1520_v1, %v1458_v63  ;;  %v1851_v11 = vpack.c.bf16 %v514_v6, %v511_v56  ;;  %v1389_v12 = vadd.f32 %v1388_v59, %v514_v6  ;;  %v1459_v13 = vmul.f32 %v514_v6, %v514_v6 }
 0x158   :  { %1952 = vst [vmem:[#allocation7 + $0x78] sm:$0xff] %v1856_v4   ;;  %1968 = vst [vmem:[#allocation7 + $0xf8] sm:$0xff] %v1936_v7   ;;  %v1931_v17 = vpack.c.bf16 %v2424_v8, %v2418_v58 }
 0x159   :  { %1951 = vst [vmem:[#allocation7 + $0x70] sm:$0xff] %v1851_v11   ;;  %v1390_v20 = vadd.f32 %v2055_v51, %v1389_v12  ;;  %v1522_v23 = vadd.f32 %v1521_v10, %v1459_v13 }
 0x15a   :  { %1967 = vst [vmem:[#allocation7 + $0xf0] sm:$0xff] %v1931_v17  }
 0x15b   :  { %v1523_v28 = vadd.f32 %v1522_v23, %v1460_v19  ;;  %v1391_v30 = vadd.f32 %v2056_v2, %v1390_v20 }
 0x15c   :  { %2207 = shalt.err (!%p2204_p6)
}
 0x15d   :  { %s2208_s18 = scalar_lea.hbm %s2573_s2, 4096 }
 0x15e   :  { %p2209_p7 = scmp.ne.s32.totalorder %s2573_s2, %s2208_s18  ;;  %p2212_p8 = scmp.lt.u32.totalorder %s2208_s18, %s2573_s2 }
 0x160   :  { %p2214_p9 = pnand %p2212_p8, %p2209_p7 }
 0x162   :  { %2217 = shalt.err (!%p2214_p9)
}
 0x163   :  { %1576 = dma.vmem_to_hbm [thread:$0]  %s1571_s14, 4096, %s2573_s2, [#allocation4], %s2271_s25, %s2271_s25, %s2272_s26   ;;  %v1392_v34 = vadd.f32 %v1391_v30, %v2334_v43  ;;  %v1524_v35 = vadd.f32 %v1523_v28, %v1461_v25  ;;  %v1463_v38 = vmul.f32 %v2340_v50, %v2340_v50  ;;  %v1464_v39 = vmul.f32 %v2332_v41, %v2332_v41 }
 0x164   :  { %v1465_v46 = vmul.f32 %v2336_v45, %v2336_v45  ;;  %v1466_v43 = vmul.f32 %v2346_v0, %v2346_v0  ;;  %v1467_v63 = vmul.f32 %v2352_v9, %v2352_v9  ;;  %v1471_v12 = vmul.f32 %v2364_v33, %v2364_v33  ;;  %s2275_s2 = smov [#allocation8]   ;;  %s2276_s26 = smov [#allocation10]  }
 0x165   :  { %v1525_v36 = vadd.f32 %v1524_v35, %v1462_v31  ;;  %v1393_v37 = vadd.f32 %v1392_v34, %v2340_v50  ;;  %v1475_v30 = vmul.f32 %v2376_v61, %v2376_v61  ;;  %s1583_s25 = sshll.u32 %s2275_s2, 4  ;;  %s1593_s27 = sshll.u32 %s2276_s26, 4  ;;  %s1584_s25 = int_to_ptr.vmem [resolvable:$true] %s1583_s25  ;;  %s2539_s27 = int_to_ptr.vmem [resolvable:$true] %s1593_s27 }
 0x166   :  { %s2218_s28 = scalar_lea.vmem %s1584_s25, 16  ;;  %s2222_s29 = scalar_lea.vmem %s1584_s25, 32 }
 0x167   :  { %v1394_v40 = vadd.f32 %v2332_v41, %v1393_v37  ;;  %v1526_v42 = vadd.f32 %v1525_v36, %v1463_v38  ;;  %v1468_v41 = vmul.f32 %v2344_v62, %v2344_v62  ;;  %p2219_p10 = scmp.ne.s32.totalorder %s1584_s25, %s2218_s28  ;;  %p2223_p11 = scmp.lt.s32.totalorder %s1584_s25, %s1584_s25 }
 0x168   :  { %p2224_p12 = scmp.lt.s32.totalorder %s2222_s29, %s2218_s28 }
 0x169   :  { %v1527_v48 = vadd.f32 %v1526_v42, %v1464_v39  ;;  %v1395_v51 = vadd.f32 %v2336_v45, %v1394_v40  ;;  %v1469_v45 = vmul.f32 %v2348_v5, %v2348_v5  ;;  %v1479_v40 = vmul.f32 %v2388_v27, %v2388_v27 }
 0x16a   :  { %p2225_p13 = por %p2224_p12, %p2223_p11 }
 0x16b   :  { %v1396_v53 = vadd.f32 %v1395_v51, %v2346_v0  ;;  %v1528_v56 = vadd.f32 %v1527_v48, %v1465_v46  ;;  %v1470_v0 = vmul.f32 %v2358_v24, %v2358_v24 }
 0x16c   :  { %p2226_p0 = pnand %p2225_p13, %p2219_p10 }
 0x16d   :  { %v1529_v59 = vadd.f32 %v1528_v56, %v1466_v43  ;;  %v1397_v50 = vadd.f32 %v1396_v53, %v2352_v9 }
 0x16f   :  { %v1398_v1 = vadd.f32 %v2344_v62, %v1397_v50  ;;  %v1530_v2 = vadd.f32 %v1529_v59, %v1467_v63  ;;  %v1472_v62 = vmul.f32 %v2356_v22, %v2356_v22  ;;  %v1483_v59 = vmul.f32 %v2400_v60, %v2400_v60 }
 0x171   :  { %v1531_v4 = vadd.f32 %v1530_v2, %v1468_v41  ;;  %v1399_v6 = vadd.f32 %v2348_v5, %v1398_v1  ;;  %v1473_v5 = vmul.f32 %v2360_v29, %v2360_v29 }
 0x173   :  { %v1400_v7 = vadd.f32 %v1399_v6, %v2358_v24  ;;  %v1532_v10 = vadd.f32 %v1531_v4, %v1469_v45  ;;  %v1474_v24 = vmul.f32 %v2370_v52, %v2370_v52  ;;  %v1487_v6 = vmul.f32 %v2412_v32, %v2412_v32 }
 0x175   :  { %v1533_v11 = vadd.f32 %v1532_v10, %v1470_v0  ;;  %v1401_v9 = vadd.f32 %v1400_v7, %v2364_v33 }
 0x177   :  { %v1402_v13 = vadd.f32 %v2356_v22, %v1401_v9  ;;  %v1534_v17 = vadd.f32 %v1533_v11, %v1471_v12  ;;  %v1476_v22 = vmul.f32 %v2368_v49, %v2368_v49 }
 0x179   :  { %v1535_v19 = vadd.f32 %v1534_v17, %v1472_v62  ;;  %v1403_v20 = vadd.f32 %v2360_v29, %v1402_v13  ;;  %v1477_v29 = vmul.f32 %v2372_v57, %v2372_v57  ;;  %v1491_v13 = vmul.f32 %v2424_v8, %v2424_v8 }
 0x17b   :  { %v1404_v23 = vadd.f32 %v1403_v20, %v2370_v52  ;;  %v1536_v25 = vadd.f32 %v1535_v19, %v1473_v5  ;;  %v1478_v52 = vmul.f32 %v2382_v16, %v2382_v16 }
 0x17d   :  { %v1537_v28 = vadd.f32 %v1536_v25, %v1474_v24  ;;  %v1405_v33 = vadd.f32 %v1404_v23, %v2376_v61 }
 0x17f   :  { %v1406_v31 = vadd.f32 %v2368_v49, %v1405_v33  ;;  %v1538_v34 = vadd.f32 %v1537_v28, %v1475_v30  ;;  %v1480_v49 = vmul.f32 %v2380_v14, %v2380_v14 }
 0x181   :  { %v1539_v35 = vadd.f32 %v1538_v34, %v1476_v22  ;;  %v1407_v36 = vadd.f32 %v2372_v57, %v1406_v31  ;;  %v1481_v57 = vmul.f32 %v2384_v21, %v2384_v21 }
 0x183   :  { %v1408_v37 = vadd.f32 %v1407_v36, %v2382_v16  ;;  %v1540_v38 = vadd.f32 %v1539_v35, %v1477_v29  ;;  %v1482_v16 = vmul.f32 %v2394_v47, %v2394_v47 }
 0x185   :  { %v1541_v39 = vadd.f32 %v1540_v38, %v1478_v52  ;;  %v1409_v61 = vadd.f32 %v1408_v37, %v2388_v27 }
 0x187   :  { %v1410_v42 = vadd.f32 %v2380_v14, %v1409_v61  ;;  %v1542_v46 = vadd.f32 %v1541_v39, %v1479_v40  ;;  %v1484_v14 = vmul.f32 %v2392_v44, %v2392_v44 }
 0x189   :  { %v1543_v48 = vadd.f32 %v1542_v46, %v1480_v49  ;;  %v1411_v51 = vadd.f32 %v2384_v21, %v1410_v42  ;;  %v1485_v21 = vmul.f32 %v2396_v55, %v2396_v55 }
 0x18b   :  { %v1412_v43 = vadd.f32 %v1411_v51, %v2394_v47  ;;  %v1544_v53 = vadd.f32 %v1543_v48, %v1481_v57  ;;  %v1486_v47 = vmul.f32 %v2406_v18, %v2406_v18 }
 0x18d   :  { %v1545_v56 = vadd.f32 %v1544_v53, %v1482_v16  ;;  %v1413_v27 = vadd.f32 %v1412_v43, %v2400_v60 }
 0x18f   :  { %v1414_v50 = vadd.f32 %v2392_v44, %v1413_v27  ;;  %v1546_v63 = vadd.f32 %v1545_v56, %v1483_v59  ;;  %v1488_v44 = vmul.f32 %v2404_v15, %v2404_v15 }
 0x191   :  { %v1547_v41 = vadd.f32 %v1546_v63, %v1484_v14  ;;  %v1415_v1 = vadd.f32 %v2396_v55, %v1414_v50  ;;  %v1489_v55 = vmul.f32 %v2408_v26, %v2408_v26 }
 0x193   :  { %v1416_v2 = vadd.f32 %v1415_v1, %v2406_v18  ;;  %v1548_v45 = vadd.f32 %v1547_v41, %v1485_v21  ;;  %v1490_v18 = vmul.f32 %v2418_v58, %v2418_v58 }
 0x195   :  { %v1549_v4 = vadd.f32 %v1548_v45, %v1486_v47  ;;  %v1417_v60 = vadd.f32 %v1416_v2, %v2412_v32 }
 0x197   :  { %v1418_v0 = vadd.f32 %v2404_v15, %v1417_v60  ;;  %v1550_v7 = vadd.f32 %v1549_v4, %v1487_v6  ;;  %v1492_v15 = vmul.f32 %v2416_v54, %v2416_v54 }
 0x199   :  { %v1551_v10 = vadd.f32 %v1550_v7, %v1488_v44  ;;  %v1419_v11 = vadd.f32 %v2408_v26, %v1418_v0  ;;  %v1493_v26 = vmul.f32 %v2420_v3, %v2420_v3 }
 0x19b   :  { %v1420_v9 = vadd.f32 %v1419_v11, %v2418_v58  ;;  %v1552_v12 = vadd.f32 %v1551_v10, %v1489_v55 }
 0x19d   :  { %v1553_v62 = vadd.f32 %v1552_v12, %v1490_v18  ;;  %v1421_v32 = vadd.f32 %v1420_v9, %v2424_v8 }
 0x19f   :  { %v1422_v17 = vadd.f32 %v2416_v54, %v1421_v32  ;;  %v1554_v5 = vadd.f32 %v1553_v62, %v1491_v13 }
 0x1a1   :  { %v1423_v19 = vadd.f32 %v2420_v3, %v1422_v17  ;;  %v1555_v20 = vadd.f32 %v1554_v5, %v1492_v15 }
 0x1a3   :  { %v1424_v58 = vrot.slane %v1423_v19, 4  ;;  %v1556_v24 = vadd.f32 %v1555_v20, %v1493_v26 }
 0x1a5   :  { %v1557_v23 = vrot.slane %v1556_v24, 4  ;;  %v1425_v25 = vadd.f32 %v1424_v58, %v1423_v19 }
 0x1a7   :  { %v1426_v28 = vrot.slane %v1425_v25, 2  ;;  %v1558_v33 = vadd.f32 %v1557_v23, %v1556_v24 }
 0x1a9   :  { %v1427_v30 = vadd.f32 %v1426_v28, %v1425_v25  ;;  %v1559_v8 = vrot.slane %v1558_v33, 2 }
 0x1ab   :  { %v1428_v22 = vrot.slane %v1427_v30, 1  ;;  %v1560_v31 = vadd.f32 %v1559_v8, %v1558_v33 }
 0x1ad   :  { %v1429_v54 = vadd.f32 %v1428_v22, %v1427_v30  ;;  %v1561_v34 = vrot.slane %v1560_v31, 1 }
 0x1af   :  { %1563 = vst [vmem:[#allocation8] sm:$0x1] %v1429_v54  ;;  %v1562_v3 = vadd.f32 %v1561_v34, %v1560_v31 }
 0x1b0   :  { %2229 = shalt.err (!%p2226_p0)
}
 0x1b1   :  { %s2230_s6 = scalar_lea.hbm %s2574_s3, 16 }
 0x1b2   :  { %p2231_p1 = scmp.ne.s32.totalorder %s2574_s3, %s2230_s6  ;;  %p2234_p2 = scmp.lt.u32.totalorder %s2230_s6, %s2574_s3 }
 0x1b4   :  { %p2236_p3 = pnand %p2234_p2, %p2231_p1 }
 0x1b6   :  { %2239 = shalt.err (!%p2236_p3)
}
 0x1b7   :  { %1586 = dma.vmem_to_hbm [thread:$0]  %s1584_s25, 16, %s2574_s3, [#allocation9]   ;;  %1564 = vst [vmem:[#allocation10] sm:$0x1] %v1562_v3 }
 0x1b8   :  { %s2240_s0 = scalar_lea.vmem %s2539_s27, 16  ;;  %s2244_s13 = scalar_lea.vmem %s2539_s27, 32 }
 0x1b9   :  { %p2241_p4 = scmp.ne.s32.totalorder %s2539_s27, %s2240_s0  ;;  %p2245_p5 = scmp.lt.s32.totalorder %s2539_s27, %s2539_s27 }
 0x1ba   :  { %p2246_p6 = scmp.lt.s32.totalorder %s2244_s13, %s2240_s0 }
 0x1bc   :  { %p2247_p7 = por %p2246_p6, %p2245_p5 }
 0x1be   :  { %p2248_p8 = pnand %p2247_p7, %p2241_p4 }
 0x1c0   :  { %2251 = shalt.err (!%p2248_p8)
}
 0x1c1   :  { %s2252_s15 = scalar_lea.hbm %s2575_s4, 16 }
 0x1c2   :  { %p2253_p9 = scmp.ne.s32.totalorder %s2575_s4, %s2252_s15  ;;  %p2256_p10 = scmp.lt.u32.totalorder %s2252_s15, %s2575_s4 }
 0x1c4   :  { %p2258_p11 = pnand %p2256_p10, %p2253_p9 }
 0x1c6   :  { %2261 = shalt.err (!%p2258_p11)
}
 0x1c7   :  { %1596 = dma.vmem_to_hbm [thread:$0]  %s2539_s27, 16, %s2575_s4, [#allocation9]  }
 0x1c8   :  { %2266 = dma.done.wait [#allocation4], 4096  }
 0x1c9   :  { %2267 = vsyncadd [#allocation4], 4294963200 }
 0x1ca   :  { %2268 = dma.done.wait [#allocation9], 32  }
 0x1cb   :  { %2269 = vsyncadd [#allocation9], 4294967264 }
 0x1cc   :  { %1606 = vsyncpa [#allocation3], 1 }
 0x1cd   :  { %1607 = vsyncpa [#allocation6], 1 }
 0x1ce   :  { %1608 = vsyncpa [#allocation4], 1 }
 0x1cf   :  { %1609 = vsyncpa [#allocation9], 1 }

// kernel: tile.33
= control target key start
LH: loop header
LB: loop body
LE: loop exit
PB: predicated region body
PF: predicated region fallthrough
CT: control target
= control target key end

     0   :  { %s28_s0 = inlined_call_operand.vmem [shape: f32[8], index: 0, kind: input, shape index: {}]   ;;  %s29_s1 = inlined_call_operand.vmem [shape: f32[16,8], index: 1, kind: output, shape index: {}]  }
   0x1   :  { %v4_v0 = vld [vmem:[%s28_s0] ss:$0 sm:$0xff] }
   0x2   :  { %5 = vst [vmem:[%s29_s1] sm:$0xff] %v4_v0  ;;  %8 = vst [vmem:[%s29_s1 + $0x8] sm:$0xff] %v4_v0 }

// kernel: tile.34
= control target key start
LH: loop header
LB: loop body
LE: loop exit
PB: predicated region body
PF: predicated region fallthrough
CT: control target
= control target key end

     0   :  { %s167_s10 = smov 120   ;;  %s168_s11 = smov 104   ;;  %vm4_vm0 = vcmask 64512   ;;  %s253_s0 = inlined_call_operand.vmem [shape: f32[16,8], index: 0, kind: input, shape index: {}]   ;;  %s254_s1 = inlined_call_operand.hbm [shape: f32[1,128], index: 1, kind: output, shape index: {}]  }
   0x1   :  { %v112_v0 = vld [vmem:[%s253_s0 + $0xf] sm:$0x1]   ;;  %v114_v1 = vld [vmem:[%s253_s0 + $0xd] sm:$0x1]   ;;  %v113_v2 = vld [vmem:[%s253_s0 + $0xe] sm:$0x1]  }
   0x2   :  { %8 = vrot.lane.b32.xlu0 %v112_v0, %s167_s10  ;;  %20 = vrot.lane.b32.xlu1 %v114_v1, %s168_s11  ;;  %v115_v3 = vld [vmem:[%s253_s0 + $0xc] sm:$0x1]   ;;  %s169_s16 = smov 112   ;;  %s170_s17 = smov 96   ;;  %v116_v4 = vld [vmem:[%s253_s0 + $0xb] sm:$0x1]  }
   0x3   :  { %v117_v5 = vld [vmem:[%s253_s0 + $0xa] sm:$0x1]   ;;  %v3_v6 = vld [vmem:[%s253_s0] sm:$0x1]  }
   0x6   :  { %14 = vrot.lane.b32.xlu0 %v113_v2, %s169_s16  ;;  %26 = vrot.lane.b32.xlu1 %v115_v3, %s170_s17 }
   0x7   :  { %2 = vsyncpa [#allocation1], 0  ;;  %s171_s24 = smov 88   ;;  %s172_s25 = smov 80   ;;  %5 = vst.msk [vmem:[#allocation2] sm:$0x1] %vm4_vm0, %v3_v6  }
   0x8   :  { %v118_v7 = vld [vmem:[%s253_s0 + $0x9] sm:$0x1]   ;;  %v119_v8 = vld [vmem:[%s253_s0 + $0x8] sm:$0x1]   ;;  %s173_s30 = smov 72   ;;  %s174_s2 = smov 64  }
   0x9   :  { %v120_v9 = vld [vmem:[%s253_s0 + $0x7] sm:$0x1]   ;;  %v121_v10 = vld [vmem:[%s253_s0 + $0x6] sm:$0x1]   ;;  %s175_s7 = smov 56   ;;  %s176_s8 = smov 48  }
   0xa   :  { %32 = vrot.lane.b32.xlu0 %v116_v4, %s171_s24  ;;  %38 = vrot.lane.b32.xlu1 %v117_v5, %s172_s25  ;;  %v122_v11 = vld [vmem:[%s253_s0 + $0x5] sm:$0x1]   ;;  %v123_v12 = vld [vmem:[%s253_s0 + $0x4] sm:$0x1]   ;;  %s177_s13 = smov 40   ;;  %s178_s14 = smov 32  }
   0xb   :  { %v124_v13 = vld [vmem:[%s253_s0 + $0x3] sm:$0x1]   ;;  %v125_v14 = vld [vmem:[%s253_s0 + $0x2] sm:$0x1]   ;;  %s179_s19 = smov 24   ;;  %s180_s20 = smov 16  }
   0xc   :  { %v126_v15 = vld [vmem:[%s253_s0 + $0x1] sm:$0x1]   ;;  %s181_s0 = smov 8   ;;  %vm10_vm1 = vcmask 1048512   ;;  %vm16_vm2 = vcmask 982912   ;;  %vm22_vm3 = vcmask 917312  }
   0xd   :  { %vm28_vm4 = vcmask 851712   ;;  %vm34_vm5 = vcmask 786112   ;;  %vm40_vm6 = vcmask 720512   ;;  %vm46_vm7 = vcmask 654912   ;;  %s182_s23 = smov [#allocation0]  }
   0xe   :  { %44 = vrot.lane.b32.xlu0 %v118_v7, %s173_s30  ;;  %50 = vrot.lane.b32.xlu1 %v119_v8, %s174_s2  ;;  %vm52_vm8 = vcmask 589312   ;;  %vm58_vm9 = vcmask 523712   ;;  %vm64_vm10 = vcmask 458112   ;;  %vm70_vm11 = vcmask 392512   ;;  %s106_s24 = sshll.u32 %s182_s23, 4  ;;  %s107_s24 = int_to_ptr.vmem [resolvable:$true] %s106_s24 }
   0xf   :  { %vm76_vm12 = vcmask 326912   ;;  %vm82_vm13 = vcmask 261312   ;;  %vm88_vm14 = vcmask 195712   ;;  %vm94_vm15 = vcmask 130112   ;;  %s143_s25 = scalar_lea.vmem %s107_s24, 16  ;;  %s147_s26 = scalar_lea.vmem %s107_s24, 32 }
  0x10   :  { %p144_p0 = scmp.ne.s32.totalorder %s107_s24, %s143_s25  ;;  %p148_p1 = scmp.lt.s32.totalorder %s107_s24, %s107_s24 }
  0x11   :  { %p149_p2 = scmp.lt.s32.totalorder %s147_s26, %s143_s25 }
  0x12   :  { %56 = vrot.lane.b32.xlu0 %v120_v9, %s175_s7  ;;  %62 = vrot.lane.b32.xlu1 %v121_v10, %s176_s8 }
  0x13   :  { %p150_p3 = por %p149_p2, %p148_p1 }
  0x15   :  { %p151_p4 = pnand %p150_p3, %p144_p0 }
  0x16   :  { %68 = vrot.lane.b32.xlu0 %v122_v11, %s177_s13  ;;  %74 = vrot.lane.b32.xlu1 %v123_v12, %s178_s14 }
  0x1a   :  { %80 = vrot.lane.b32.xlu0 %v124_v13, %s179_s19  ;;  %86 = vrot.lane.b32.xlu1 %v125_v14, %s180_s20 }
  0x1e   :  { %92 = vrot.lane.b32.xlu0 %v126_v15, %s181_s0 }
  0x74   :  { %v9_v16 = vpop.permute.xlu0 %8   ;;  %v21_v17 = vpop.permute.xlu1 %20  }
  0x75   :  { %11 = vst.msk [vmem:[#allocation2] sm:$0x1] %vm10_vm1, %v9_v16  }
  0x78   :  { %v15_v18 = vpop.permute.xlu0 %14   ;;  %v27_v19 = vpop.permute.xlu1 %26  }
  0x79   :  { %17 = vst.msk [vmem:[#allocation2] sm:$0x1] %vm16_vm2, %v15_v18  }
  0x7a   :  { %23 = vst.msk [vmem:[#allocation2] sm:$0x1] %vm22_vm3, %v21_v17  }
  0x7b   :  { %29 = vst.msk [vmem:[#allocation2] sm:$0x1] %vm28_vm4, %v27_v19  }
  0x7c   :  { %v33_v20 = vpop.permute.xlu0 %32   ;;  %v39_v21 = vpop.permute.xlu1 %38  }
  0x7d   :  { %35 = vst.msk [vmem:[#allocation2] sm:$0x1] %vm34_vm5, %v33_v20  }
  0x7e   :  { %41 = vst.msk [vmem:[#allocation2] sm:$0x1] %vm40_vm6, %v39_v21  }
  0x80   :  { %v45_v22 = vpop.permute.xlu0 %44   ;;  %v51_v23 = vpop.permute.xlu1 %50  }
  0x81   :  { %47 = vst.msk [vmem:[#allocation2] sm:$0x1] %vm46_vm7, %v45_v22  }
  0x82   :  { %53 = vst.msk [vmem:[#allocation2] sm:$0x1] %vm52_vm8, %v51_v23  }
  0x84   :  { %v57_v24 = vpop.permute.xlu0 %56   ;;  %v63_v25 = vpop.permute.xlu1 %62  }
  0x85   :  { %59 = vst.msk [vmem:[#allocation2] sm:$0x1] %vm58_vm9, %v57_v24  }
  0x86   :  { %65 = vst.msk [vmem:[#allocation2] sm:$0x1] %vm64_vm10, %v63_v25  }
  0x88   :  { %v69_v26 = vpop.permute.xlu0 %68   ;;  %v75_v27 = vpop.permute.xlu1 %74  }
  0x89   :  { %71 = vst.msk [vmem:[#allocation2] sm:$0x1] %vm70_vm11, %v69_v26  }
  0x8a   :  { %77 = vst.msk [vmem:[#allocation2] sm:$0x1] %vm76_vm12, %v75_v27  }
  0x8c   :  { %v81_v28 = vpop.permute.xlu0 %80   ;;  %v87_v29 = vpop.permute.xlu1 %86  }
  0x8d   :  { %83 = vst.msk [vmem:[#allocation2] sm:$0x1] %vm82_vm13, %v81_v28  }
  0x8e   :  { %89 = vst.msk [vmem:[#allocation2] sm:$0x1] %vm88_vm14, %v87_v29  }
  0x90   :  { %v93_v30 = vpop.permute.xlu0 %92  }
  0x91   :  { %95 = vst.msk [vmem:[#allocation2] sm:$0x1] %vm94_vm15, %v93_v30  }
  0x98   :  { %v99_v31 = vld [vmem:[#allocation2] sm:$0x1] }
  0x99   :  { %101 = vst [vmem:[#allocation0] sm:$0x1] %v99_v31 }
  0x9a   :  { %154 = shalt.err (!%p151_p4)
}
  0x9b   :  { %s155_s29 = scalar_lea.hbm %s254_s1, 16 }
  0x9c   :  { %p156_p5 = scmp.ne.s32.totalorder %s254_s1, %s155_s29  ;;  %p159_p6 = scmp.lt.u32.totalorder %s155_s29, %s254_s1 }
  0x9e   :  { %p161_p7 = pnand %p159_p6, %p156_p5 }
  0xa0   :  { %164 = shalt.err (!%p161_p7)
}
  0xa1   :  { %109 = dma.vmem_to_hbm [thread:$0]  %s107_s24, 16, %s254_s1, [#allocation1]  }
  0xa2   :  { %165 = dma.done.wait [#allocation1], 16  }
  0xa3   :  { %166 = vsyncadd [#allocation1], 4294967280 }
  0xa4   :  { %111 = vsyncpa [#allocation1], 1 }

// kernel: discriminator_forward.7
= control target key start
LH: loop header
LB: loop body
LE: loop exit
PB: predicated region body
PF: predicated region fallthrough
CT: control target
= control target key end

     0   :  { %12 = vsyncpa [#allocation3], 0  ;;  %s1270_s0 = inlined_call_operand.hbm [shape: bf16[128,128], index: 0, kind: input, shape index: {}]   ;;  %s1271_s1 = inlined_call_operand.hbm [shape: f32[1,128], index: 1, kind: input, shape index: {}]   ;;  %s1272_s2 = inlined_call_operand.hbm [shape: f32[1,128], index: 2, kind: input, shape index: {}]   ;;  %s1273_s3 = inlined_call_operand.hbm [shape: bf16[128,128], index: 3, kind: input, shape index: {}]   ;;  %s1274_s4 = inlined_call_operand.hbm [shape: bf16[128,128], index: 4, kind: output, shape index: {0}]   ;;  %s1275_s5 = inlined_call_operand.hbm [shape: f32[1,1,128], index: 5, kind: output, shape index: {1}]   ;;  %s1276_s6 = inlined_call_operand.hbm [shape: f32[1,1,128], index: 6, kind: output, shape index: {2}]  }
   0x1   :  { %13 = vsyncpa [#allocation6], 0 }
   0x2   :  { %14 = vsyncpa [#allocation9], 0 }
   0x3   :  { %15 = vsyncpa [#allocation4], 0 }
   0x4   :  { %16 = vsyncpa [#allocation12], 0  ;;  %s1027_s21 = smov [#allocation5]   ;;  %s1028_s23 = smov [#allocation2]  }
   0x5   :  { %s35_s22 = sshll.u32 %s1027_s21, 4  ;;  %s22_s24 = sshll.u32 %s1028_s23, 4  ;;  %s36_s22 = int_to_ptr.vmem [resolvable:$true] %s35_s22  ;;  %s1071_s24 = int_to_ptr.vmem [resolvable:$true] %s22_s24 }
   0x6   :  { %s863_s27 = scalar_lea.hbm %s1271_s1, 16 }
   0x7   :  { %p864_p0 = scmp.ne.s32.totalorder %s1271_s1, %s863_s27  ;;  %p867_p1 = scmp.lt.u32.totalorder %s863_s27, %s1271_s1 }
   0x9   :  { %p869_p2 = pnand %p867_p1, %p864_p0 }
   0xb   :  { %872 = shalt.err (!%p869_p2)
}
   0xc   :  { %s873_s8 = scalar_lea.vmem %s36_s22, 16  ;;  %s877_s9 = scalar_lea.vmem %s36_s22, 32 }
   0xd   :  { %p874_p3 = scmp.ne.s32.totalorder %s36_s22, %s873_s8  ;;  %p878_p4 = scmp.lt.s32.totalorder %s36_s22, %s36_s22 }
   0xe   :  { %p879_p5 = scmp.lt.s32.totalorder %s877_s9, %s873_s8 }
  0x10   :  { %p880_p6 = por %p879_p5, %p878_p4 }
  0x12   :  { %p881_p7 = pnand %p880_p6, %p874_p3 }
  0x14   :  { %884 = shalt.err (!%p881_p7)
}
  0x15   :  { %38 = dma.hbm_to_vmem [thread:$0]  %s1271_s1, 16, %s36_s22, [#allocation6]  }
  0x16   :  { %s885_s14 = scalar_lea.hbm %s1270_s0, 1024 }
  0x17   :  { %p886_p8 = scmp.ne.s32.totalorder %s1270_s0, %s885_s14  ;;  %p889_p9 = scmp.lt.u32.totalorder %s885_s14, %s1270_s0 }
  0x19   :  { %p891_p10 = pnand %p889_p9, %p886_p8 }
  0x1b   :  { %894 = shalt.err (!%p891_p10)
}
  0x1c   :  { %s895_s19 = scalar_lea.vmem %s1071_s24, 1024  ;;  %p900_p12 = scmp.lt.s32.totalorder %s1071_s24, %s1071_s24 }
  0x1d   :  { %p896_p11 = scmp.ne.s32.totalorder %s1071_s24, %s895_s19  ;;  %p901_p13 = scmp.lt.s32.totalorder %s895_s19, %s895_s19 }
  0x1f   :  { %p902_p0 = por %p901_p13, %p900_p12 }
  0x21   :  { %p903_p1 = pnand %p902_p0, %p896_p11 }
  0x23   :  { %906 = shalt.err (!%p903_p1)
}
  0x24   :  { %s1029_s1 = smov 64   ;;  %s1030_s20 = smov 4  }
  0x25   :  { %28 = dma.hbm_to_vmem [thread:$0]  %s1270_s0, 1024, %s1071_s24, [#allocation3], %s1029_s1, %s1029_s1, %s1030_s20  }
  0x26   :  { %s1031_s23 = smov [#allocation7]   ;;  %s1032_s26 = smov [#allocation8]  }
  0x27   :  { %s45_s25 = sshll.u32 %s1031_s23, 4  ;;  %s54_s27 = sshll.u32 %s1032_s26, 4  ;;  %s46_s25 = int_to_ptr.vmem [resolvable:$true] %s45_s25  ;;  %s1105_s27 = int_to_ptr.vmem [resolvable:$true] %s54_s27 }
  0x28   :  { %s907_s30 = scalar_lea.hbm %s1272_s2, 16 }
  0x29   :  { %p908_p2 = scmp.ne.s32.totalorder %s1272_s2, %s907_s30  ;;  %p911_p3 = scmp.lt.u32.totalorder %s907_s30, %s1272_s2 }
  0x2b   :  { %p913_p4 = pnand %p911_p3, %p908_p2 }
  0x2d   :  { %916 = shalt.err (!%p913_p4)
}
  0x2e   :  { %s917_s0 = scalar_lea.vmem %s46_s25, 16  ;;  %s921_s24 = scalar_lea.vmem %s46_s25, 32 }
  0x2f   :  { %p918_p5 = scmp.ne.s32.totalorder %s46_s25, %s917_s0  ;;  %p922_p6 = scmp.lt.s32.totalorder %s46_s25, %s46_s25 }
  0x30   :  { %p923_p7 = scmp.lt.s32.totalorder %s921_s24, %s917_s0 }
  0x32   :  { %p924_p8 = por %p923_p7, %p922_p6 }
  0x34   :  { %p925_p9 = pnand %p924_p8, %p918_p5 }
  0x36   :  { %928 = shalt.err (!%p925_p9)
}
  0x37   :  { %48 = dma.hbm_to_vmem [thread:$0]  %s1272_s2, 16, %s46_s25, [#allocation6]  }
  0x38   :  { %s929_s15 = scalar_lea.hbm %s1273_s3, 1024 }
  0x39   :  { %p930_p10 = scmp.ne.s32.totalorder %s1273_s3, %s929_s15  ;;  %p933_p11 = scmp.lt.u32.totalorder %s929_s15, %s1273_s3 }
  0x3b   :  { %p935_p12 = pnand %p933_p11, %p930_p10 }
  0x3d   :  { %938 = shalt.err (!%p935_p12)
}
  0x3e   :  { %s939_s21 = scalar_lea.vmem %s1105_s27, 1024  ;;  %p944_p0 = scmp.lt.s32.totalorder %s1105_s27, %s1105_s27 }
  0x3f   :  { %p940_p13 = scmp.ne.s32.totalorder %s1105_s27, %s939_s21  ;;  %p945_p1 = scmp.lt.s32.totalorder %s939_s21, %s939_s21 }
  0x41   :  { %p946_p2 = por %p945_p1, %p944_p0 }
  0x43   :  { %p947_p3 = pnand %p946_p2, %p940_p13 }
  0x45   :  { %950 = shalt.err (!%p947_p3)
}
  0x46   :  { %60 = dma.hbm_to_vmem [thread:$0]  %s1273_s3, 1024, %s1105_s27, [#allocation9], %s1029_s1, %s1029_s1, %s1030_s20  }
  0x47   :  { %1017 = dma.done.wait [#allocation3], 1024  }
  0x48   :  { %1018 = vsyncadd [#allocation3], 4294966272 }
  0x49   :  { %1019 = dma.done.wait [#allocation6], 32  }
  0x4a   :  { %1020 = vsyncadd [#allocation6], 4294967264 }
  0x4b   :  { %1021 = dma.done.wait [#allocation9], 1024  }
  0x4c   :  { %1022 = vsyncadd [#allocation9], 4294966272  ;;  %v855_v0 = vld [vmem:[#allocation8] sm:$0xff]   ;;  %v856_v1 = vld [vmem:[#allocation8 + $0x8] sm:$0xff]   ;;  %s1033_s3 = smov [#allocation10]  }
  0x4d   :  { %798 = vmatprep.subr.bf16.mxu0 %v855_v0  ;;  %830 = vmatprep.subr.bf16.mxu1 %v855_v0  ;;  %v857_v2 = vld [vmem:[#allocation8 + $0x10] sm:$0xff]   ;;  %v858_v3 = vld [vmem:[#allocation8 + $0x18] sm:$0xff]   ;;  %v768_v8 = vld [vmem:[#allocation2 + $0x8] sm:$0xff]   ;;  %s613_s23 = sshll.u32 %s1033_s3, 4  ;;  %s614_s23 = int_to_ptr.vmem [resolvable:$true] %s613_s23 }
  0x4e   :  { %799 = vmatpush3.bf16.msra.mxu0 %v855_v0  ;;  %838 = vmatpush3.bf16.msra.mxu1 %v855_v0  ;;  %v697_v4 = vld [vmem:[#allocation2] sm:$0xff]   ;;  %v769_v9 = vld [vmem:[#allocation2 + $0x10] sm:$0xff]   ;;  %v770_v10 = vld [vmem:[#allocation2 + $0x18] sm:$0xff]   ;;  %v702_v12 = vunpack.c.l.bf16 %v768_v8  ;;  %v703_v13 = vunpack.c.h.bf16 %v768_v8  ;;  %s951_s25 = scalar_lea.vmem %s614_s23, 1024  ;;  %p956_p5 = scmp.lt.s32.totalorder %s614_s23, %s614_s23 }
  0x4f   :  { %800 = vmatprep.subr.bf16.mxu0 %v856_v1  ;;  %831 = vmatprep.subr.bf16.mxu1 %v856_v1  ;;  %v1139_v5 = vld [vmem:[#allocation5] ss:$0 sm:$0xff]  ;;  %v698_v6 = vunpack.c.l.bf16 %v697_v4  ;;  %v699_v7 = vunpack.c.h.bf16 %v697_v4  ;;  %v1141_v11 = vld [vmem:[#allocation7] ss:$0 sm:$0xff]  ;;  %v706_v14 = vunpack.c.l.bf16 %v769_v9  ;;  %v707_v15 = vunpack.c.h.bf16 %v769_v9  ;;  %v859_v20 = vld [vmem:[#allocation8 + $0x20] sm:$0xff]   ;;  %p952_p4 = scmp.ne.s32.totalorder %s614_s23, %s951_s25  ;;  %p957_p6 = scmp.lt.s32.totalorder %s951_s25, %s951_s25 }
  0x50   :  { %v771_v16 = vld [vmem:[#allocation2 + $0x20] sm:$0xff]   ;;  %v710_v19 = vunpack.c.l.bf16 %v770_v10  ;;  %v115_v21 = vmul.f32 %v702_v12, %v1139_v5  ;;  %v116_v22 = vmul.f32 %v703_v13, %v1139_v5  ;;  %v711_v24 = vunpack.c.h.bf16 %v770_v10  ;;  %v860_v29 = vld [vmem:[#allocation8 + $0x28] sm:$0xff]   ;;  %v861_v49 = vld [vmem:[#allocation8 + $0x30] sm:$0xff]  }
  0x51   :  { %v113_v17 = vmul.f32 %v698_v6, %v1139_v5  ;;  %v114_v18 = vmul.f32 %v699_v7, %v1139_v5  ;;  %v117_v23 = vmul.f32 %v706_v14, %v1139_v5  ;;  %v118_v27 = vmul.f32 %v707_v15, %v1139_v5  ;;  %v772_v45 = vld [vmem:[#allocation2 + $0x28] sm:$0xff]   ;;  %v773_v56 = vld [vmem:[#allocation2 + $0x30] sm:$0xff]   ;;  %v862_v63 = vld [vmem:[#allocation8 + $0x38] sm:$0xff]   ;;  %p958_p7 = por %p957_p6, %p956_p5 }
  0x52   :  { %801 = vmatpush3.bf16.msra.mxu0 %v856_v1  ;;  %839 = vmatpush3.bf16.msra.mxu1 %v856_v1  ;;  %v714_v28 = vunpack.c.l.bf16 %v771_v16  ;;  %v138_v30 = vadd.f32 %v1141_v11, %v115_v21  ;;  %v139_v31 = vadd.f32 %v1141_v11, %v116_v22  ;;  %v119_v33 = vmul.f32 %v710_v19, %v1139_v5  ;;  %v774_v4 = vld [vmem:[#allocation2 + $0x38] sm:$0xff]  }
  0x53   :  { %802 = vmatprep.subr.bf16.mxu0 %v857_v2  ;;  %832 = vmatprep.subr.bf16.mxu1 %v857_v2  ;;  %v136_v25 = vadd.f32 %v1141_v11, %v113_v17  ;;  %v137_v26 = vadd.f32 %v1141_v11, %v114_v18  ;;  %v140_v32 = vadd.f32 %v1141_v11, %v117_v23  ;;  %v715_v50 = vunpack.c.h.bf16 %v771_v16  ;;  %p959_p8 = pnand %p958_p7, %p952_p4 }
  0x54   :  { %vm154_vm2 = vcmp.gt.f32.partialorder %v138_v30, 0.0  ;;  %vm155_vm3 = vcmp.gt.f32.partialorder %v139_v31, 0.0  ;;  %v170_v36 = vmul.f32 0.2, %v138_v30  ;;  %v171_v37 = vmul.f32 0.2, %v139_v31 }
  0x55   :  { %vm152_vm0 = vcmp.gt.f32.partialorder %v136_v25, 0.0  ;;  %vm153_vm1 = vcmp.gt.f32.partialorder %v137_v26, 0.0  ;;  %v168_v34 = vmul.f32 0.2, %v136_v25  ;;  %v169_v35 = vmul.f32 0.2, %v137_v26 }
  0x56   :  { %803 = vmatpush3.bf16.msra.mxu0 %v857_v2  ;;  %840 = vmatpush3.bf16.msra.mxu1 %v857_v2  ;;  %v141_v40 = vadd.f32 %v1141_v11, %v118_v27  ;;  %v120_v41 = vmul.f32 %v711_v24, %v1139_v5  ;;  %v1157_v43 = vsel %vm154_vm2, %v138_v30, %v170_v36  ;;  %vm156_vm4 = vcmp.gt.f32.partialorder %v140_v32, 0.0 }
  0x57   :  { %804 = vmatprep.subr.bf16.mxu0 %v858_v3  ;;  %833 = vmatprep.subr.bf16.mxu1 %v858_v3  ;;  %v184_v38 = vsel %vm152_vm0, %v136_v25, %v168_v34  ;;  %v185_v39 = vsel %vm153_vm1, %v137_v26, %v169_v35  ;;  %v172_v44 = vmul.f32 0.2, %v140_v32  ;;  %v1159_v46 = vsel %vm155_vm3, %v139_v31, %v171_v37 }
  0x58   :  { %v200_v42 = vpack.c.bf16 %v185_v39, %v184_v38  ;;  %vm157_vm5 = vcmp.gt.f32.partialorder %v141_v40, 0.0  ;;  %v173_v47 = vmul.f32 0.2, %v141_v40  ;;  %v1162_v48 = vadd.f32 %v1141_v11, %v119_v33 }
  0x59   :  { %v121_v51 = vmul.f32 %v714_v28, %v1139_v5  ;;  %v1165_v52 = vsel %vm156_vm4, %v140_v32, %v172_v44  ;;  %v1170_v54 = vadd.f32 %v1141_v11, %v120_v41  ;;  %v718_v55 = vunpack.c.l.bf16 %v772_v45 }
  0x5a   :  { %805 = vmatpush3.bf16.msra.mxu0 %v858_v3  ;;  %841 = vmatpush3.bf16.msra.mxu1 %v858_v3  ;;  %v1167_v53 = vsel %vm157_vm5, %v141_v40, %v173_v47  ;;  %v201_v57 = vpack.c.bf16 %v1159_v46, %v1157_v43  ;;  %v122_v58 = vmul.f32 %v715_v50, %v1139_v5  ;;  %v174_v59 = vmul.f32 0.2, %v1162_v48 }
  0x5b   :  { %806 = vmatprep.subr.bf16.mxu0 %v859_v20  ;;  %834 = vmatprep.subr.bf16.mxu1 %v859_v20  ;;  %v144_v60 = vadd.f32 %v1141_v11, %v121_v51  ;;  %v719_v61 = vunpack.c.h.bf16 %v772_v45  ;;  %v123_v62 = vmul.f32 %v718_v55, %v1139_v5  ;;  %v202_v0 = vpack.c.bf16 %v1167_v53, %v1165_v52 }
  0x5c   :  { %814 = vmatprep.mubr.bf16.mxu0 %v200_v42  ;;  %vm158_vm6 = vcmp.gt.f32.partialorder %v1162_v48, 0.0  ;;  %v145_v1 = vadd.f32 %v1141_v11, %v122_v58  ;;  %v722_v2 = vunpack.c.l.bf16 %v773_v56  ;;  %v723_v3 = vunpack.c.h.bf16 %v773_v56 }
  0x5d   :  { %v175_v6 = vmul.f32 0.2, %v1170_v54  ;;  %vm160_vm7 = vcmp.gt.f32.partialorder %v144_v60, 0.0  ;;  %v176_v7 = vmul.f32 0.2, %v144_v60  ;;  %v124_v8 = vmul.f32 %v719_v61, %v1139_v5 }
  0x5e   :  { %807 = vmatpush3.bf16.msra.mxu0 %v859_v20  ;;  %842 = vmatpush3.bf16.msra.mxu1 %v859_v20  ;;  %vm161_vm8 = vcmp.gt.f32.partialorder %v145_v1, 0.0  ;;  %v177_v9 = vmul.f32 0.2, %v145_v1  ;;  %v146_v10 = vadd.f32 %v1141_v11, %v123_v62  ;;  %v125_v12 = vmul.f32 %v722_v2, %v1139_v5 }
  0x5f   :  { %808 = vmatprep.subr.bf16.mxu0 %v860_v29  ;;  %835 = vmatprep.subr.bf16.mxu1 %v860_v29  ;;  %v192_v13 = vsel %vm160_vm7, %v144_v60, %v176_v7  ;;  %v147_v14 = vadd.f32 %v1141_v11, %v124_v8  ;;  %v126_v15 = vmul.f32 %v723_v3, %v1139_v5  ;;  %v726_v16 = vunpack.c.l.bf16 %v774_v4 }
  0x60   :  { %v193_v17 = vsel %vm161_vm8, %v145_v1, %v177_v9  ;;  %vm162_vm9 = vcmp.gt.f32.partialorder %v146_v10, 0.0  ;;  %v178_v18 = vmul.f32 0.2, %v146_v10  ;;  %v148_v19 = vadd.f32 %v1141_v11, %v125_v12 }
  0x61   :  { %v204_v20 = vpack.c.bf16 %v193_v17, %v192_v13  ;;  %vm163_vm10 = vcmp.gt.f32.partialorder %v147_v14, 0.0  ;;  %v179_v21 = vmul.f32 0.2, %v147_v14  ;;  %v149_v22 = vadd.f32 %v1141_v11, %v126_v15 }
  0x62   :  { %809 = vmatpush3.bf16.msra.mxu0 %v860_v29  ;;  %843 = vmatpush3.bf16.msra.mxu1 %v860_v29  ;;  %v194_v23 = vsel %vm162_vm9, %v146_v10, %v178_v18  ;;  %vm164_vm11 = vcmp.gt.f32.partialorder %v148_v19, 0.0  ;;  %v180_v24 = vmul.f32 0.2, %v148_v19  ;;  %v727_v25 = vunpack.c.h.bf16 %v774_v4 }
  0x63   :  { %810 = vmatprep.subr.bf16.mxu0 %v861_v49  ;;  %836 = vmatprep.subr.bf16.mxu1 %v861_v49  ;;  %v195_v26 = vsel %vm163_vm10, %v147_v14, %v179_v21  ;;  %vm165_vm12 = vcmp.gt.f32.partialorder %v149_v22, 0.0  ;;  %v181_v27 = vmul.f32 0.2, %v149_v22  ;;  %v127_v28 = vmul.f32 %v726_v16, %v1139_v5 }
  0x64   :  { %vm159_vm13 = vcmp.gt.f32.partialorder %v1170_v54, 0.0  ;;  %822 = vmatprep.mubr.bf16.mxu1 %v204_v20  ;;  %v205_v29 = vpack.c.bf16 %v195_v26, %v194_v23  ;;  %v196_v30 = vsel %vm164_vm11, %v148_v19, %v180_v24  ;;  %v128_v31 = vmul.f32 %v727_v25, %v1139_v5 }
  0x65   :  { %v197_v32 = vsel %vm165_vm12, %v149_v22, %v181_v27  ;;  %v150_v33 = vadd.f32 %v1141_v11, %v127_v28  ;;  %v190_v36 = vsel %vm158_vm6, %v1162_v48, %v174_v59  ;;  %v191_v37 = vsel %vm159_vm13, %v1170_v54, %v175_v6 }
  0x66   :  { %811 = vmatpush3.bf16.msra.mxu0 %v861_v49  ;;  %844 = vmatpush3.bf16.msra.mxu1 %v861_v49  ;;  %v206_v34 = vpack.c.bf16 %v197_v32, %v196_v30  ;;  %v151_v35 = vadd.f32 %v1141_v11, %v128_v31  ;;  %v203_v40 = vpack.c.bf16 %v191_v37, %v190_v36 }
  0x67   :  { %812 = vmatprep.subr.bf16.mxu0 %v862_v63  ;;  %837 = vmatprep.subr.bf16.mxu1 %v862_v63  ;;  %vm166_vm14 = vcmp.gt.f32.partialorder %v150_v33, 0.0  ;;  %v182_v38 = vmul.f32 0.2, %v150_v33 }
  0x68   :  { %vm167_vm15 = vcmp.gt.f32.partialorder %v151_v35, 0.0  ;;  %v183_v5 = vmul.f32 0.2, %v151_v35 }
  0x69   :  { %v198_v39 = vsel %vm166_vm14, %v150_v33, %v182_v38 }
  0x6a   :  { %813 = vmatpush3.bf16.msra.mxu0 %v862_v63  ;;  %845 = vmatpush3.bf16.msra.mxu1 %v862_v63  ;;  %v199_v41 = vsel %vm167_vm15, %v151_v35, %v183_v5 }
  0x6b   :  { %v207_v42 = vpack.c.bf16 %v199_v41, %v198_v39 }
  0x6d   :  { %815 = vmatmul.mubr.bf16.vlgmr.msra.gmra.mrb[0].mxu0 %v201_v57  ;;  %823 = vmatmul.mubr.bf16.vlgmr.msra.gmra.mrb[0].mxu1 %v205_v29 }
  0x6e   :  { %818 = vmatprep.mubr.bf16.mxu0 %v202_v0  ;;  %826 = vmatprep.mubr.bf16.mxu1 %v206_v34 }
  0x75   :  { %819 = vmatmul.mubr.bf16.gmra.mrb[4].mxu0 %v203_v40  ;;  %827 = vmatmul.mubr.bf16.gmra.mrb[4].mxu1 %v207_v42 }
 0x140   :  { %v816_v43 = vpop.f32.mrb[0].mxu0  ;;  %v1199_v11 = vpop.f32.mrb[0].mxu1 }
 0x141   :  { %v306_v44 = vpop.f32.mrb[1].mxu0  ;;  %v1201_v45 = vpop.f32.mrb[1].mxu1  ;;  %v571_v57 = vmul.f32 %v816_v43, %v816_v43 }
 0x142   :  { %v817_v46 = vpop.f32.mrb[2].mxu0  ;;  %v1203_v47 = vpop.f32.mrb[2].mxu1  ;;  %v569_v48 = vmul.f32 %v306_v44, %v306_v44  ;;  %v577_v25 = vmul.f32 %v1201_v45, %v1201_v45 }
 0x143   :  { %v736_v49 = vpack.c.bf16 %v817_v46, %v816_v43  ;;  %v309_v50 = vpop.f32.mrb[3].mxu0  ;;  %v756_v51 = vpack.c.bf16 %v1203_v47, %v1199_v11  ;;  %v1207_v52 = vpop.f32.mrb[3].mxu1  ;;  %v572_v60 = vmul.f32 %v817_v46, %v817_v46 }
 0x144   :  { %v731_v53 = vpack.c.bf16 %v309_v50, %v306_v44  ;;  %v548_v54 = vadd.f32 %v309_v50, %v306_v44  ;;  %v570_v55 = vmul.f32 %v309_v50, %v309_v50  ;;  %v751_v56 = vpack.c.bf16 %v1207_v52, %v1201_v45 }
 0x145   :  { %775 = vst [vmem:[#allocation10 + $0x8] sm:$0xff] %v736_v49   ;;  %779 = vst [vmem:[#allocation10 + $0x28] sm:$0xff] %v756_v51  }
 0x146   :  { %732 = vst [vmem:[#allocation10] sm:$0xff] %v731_v53   ;;  %v549_v58 = vadd.f32 %v816_v43, %v548_v54  ;;  %v585_v59 = vadd.f32 %v570_v55, %v569_v48  ;;  %778 = vst [vmem:[#allocation10 + $0x20] sm:$0xff] %v751_v56  }
 0x148   :  { %v586_v61 = vadd.f32 %v585_v59, %v571_v57  ;;  %v820_v62 = vpop.f32.mrb[4].mxu0  ;;  %v550_v63 = vadd.f32 %v817_v46, %v549_v58  ;;  %v828_v0 = vpop.f32.mrb[4].mxu1 }
 0x149   :  { %v322_v1 = vpop.f32.mrb[5].mxu0  ;;  %v354_v2 = vpop.f32.mrb[5].mxu1  ;;  %v575_v19 = vmul.f32 %v820_v62, %v820_v62 }
 0x14a   :  { %v551_v3 = vadd.f32 %v550_v63, %v322_v1  ;;  %v573_v4 = vmul.f32 %v322_v1, %v322_v1  ;;  %v587_v6 = vadd.f32 %v586_v61, %v572_v60  ;;  %v821_v7 = vpop.f32.mrb[6].mxu0  ;;  %v829_v8 = vpop.f32.mrb[6].mxu1 }
 0x14b   :  { %v746_v9 = vpack.c.bf16 %v821_v7, %v820_v62  ;;  %v325_v10 = vpop.f32.mrb[7].mxu0  ;;  %v766_v12 = vpack.c.bf16 %v829_v8, %v828_v0  ;;  %v357_v13 = vpop.f32.mrb[7].mxu1  ;;  %v576_v22 = vmul.f32 %v821_v7, %v821_v7 }
 0x14c   :  { %v588_v14 = vadd.f32 %v587_v6, %v573_v4  ;;  %v741_v15 = vpack.c.bf16 %v325_v10, %v322_v1  ;;  %v552_v16 = vadd.f32 %v551_v3, %v325_v10  ;;  %v574_v17 = vmul.f32 %v325_v10, %v325_v10 }
 0x14d   :  { %777 = vst [vmem:[#allocation10 + $0x18] sm:$0xff] %v746_v9   ;;  %781 = vst [vmem:[#allocation10 + $0x38] sm:$0xff] %v766_v12   ;;  %v761_v18 = vpack.c.bf16 %v357_v13, %v354_v2 }
 0x14e   :  { %776 = vst [vmem:[#allocation10 + $0x10] sm:$0xff] %v741_v15   ;;  %v553_v20 = vadd.f32 %v820_v62, %v552_v16  ;;  %v589_v21 = vadd.f32 %v588_v14, %v574_v17 }
 0x14f   :  { %780 = vst [vmem:[#allocation10 + $0x30] sm:$0xff] %v761_v18  }
 0x150   :  { %v590_v23 = vadd.f32 %v589_v21, %v575_v19  ;;  %v554_v24 = vadd.f32 %v821_v7, %v553_v20 }
 0x151   :  { %962 = shalt.err (!%p959_p8)
}
 0x152   :  { %s963_s28 = scalar_lea.hbm %s1274_s4, 1024 }
 0x153   :  { %p964_p9 = scmp.ne.s32.totalorder %s1274_s4, %s963_s28  ;;  %p967_p10 = scmp.lt.u32.totalorder %s963_s28, %s1274_s4 }
 0x155   :  { %p969_p11 = pnand %p967_p10, %p964_p9 }
 0x157   :  { %972 = shalt.err (!%p969_p11)
}
 0x158   :  { %619 = dma.vmem_to_hbm [thread:$0]  %s614_s23, 1024, %s1274_s4, [#allocation4], %s1029_s1, %s1029_s1, %s1030_s20   ;;  %v555_v26 = vadd.f32 %v554_v24, %v1201_v45  ;;  %v591_v27 = vadd.f32 %v590_v23, %v576_v22  ;;  %v578_v30 = vmul.f32 %v1207_v52, %v1207_v52  ;;  %v579_v31 = vmul.f32 %v1199_v11, %v1199_v11 }
 0x159   :  { %v580_v34 = vmul.f32 %v1203_v47, %v1203_v47  ;;  %v581_v37 = vmul.f32 %v354_v2, %v354_v2  ;;  %v582_v41 = vmul.f32 %v357_v13, %v357_v13  ;;  %v583_v42 = vmul.f32 %v828_v0, %v828_v0  ;;  %s1034_s4 = smov [#allocation11]   ;;  %s1035_s20 = smov [#allocation13]  }
 0x15a   :  { %v592_v28 = vadd.f32 %v591_v27, %v577_v25  ;;  %v556_v29 = vadd.f32 %v555_v26, %v1207_v52  ;;  %v584_v45 = vmul.f32 %v829_v8, %v829_v8  ;;  %s626_s1 = sshll.u32 %s1034_s4, 4  ;;  %s636_s0 = sshll.u32 %s1035_s20, 4  ;;  %s627_s1 = int_to_ptr.vmem [resolvable:$true] %s626_s1  ;;  %s1238_s0 = int_to_ptr.vmem [resolvable:$true] %s636_s0 }
 0x15b   :  { %s973_s24 = scalar_lea.vmem %s627_s1, 16  ;;  %s977_s11 = scalar_lea.vmem %s627_s1, 32 }
 0x15c   :  { %v557_v32 = vadd.f32 %v1199_v11, %v556_v29  ;;  %v593_v33 = vadd.f32 %v592_v28, %v578_v30  ;;  %p974_p12 = scmp.ne.s32.totalorder %s627_s1, %s973_s24  ;;  %p978_p13 = scmp.lt.s32.totalorder %s627_s1, %s627_s1 }
 0x15d   :  { %p979_p0 = scmp.lt.s32.totalorder %s977_s11, %s973_s24 }
 0x15e   :  { %v594_v35 = vadd.f32 %v593_v33, %v579_v31  ;;  %v558_v36 = vadd.f32 %v1203_v47, %v557_v32 }
 0x15f   :  { %p980_p1 = por %p979_p0, %p978_p13 }
 0x160   :  { %v559_v38 = vadd.f32 %v558_v36, %v354_v2  ;;  %v595_v5 = vadd.f32 %v594_v35, %v580_v34 }
 0x161   :  { %p981_p2 = pnand %p980_p1, %p974_p12 }
 0x162   :  { %v596_v39 = vadd.f32 %v595_v5, %v581_v37  ;;  %v560_v40 = vadd.f32 %v559_v38, %v357_v13 }
 0x164   :  { %v561_v43 = vadd.f32 %v828_v0, %v560_v40  ;;  %v597_v44 = vadd.f32 %v596_v39, %v582_v41 }
 0x166   :  { %v562_v46 = vadd.f32 %v829_v8, %v561_v43  ;;  %v598_v48 = vadd.f32 %v597_v44, %v583_v42 }
 0x168   :  { %v563_v11 = vrot.slane %v562_v46, 4  ;;  %v599_v49 = vadd.f32 %v598_v48, %v584_v45 }
 0x16a   :  { %v600_v50 = vrot.slane %v599_v49, 4  ;;  %v564_v51 = vadd.f32 %v563_v11, %v562_v46 }
 0x16c   :  { %v565_v52 = vrot.slane %v564_v51, 2  ;;  %v601_v53 = vadd.f32 %v600_v50, %v599_v49 }
 0x16e   :  { %v566_v54 = vadd.f32 %v565_v52, %v564_v51  ;;  %v602_v47 = vrot.slane %v601_v53, 2 }
 0x170   :  { %v567_v55 = vrot.slane %v566_v54, 1  ;;  %v603_v56 = vadd.f32 %v602_v47, %v601_v53 }
 0x172   :  { %v568_v57 = vadd.f32 %v567_v55, %v566_v54  ;;  %v604_v58 = vrot.slane %v603_v56, 1 }
 0x174   :  { %606 = vst [vmem:[#allocation11] sm:$0x1] %v568_v57  ;;  %v605_v59 = vadd.f32 %v604_v58, %v603_v56 }
 0x175   :  { %984 = shalt.err (!%p981_p2)
}
 0x176   :  { %s985_s14 = scalar_lea.hbm %s1275_s5, 16 }
 0x177   :  { %p986_p3 = scmp.ne.s32.totalorder %s1275_s5, %s985_s14  ;;  %p989_p4 = scmp.lt.u32.totalorder %s985_s14, %s1275_s5 }
 0x179   :  { %p991_p5 = pnand %p989_p4, %p986_p3 }
 0x17b   :  { %994 = shalt.err (!%p991_p5)
}
 0x17c   :  { %629 = dma.vmem_to_hbm [thread:$0]  %s627_s1, 16, %s1275_s5, [#allocation12]   ;;  %607 = vst [vmem:[#allocation13] sm:$0x1] %v605_v59 }
 0x17d   :  { %s995_s2 = scalar_lea.vmem %s1238_s0, 16  ;;  %s999_s22 = scalar_lea.vmem %s1238_s0, 32 }
 0x17e   :  { %p996_p6 = scmp.ne.s32.totalorder %s1238_s0, %s995_s2  ;;  %p1000_p7 = scmp.lt.s32.totalorder %s1238_s0, %s1238_s0 }
 0x17f   :  { %p1001_p8 = scmp.lt.s32.totalorder %s999_s22, %s995_s2 }
 0x181   :  { %p1002_p9 = por %p1001_p8, %p1000_p7 }
 0x183   :  { %p1003_p10 = pnand %p1002_p9, %p996_p6 }
 0x185   :  { %1006 = shalt.err (!%p1003_p10)
}
 0x186   :  { %s1007_s25 = scalar_lea.hbm %s1276_s6, 16 }
 0x187   :  { %p1008_p11 = scmp.ne.s32.totalorder %s1276_s6, %s1007_s25  ;;  %p1011_p12 = scmp.lt.u32.totalorder %s1007_s25, %s1276_s6 }
 0x189   :  { %p1013_p13 = pnand %p1011_p12, %p1008_p11 }
 0x18b   :  { %1016 = shalt.err (!%p1013_p13)
}
 0x18c   :  { %639 = dma.vmem_to_hbm [thread:$0]  %s1238_s0, 16, %s1276_s6, [#allocation12]  }
 0x18d   :  { %1023 = dma.done.wait [#allocation4], 1024  }
 0x18e   :  { %1024 = vsyncadd [#allocation4], 4294966272 }
 0x18f   :  { %1025 = dma.done.wait [#allocation12], 32  }
 0x190   :  { %1026 = vsyncadd [#allocation12], 4294967264 }
 0x191   :  { %649 = vsyncpa [#allocation3], 1 }
 0x192   :  { %650 = vsyncpa [#allocation6], 1 }
 0x193   :  { %651 = vsyncpa [#allocation9], 1 }
 0x194   :  { %652 = vsyncpa [#allocation4], 1 }
 0x195   :  { %653 = vsyncpa [#allocation12], 1 }

// kernel: tile.43
= control target key start
LH: loop header
LB: loop body
LE: loop exit
PB: predicated region body
PF: predicated region fallthrough
CT: control target
= control target key end

     0   :  { %s28_s0 = inlined_call_operand.vmem [shape: f32[16], index: 0, kind: input, shape index: {}]   ;;  %s29_s1 = inlined_call_operand.vmem [shape: f32[16,16], index: 1, kind: output, shape index: {}]  }
   0x1   :  { %v4_v0 = vld [vmem:[%s28_s0] ss:$0 sm:$0xff] }
   0x2   :  { %5 = vst [vmem:[%s29_s1] sm:$0xff] %v4_v0  ;;  %8 = vst [vmem:[%s29_s1 + $0x8] sm:$0xff] %v4_v0 }

// kernel: tile.44
= control target key start
LH: loop header
LB: loop body
LE: loop exit
PB: predicated region body
PF: predicated region fallthrough
CT: control target
= control target key end

     0   :  { %s8_s6 = smov 3  ;;  %s22_s9 = smov 3  ;;  %s170_s0 = inlined_call_operand.vmem [shape: f32[16,16], index: 0, kind: input, shape index: {}]   ;;  %s171_s1 = inlined_call_operand.hbm [shape: f32[1,256], index: 1, kind: output, shape index: {}]  }
   0x1   :  { %v77_v0 = vld [vmem:[%s170_s0 + $0x7] ss:$8 sm:%s8_s6]   ;;  %s116_s10 = smov 112   ;;  %v79_v1 = vld [vmem:[%s170_s0 + $0x5] ss:$8 sm:%s22_s9]   ;;  %s15_s13 = smov 3 }
   0x2   :  { %10 = vrot.lane.b32.xlu0 %v77_v0, %s116_s10  ;;  %s117_s14 = smov 80   ;;  %v78_v2 = vld [vmem:[%s170_s0 + $0x6] ss:$8 sm:%s15_s13]   ;;  %s29_s17 = smov 3 }
   0x3   :  { %24 = vrot.lane.b32.xlu1 %v79_v1, %s117_s14 }
   0x4   :  { %2 = vsyncpa [#allocation1], 0  ;;  %v80_v3 = vld [vmem:[%s170_s0 + $0x4] ss:$8 sm:%s29_s17]   ;;  %s36_s20 = smov 3  ;;  %s43_s21 = smov 3 }
   0x5   :  { %s118_s22 = smov 96   ;;  %vm5_vm0 = vcmask 130048   ;;  %s119_s23 = smov 64   ;;  %v81_v4 = vld [vmem:[%s170_s0 + $0x3] ss:$8 sm:%s36_s20]   ;;  %vm12_vm1 = vcmask 1048448  }
   0x6   :  { %17 = vrot.lane.b32.xlu0 %v78_v2, %s118_s22  ;;  %s3_s26 = smov 3  ;;  %v82_v5 = vld [vmem:[%s170_s0 + $0x2] ss:$8 sm:%s43_s21]   ;;  %s50_s29 = smov 3  ;;  %vm19_vm2 = vcmask 917248   ;;  %vm26_vm3 = vcmask 786048  }
   0x7   :  { %31 = vrot.lane.b32.xlu1 %v80_v3, %s119_s23  ;;  %v4_v6 = vld [vmem:[%s170_s0] ss:$8 sm:%s3_s26]   ;;  %s120_s3 = smov 48   ;;  %s121_s4 = smov 32   ;;  %vm33_vm4 = vcmask 654848   ;;  %vm40_vm5 = vcmask 523648  }
   0x8   :  { %6 = vst.msk [vmem:[#allocation2] ss:$8 sm:$0x3] %vm5_vm0, %v4_v6   ;;  %v83_v7 = vld [vmem:[%s170_s0 + $0x1] ss:$8 sm:%s50_s29]   ;;  %s122_s0 = smov 16  }
   0x9   :  { %vm47_vm6 = vcmask 392448   ;;  %vm54_vm7 = vcmask 261248   ;;  %s123_s7 = smov [#allocation0]  }
   0xa   :  { %38 = vrot.lane.b32.xlu0 %v81_v4, %s120_s3  ;;  %s71_s8 = sshll.u32 %s123_s7, 4  ;;  %s72_s8 = int_to_ptr.vmem [resolvable:$true] %s71_s8 }
   0xb   :  { %45 = vrot.lane.b32.xlu1 %v82_v5, %s121_s4  ;;  %s92_s9 = scalar_lea.vmem %s72_s8, 32  ;;  %p97_p1 = scmp.lt.s32.totalorder %s72_s8, %s72_s8 }
   0xc   :  { %p93_p0 = scmp.ne.s32.totalorder %s72_s8, %s92_s9  ;;  %p98_p2 = scmp.lt.s32.totalorder %s92_s9, %s92_s9 }
   0xe   :  { %52 = vrot.lane.b32.xlu0 %v83_v7, %s122_s0  ;;  %p99_p3 = por %p98_p2, %p97_p1 }
  0x10   :  { %p100_p4 = pnand %p99_p3, %p93_p0 }
  0x74   :  { %v11_v8 = vpop.permute.xlu0 %10  }
  0x75   :  { %13 = vst.msk [vmem:[#allocation2] ss:$8 sm:$0x3] %vm12_vm1, %v11_v8   ;;  %v25_v9 = vpop.permute.xlu1 %24  }
  0x78   :  { %v18_v10 = vpop.permute.xlu0 %17  }
  0x79   :  { %20 = vst.msk [vmem:[#allocation2] ss:$8 sm:$0x3] %vm19_vm2, %v18_v10   ;;  %v32_v11 = vpop.permute.xlu1 %31  }
  0x7a   :  { %27 = vst.msk [vmem:[#allocation2] ss:$8 sm:$0x3] %vm26_vm3, %v25_v9  }
  0x7b   :  { %34 = vst.msk [vmem:[#allocation2] ss:$8 sm:$0x3] %vm33_vm4, %v32_v11  }
  0x7c   :  { %v39_v12 = vpop.permute.xlu0 %38  }
  0x7d   :  { %41 = vst.msk [vmem:[#allocation2] ss:$8 sm:$0x3] %vm40_vm5, %v39_v12   ;;  %v46_v13 = vpop.permute.xlu1 %45  }
  0x7e   :  { %48 = vst.msk [vmem:[#allocation2] ss:$8 sm:$0x3] %vm47_vm6, %v46_v13  }
  0x80   :  { %v53_v14 = vpop.permute.xlu0 %52  }
  0x81   :  { %55 = vst.msk [vmem:[#allocation2] ss:$8 sm:$0x3] %vm54_vm7, %v53_v14  }
  0x88   :  { %v59_v15 = vld [vmem:[#allocation2] sm:$0x1]  ;;  %v63_v16 = vld [vmem:[#allocation2 + $0x8] sm:$0x1] }
  0x89   :  { %61 = vst [vmem:[#allocation0] sm:$0x1] %v59_v15  ;;  %66 = vst [vmem:[#allocation0 + $0x1] sm:$0x1] %v63_v16 }
  0x8a   :  { %103 = shalt.err (!%p100_p4)
}
  0x8b   :  { %s104_s12 = scalar_lea.hbm %s171_s1, 32 }
  0x8c   :  { %p105_p5 = scmp.ne.s32.totalorder %s171_s1, %s104_s12  ;;  %p108_p6 = scmp.lt.u32.totalorder %s104_s12, %s171_s1 }
  0x8e   :  { %p110_p7 = pnand %p108_p6, %p105_p5 }
  0x90   :  { %113 = shalt.err (!%p110_p7)
}
  0x91   :  { %74 = dma.vmem_to_hbm [thread:$0]  %s72_s8, 32, %s171_s1, [#allocation1]  }
  0x92   :  { %114 = dma.done.wait [#allocation1], 32  }
  0x93   :  { %115 = vsyncadd [#allocation1], 4294967264 }
  0x94   :  { %76 = vsyncpa [#allocation1], 1 }

// kernel: tile.53
= control target key start
LH: loop header
LB: loop body
LE: loop exit
PB: predicated region body
PF: predicated region fallthrough
CT: control target
= control target key end

     0   :  { %s28_s0 = inlined_call_operand.vmem [shape: f32[32], index: 0, kind: input, shape index: {}]   ;;  %s29_s1 = inlined_call_operand.vmem [shape: f32[16,32], index: 1, kind: output, shape index: {}]  }
   0x1   :  { %v4_v0 = vld [vmem:[%s28_s0] ss:$0 sm:$0xff] }
   0x2   :  { %5 = vst [vmem:[%s29_s1] sm:$0xff] %v4_v0  ;;  %8 = vst [vmem:[%s29_s1 + $0x8] sm:$0xff] %v4_v0 }

// kernel: tile.54
= control target key start
LH: loop header
LB: loop body
LE: loop exit
PB: predicated region body
PF: predicated region fallthrough
CT: control target
= control target key end

     0   :  { %s90_s8 = smov 96   ;;  %vm4_vm0 = vcmask 261120   ;;  %s128_s0 = inlined_call_operand.vmem [shape: f32[16,32], index: 0, kind: input, shape index: {}]   ;;  %s129_s1 = inlined_call_operand.hbm [shape: f32[1,512], index: 1, kind: output, shape index: {}]  }
   0x1   :  { %v59_v0 = vld [vmem:[%s128_s0 + $0x3] ss:$4 sm:$0xf]   ;;  %v60_v1 = vld [vmem:[%s128_s0 + $0x2] ss:$4 sm:$0xf]  }
   0x2   :  { %8 = vrot.lane.b32.xlu0 %v59_v0, %s90_s8  ;;  %v61_v2 = vld [vmem:[%s128_s0 + $0x1] ss:$4 sm:$0xf]   ;;  %v3_v3 = vld [vmem:[%s128_s0] ss:$4 sm:$0xf]  }
   0x3   :  { %s91_s0 = smov 32   ;;  %5 = vst.msk [vmem:[#allocation2] ss:$8 sm:$0xf] %vm4_vm0, %v3_v3  }
   0x4   :  { %20 = vrot.lane.b32.xlu1 %v61_v2, %s91_s0 }
   0x5   :  { %2 = vsyncpa [#allocation1], 0  ;;  %s92_s15 = smov 64   ;;  %vm10_vm1 = vcmask 1048320   ;;  %vm16_vm2 = vcmask 785920   ;;  %vm22_vm3 = vcmask 523520  }
   0x6   :  { %14 = vrot.lane.b32.xlu0 %v60_v1, %s92_s15  ;;  %s93_s16 = smov [#allocation0]  }
   0x7   :  { %s51_s17 = sshll.u32 %s93_s16, 4  ;;  %s52_s17 = int_to_ptr.vmem [resolvable:$true] %s51_s17 }
   0x8   :  { %s66_s18 = scalar_lea.vmem %s52_s17, 64  ;;  %p71_p1 = scmp.lt.s32.totalorder %s52_s17, %s52_s17 }
   0x9   :  { %p67_p0 = scmp.ne.s32.totalorder %s52_s17, %s66_s18  ;;  %p72_p2 = scmp.lt.s32.totalorder %s66_s18, %s66_s18 }
   0xb   :  { %p73_p3 = por %p72_p2, %p71_p1 }
   0xd   :  { %p74_p4 = pnand %p73_p3, %p67_p0 }
  0x74   :  { %v9_v4 = vpop.permute.xlu0 %8  }
  0x75   :  { %11 = vst.msk [vmem:[#allocation2] ss:$8 sm:$0xf] %vm10_vm1, %v9_v4  }
  0x76   :  { %v21_v5 = vpop.permute.xlu1 %20  }
  0x78   :  { %v15_v6 = vpop.permute.xlu0 %14  }
  0x79   :  { %17 = vst.msk [vmem:[#allocation2] ss:$8 sm:$0xf] %vm16_vm2, %v15_v6  }
  0x7a   :  { %23 = vst.msk [vmem:[#allocation2] ss:$8 sm:$0xf] %vm22_vm3, %v21_v5  }
  0x81   :  { %v27_v7 = vld [vmem:[#allocation2] sm:$0x1]  ;;  %v31_v8 = vld [vmem:[#allocation2 + $0x8] sm:$0x1]  ;;  %v36_v9 = vld [vmem:[#allocation2 + $0x10] sm:$0x1] }
  0x82   :  { %29 = vst [vmem:[#allocation0] sm:$0x1] %v27_v7  ;;  %34 = vst [vmem:[#allocation0 + $0x1] sm:$0x1] %v31_v8  ;;  %v42_v10 = vld [vmem:[#allocation2 + $0x18] sm:$0x1] }
  0x83   :  { %40 = vst [vmem:[#allocation0 + $0x2] sm:$0x1] %v36_v9  ;;  %46 = vst [vmem:[#allocation0 + $0x3] sm:$0x1] %v42_v10 }
  0x84   :  { %77 = shalt.err (!%p74_p4)
}
  0x85   :  { %s78_s21 = scalar_lea.hbm %s129_s1, 64 }
  0x86   :  { %p79_p5 = scmp.ne.s32.totalorder %s129_s1, %s78_s21  ;;  %p82_p6 = scmp.lt.u32.totalorder %s78_s21, %s129_s1 }
  0x88   :  { %p84_p7 = pnand %p82_p6, %p79_p5 }
  0x8a   :  { %87 = shalt.err (!%p84_p7)
}
  0x8b   :  { %54 = dma.vmem_to_hbm [thread:$0]  %s52_s17, 64, %s129_s1, [#allocation1]  }
  0x8c   :  { %88 = dma.done.wait [#allocation1], 64  }
  0x8d   :  { %89 = vsyncadd [#allocation1], 4294967232 }
  0x8e   :  { %56 = vsyncpa [#allocation1], 1 }

// kernel: discriminator_forward.8
= control target key start
LH: loop header
LB: loop body
LE: loop exit
PB: predicated region body
PF: predicated region fallthrough
CT: control target
= control target key end

     0   :  { %12 = vsyncpa [#allocation3], 0  ;;  %s878_s0 = inlined_call_operand.hbm [shape: bf16[32,256], index: 0, kind: input, shape index: {}]   ;;  %s879_s1 = inlined_call_operand.hbm [shape: f32[1,256], index: 1, kind: input, shape index: {}]   ;;  %s880_s2 = inlined_call_operand.hbm [shape: f32[1,256], index: 2, kind: input, shape index: {}]   ;;  %s881_s3 = inlined_call_operand.hbm [shape: bf16[256,128], index: 3, kind: input, shape index: {}]   ;;  %s882_s4 = inlined_call_operand.hbm [shape: bf16[32,128], index: 4, kind: output, shape index: {0}]   ;;  %s883_s5 = inlined_call_operand.hbm [shape: f32[1,1,128], index: 5, kind: output, shape index: {1}]   ;;  %s884_s6 = inlined_call_operand.hbm [shape: f32[1,1,128], index: 6, kind: output, shape index: {2}]  }
   0x1   :  { %13 = vsyncpa [#allocation6], 0 }
   0x2   :  { %14 = vsyncpa [#allocation9], 0 }
   0x3   :  { %15 = vsyncpa [#allocation4], 0 }
   0x4   :  { %16 = vsyncpa [#allocation12], 0  ;;  %s718_s21 = smov [#allocation5]   ;;  %s719_s23 = smov [#allocation2]  }
   0x5   :  { %s35_s22 = sshll.u32 %s718_s21, 4  ;;  %s22_s24 = sshll.u32 %s719_s23, 4  ;;  %s36_s22 = int_to_ptr.vmem [resolvable:$true] %s35_s22  ;;  %s764_s24 = int_to_ptr.vmem [resolvable:$true] %s22_s24 }
   0x6   :  { %s554_s27 = scalar_lea.hbm %s879_s1, 32 }
   0x7   :  { %p555_p0 = scmp.ne.s32.totalorder %s879_s1, %s554_s27  ;;  %p558_p1 = scmp.lt.u32.totalorder %s554_s27, %s879_s1 }
   0x9   :  { %p560_p2 = pnand %p558_p1, %p555_p0 }
   0xb   :  { %563 = shalt.err (!%p560_p2)
}
   0xc   :  { %s564_s8 = scalar_lea.vmem %s36_s22, 32  ;;  %p569_p4 = scmp.lt.s32.totalorder %s36_s22, %s36_s22 }
   0xd   :  { %p565_p3 = scmp.ne.s32.totalorder %s36_s22, %s564_s8  ;;  %p570_p5 = scmp.lt.s32.totalorder %s564_s8, %s564_s8 }
   0xf   :  { %p571_p6 = por %p570_p5, %p569_p4 }
  0x11   :  { %p572_p7 = pnand %p571_p6, %p565_p3 }
  0x13   :  { %575 = shalt.err (!%p572_p7)
}
  0x14   :  { %38 = dma.hbm_to_vmem [thread:$0]  %s879_s1, 32, %s36_s22, [#allocation6]  }
  0x15   :  { %s576_s13 = scalar_lea.hbm %s878_s0, 512 }
  0x16   :  { %p577_p8 = scmp.ne.s32.totalorder %s878_s0, %s576_s13  ;;  %p580_p9 = scmp.lt.u32.totalorder %s576_s13, %s878_s0 }
  0x18   :  { %p582_p10 = pnand %p580_p9, %p577_p8 }
  0x1a   :  { %585 = shalt.err (!%p582_p10)
}
  0x1b   :  { %s586_s18 = scalar_lea.vmem %s764_s24, 512  ;;  %p591_p12 = scmp.lt.s32.totalorder %s764_s24, %s764_s24 }
  0x1c   :  { %p587_p11 = scmp.ne.s32.totalorder %s764_s24, %s586_s18  ;;  %p592_p13 = scmp.lt.s32.totalorder %s586_s18, %s586_s18 }
  0x1e   :  { %p593_p0 = por %p592_p13, %p591_p12 }
  0x20   :  { %p594_p1 = pnand %p593_p0, %p587_p11 }
  0x22   :  { %597 = shalt.err (!%p594_p1)
}
  0x23   :  { %s720_s1 = smov 128   ;;  %s721_s19 = smov 8  }
  0x24   :  { %28 = dma.hbm_to_vmem [thread:$0]  %s878_s0, 512, %s764_s24, [#allocation3], %s720_s1, %s720_s1, %s721_s19  }
  0x25   :  { %s722_s22 = smov [#allocation7]   ;;  %s723_s25 = smov [#allocation8]  }
  0x26   :  { %s45_s23 = sshll.u32 %s722_s22, 4  ;;  %s54_s26 = sshll.u32 %s723_s25, 4  ;;  %s46_s23 = int_to_ptr.vmem [resolvable:$true] %s45_s23  ;;  %s795_s26 = int_to_ptr.vmem [resolvable:$true] %s54_s26 }
  0x27   :  { %s598_s29 = scalar_lea.hbm %s880_s2, 32 }
  0x28   :  { %p599_p2 = scmp.ne.s32.totalorder %s880_s2, %s598_s29  ;;  %p602_p3 = scmp.lt.u32.totalorder %s598_s29, %s880_s2 }
  0x2a   :  { %p604_p4 = pnand %p602_p3, %p599_p2 }
  0x2c   :  { %607 = shalt.err (!%p604_p4)
}
  0x2d   :  { %s608_s0 = scalar_lea.vmem %s46_s23, 32  ;;  %p613_p6 = scmp.lt.s32.totalorder %s46_s23, %s46_s23 }
  0x2e   :  { %p609_p5 = scmp.ne.s32.totalorder %s46_s23, %s608_s0  ;;  %p614_p7 = scmp.lt.s32.totalorder %s608_s0, %s608_s0 }
  0x30   :  { %p615_p8 = por %p614_p7, %p613_p6 }
  0x32   :  { %p616_p9 = pnand %p615_p8, %p609_p5 }
  0x34   :  { %619 = shalt.err (!%p616_p9)
}
  0x35   :  { %48 = dma.hbm_to_vmem [thread:$0]  %s880_s2, 32, %s46_s23, [#allocation6]  }
  0x36   :  { %s620_s13 = scalar_lea.hbm %s881_s3, 2048 }
  0x37   :  { %p621_p10 = scmp.ne.s32.totalorder %s881_s3, %s620_s13  ;;  %p624_p11 = scmp.lt.u32.totalorder %s620_s13, %s881_s3 }
  0x39   :  { %p626_p12 = pnand %p624_p11, %p621_p10 }
  0x3b   :  { %629 = shalt.err (!%p626_p12)
}
  0x3c   :  { %s630_s18 = scalar_lea.vmem %s795_s26, 2048  ;;  %p635_p0 = scmp.lt.s32.totalorder %s795_s26, %s795_s26 }
  0x3d   :  { %p631_p13 = scmp.ne.s32.totalorder %s795_s26, %s630_s18  ;;  %p636_p1 = scmp.lt.s32.totalorder %s630_s18, %s630_s18 }
  0x3f   :  { %p637_p2 = por %p636_p1, %p635_p0 }
  0x41   :  { %p638_p3 = pnand %p637_p2, %p631_p13 }
  0x43   :  { %641 = shalt.err (!%p638_p3)
}
  0x44   :  { %s724_s2 = smov 64   ;;  %s725_s1 = smov 4  }
  0x45   :  { %60 = dma.hbm_to_vmem [thread:$0]  %s881_s3, 2048, %s795_s26, [#allocation9], %s724_s2, %s724_s2, %s725_s1  }
  0x46   :  { %708 = dma.done.wait [#allocation3], 512  }
  0x47   :  { %709 = vsyncadd [#allocation3], 4294966784 }
  0x48   :  { %710 = dma.done.wait [#allocation6], 64  }
  0x49   :  { %711 = vsyncadd [#allocation6], 4294967232 }
  0x4a   :  { %712 = dma.done.wait [#allocation9], 2048  }
  0x4b   :  { %713 = vsyncadd [#allocation9], 4294965248  ;;  %v538_v0 = vld [vmem:[#allocation8 + $0x40] sm:$0xff]   ;;  %v540_v2 = vld [vmem:[#allocation8 + $0x48] sm:$0xff]   ;;  %v88_v5 = vlaneseq  ;;  %s726_s3 = smov [#allocation10]  }
  0x4c   :  { %v539_v1 = vld [vmem:[#allocation8] sm:$0xff]   ;;  %483 = vmatprep.subr.bf16.mxu0 %v538_v0  ;;  %511 = vmatprep.subr.bf16.mxu1 %v538_v0  ;;  %v541_v3 = vld [vmem:[#allocation8 + $0x8] sm:$0xff]   ;;  %v542_v4 = vld [vmem:[#allocation8 + $0x50] sm:$0xff]   ;;  %s407_s21 = sshll.u32 %s726_s3, 4  ;;  %s408_s21 = int_to_ptr.vmem [resolvable:$true] %s407_s21 }
  0x4d   :  { %484 = vmatpush3.bf16.msra.mxu0 %v539_v1  ;;  %519 = vmatpush3.bf16.msra.mxu1 %v539_v1  ;;  %v543_v6 = vld [vmem:[#allocation8 + $0x10] sm:$0xff]   ;;  %v544_v7 = vld [vmem:[#allocation8 + $0x58] sm:$0xff]   ;;  %v89_v8 = vshrl.u32 %v88_v5, 7  ;;  %v546_v10 = vld [vmem:[#allocation8 + $0x60] sm:$0xff]   ;;  %s642_s22 = scalar_lea.vmem %s408_s21, 256  ;;  %p647_p5 = scmp.lt.s32.totalorder %s408_s21, %s408_s21 }
  0x4e   :  { %485 = vmatprep.subr.bf16.mxu0 %v540_v2  ;;  %512 = vmatprep.subr.bf16.mxu1 %v540_v2  ;;  %v545_v9 = vld [vmem:[#allocation8 + $0x18] sm:$0xff]   ;;  %v547_v12 = vld [vmem:[#allocation8 + $0x20] sm:$0xff]   ;;  %v548_v14 = vld [vmem:[#allocation8 + $0x68] sm:$0xff]   ;;  %p643_p4 = scmp.ne.s32.totalorder %s408_s21, %s642_s22  ;;  %p648_p6 = scmp.lt.s32.totalorder %s642_s22, %s642_s22 }
  0x4f   :  { %v90_v11 = vsub.s32 0, %v89_v8  ;;  %v94_v13 = vsub.s32 1, %v89_v8  ;;  %v74_v15 = vld [vmem:[#allocation2] sm:$0xff]  ;;  %v75_v16 = vld [vmem:[#allocation2 + $0x8] sm:$0xff]  ;;  %v76_v23 = vld [vmem:[#allocation2 + $0x10] sm:$0xff] }
  0x50   :  { %v86_v17 = vld [vmem:[#allocation5] sm:$0x3]  ;;  %v78_v18 = vunpack.c.l.bf16 %v74_v15  ;;  %v79_v19 = vunpack.c.h.bf16 %v74_v15  ;;  %v80_v20 = vunpack.c.l.bf16 %v75_v16  ;;  %v81_v21 = vunpack.c.h.bf16 %v75_v16  ;;  %v106_v22 = vld [vmem:[#allocation7] sm:$0x3]  ;;  %v77_v24 = vld [vmem:[#allocation2 + $0x18] sm:$0xff]  ;;  %p649_p7 = por %p648_p6, %p647_p5 }
  0x51   :  { %486 = vmatpush3.bf16.msra.mxu0 %v541_v3  ;;  %520 = vmatpush3.bf16.msra.mxu1 %v541_v3  ;;  %v91_v25 = vrot.slane %v86_v17, %v90_v11  ;;  %v95_v26 = vrot.slane %v86_v17, %v94_v13  ;;  %v111_v27 = vrot.slane %v106_v22, %v90_v11  ;;  %v549_v29 = vld [vmem:[#allocation8 + $0x28] sm:$0xff]   ;;  %v82_v30 = vunpack.c.l.bf16 %v76_v23  ;;  %v550_v34 = vld [vmem:[#allocation8 + $0x70] sm:$0xff]   ;;  %v552_v47 = vld [vmem:[#allocation8 + $0x78] sm:$0xff]  }
  0x52   :  { %487 = vmatprep.subr.bf16.mxu0 %v542_v4  ;;  %513 = vmatprep.subr.bf16.mxu1 %v542_v4  ;;  %v115_v28 = vrot.slane %v106_v22, %v94_v13  ;;  %v83_v31 = vunpack.c.h.bf16 %v76_v23  ;;  %v84_v32 = vunpack.c.l.bf16 %v77_v24  ;;  %v85_v33 = vunpack.c.h.bf16 %v77_v24  ;;  %v551_v46 = vld [vmem:[#allocation8 + $0x30] sm:$0xff]   ;;  %v553_v57 = vld [vmem:[#allocation8 + $0x38] sm:$0xff]   ;;  %p650_p8 = pnand %p649_p7, %p643_p4 }
  0x53   :  { %v99_v35 = vmul.f32 %v95_v26, %v79_v19  ;;  %v101_v36 = vmul.f32 %v95_v26, %v81_v21  ;;  %v98_v37 = vmul.f32 %v91_v25, %v78_v18  ;;  %v100_v38 = vmul.f32 %v91_v25, %v80_v20 }
  0x54   :  { %v103_v39 = vmul.f32 %v95_v26, %v83_v31  ;;  %v105_v40 = vmul.f32 %v95_v26, %v85_v33  ;;  %v102_v41 = vmul.f32 %v91_v25, %v82_v30  ;;  %v104_v45 = vmul.f32 %v91_v25, %v84_v32 }
  0x55   :  { %488 = vmatpush3.bf16.msra.mxu0 %v543_v6  ;;  %521 = vmatpush3.bf16.msra.mxu1 %v543_v6  ;;  %v119_v42 = vadd.f32 %v115_v28, %v99_v35  ;;  %v121_v43 = vadd.f32 %v115_v28, %v101_v36  ;;  %v118_v44 = vadd.f32 %v111_v27, %v98_v37 }
  0x56   :  { %489 = vmatprep.subr.bf16.mxu0 %v544_v7  ;;  %514 = vmatprep.subr.bf16.mxu1 %v544_v7  ;;  %v120_v48 = vadd.f32 %v111_v27, %v100_v38  ;;  %v123_v49 = vadd.f32 %v115_v28, %v103_v39  ;;  %v125_v50 = vadd.f32 %v115_v28, %v105_v40 }
  0x57   :  { %vm127_vm0 = vcmp.gt.f32.partialorder %v119_v42, 0.0  ;;  %vm129_vm1 = vcmp.gt.f32.partialorder %v121_v43, 0.0  ;;  %v135_v51 = vmul.f32 0.2, %v119_v42  ;;  %v137_v52 = vmul.f32 0.2, %v121_v43 }
  0x58   :  { %vm126_vm2 = vcmp.gt.f32.partialorder %v118_v44, 0.0  ;;  %vm128_vm3 = vcmp.gt.f32.partialorder %v120_v48, 0.0  ;;  %v134_v53 = vmul.f32 0.2, %v118_v44  ;;  %v136_v54 = vmul.f32 0.2, %v120_v48 }
  0x59   :  { %490 = vmatpush3.bf16.msra.mxu0 %v545_v9  ;;  %522 = vmatpush3.bf16.msra.mxu1 %v545_v9  ;;  %v143_v55 = vsel %vm127_vm0, %v119_v42, %v135_v51  ;;  %v145_v56 = vsel %vm129_vm1, %v121_v43, %v137_v52  ;;  %vm131_vm4 = vcmp.gt.f32.partialorder %v123_v49, 0.0  ;;  %vm133_vm5 = vcmp.gt.f32.partialorder %v125_v50, 0.0 }
  0x5a   :  { %491 = vmatprep.subr.bf16.mxu0 %v546_v10  ;;  %515 = vmatprep.subr.bf16.mxu1 %v546_v10  ;;  %v151_v58 = vpack.c.bf16 %v145_v56, %v143_v55  ;;  %v142_v59 = vsel %vm126_vm2, %v118_v44, %v134_v53  ;;  %v144_v60 = vsel %vm128_vm3, %v120_v48, %v136_v54  ;;  %v139_v61 = vmul.f32 0.2, %v123_v49 }
  0x5b   :  { %v141_v62 = vmul.f32 0.2, %v125_v50  ;;  %v122_v63 = vadd.f32 %v111_v27, %v102_v41  ;;  %v124_v0 = vadd.f32 %v111_v27, %v104_v45  ;;  %v150_v1 = vpack.c.bf16 %v144_v60, %v142_v59 }
  0x5c   :  { %314 = vmatprep.mubr.bf16.mxu0 %v151_v58  ;;  %v147_v2 = vsel %vm131_vm4, %v123_v49, %v139_v61 }
  0x5d   :  { %492 = vmatpush3.bf16.msra.mxu0 %v547_v12  ;;  %523 = vmatpush3.bf16.msra.mxu1 %v547_v12  ;;  %v149_v3 = vsel %vm133_vm5, %v125_v50, %v141_v62  ;;  %vm130_vm6 = vcmp.gt.f32.partialorder %v122_v63, 0.0  ;;  %vm132_vm7 = vcmp.gt.f32.partialorder %v124_v0, 0.0  ;;  %v138_v4 = vmul.f32 0.2, %v122_v63 }
  0x5e   :  { %493 = vmatprep.subr.bf16.mxu0 %v548_v14  ;;  %516 = vmatprep.subr.bf16.mxu1 %v548_v14  ;;  %v153_v5 = vpack.c.bf16 %v149_v3, %v147_v2  ;;  %v140_v6 = vmul.f32 0.2, %v124_v0 }
  0x5f   :  { %v146_v7 = vsel %vm130_vm6, %v122_v63, %v138_v4 }
  0x60   :  { %322 = vmatprep.mubr.bf16.mxu1 %v153_v5  ;;  %v148_v8 = vsel %vm132_vm7, %v124_v0, %v140_v6 }
  0x61   :  { %494 = vmatpush3.bf16.msra.mxu0 %v549_v29  ;;  %524 = vmatpush3.bf16.msra.mxu1 %v549_v29  ;;  %v152_v9 = vpack.c.bf16 %v148_v8, %v146_v7 }
  0x62   :  { %495 = vmatprep.subr.bf16.mxu0 %v550_v34  ;;  %517 = vmatprep.subr.bf16.mxu1 %v550_v34 }
  0x65   :  { %496 = vmatpush3.bf16.msra.mxu0 %v551_v46  ;;  %525 = vmatpush3.bf16.msra.mxu1 %v551_v46 }
  0x66   :  { %497 = vmatprep.subr.bf16.mxu0 %v552_v47  ;;  %518 = vmatprep.subr.bf16.mxu1 %v552_v47 }
  0x69   :  { %498 = vmatpush3.bf16.msra.mxu0 %v553_v57  ;;  %526 = vmatpush3.bf16.msra.mxu1 %v553_v57 }
  0x6c   :  { %315 = vmatmul.mubr.bf16.vlgmr.msra.gmra.mrb[0].mxu0 %v150_v1  ;;  %323 = vmatmul.mubr.bf16.vlgmr.msra.gmra.mrb[0].mxu1 %v152_v9 }
 0x13f   :  { %v499_v10 = vpop.f32.mrb[0].mxu0  ;;  %v505_v13 = vpop.f32.mrb[0].mxu1 }
 0x140   :  { %v500_v11 = vpop.f32.mrb[1].mxu0  ;;  %v506_v15 = vpop.f32.mrb[1].mxu1 }
 0x141   :  { %v501_v12 = vadd.f32 %v500_v11, %v499_v10  ;;  %v502_v14 = vpop.f32.mrb[2].mxu0  ;;  %v507_v17 = vadd.f32 %v506_v15, %v505_v13  ;;  %v508_v19 = vpop.f32.mrb[2].mxu1 }
 0x142   :  { %v503_v16 = vpop.f32.mrb[3].mxu0  ;;  %v509_v21 = vpop.f32.mrb[3].mxu1 }
 0x143   :  { %v504_v18 = vadd.f32 %v503_v16, %v502_v14  ;;  %v387_v20 = vmul.f32 %v501_v12, %v501_v12  ;;  %v389_v22 = vmul.f32 %v507_v17, %v507_v17  ;;  %v510_v26 = vadd.f32 %v509_v21, %v508_v19 }
 0x145   :  { %v475_v23 = vpack.c.bf16 %v504_v18, %v501_v12  ;;  %v378_v24 = vadd.f32 %v504_v18, %v501_v12  ;;  %v388_v25 = vmul.f32 %v504_v18, %v504_v18  ;;  %v480_v29 = vpack.c.bf16 %v510_v26, %v507_v17 }
 0x146   :  { %v390_v31 = vmul.f32 %v510_v26, %v510_v26 }
 0x147   :  { %v391_v27 = vadd.f32 %v388_v25, %v387_v20  ;;  %476 = vst [vmem:[#allocation10] sm:$0xff] %v475_v23   ;;  %v379_v28 = vadd.f32 %v507_v17, %v378_v24  ;;  %482 = vst [vmem:[#allocation10 + $0x8] sm:$0xff] %v480_v29  }
 0x149   :  { %v380_v30 = vadd.f32 %v510_v26, %v379_v28  ;;  %v392_v32 = vadd.f32 %v391_v27, %v389_v22 }
 0x14b   :  { %v381_v33 = vrot.slane %v380_v30, 4  ;;  %v393_v34 = vadd.f32 %v392_v32, %v390_v31 }
 0x14c   :  { %653 = shalt.err (!%p650_p8)
}
 0x14d   :  { %s654_s26 = scalar_lea.hbm %s882_s4, 256 }
 0x14e   :  { %p655_p9 = scmp.ne.s32.totalorder %s882_s4, %s654_s26  ;;  %p658_p10 = scmp.lt.u32.totalorder %s654_s26, %s882_s4 }
 0x150   :  { %p660_p11 = pnand %p658_p10, %p655_p9 }
 0x152   :  { %663 = shalt.err (!%p660_p11)
}
 0x153   :  { %413 = dma.vmem_to_hbm [thread:$0]  %s408_s21, 256, %s882_s4, [#allocation4], %s724_s2, %s724_s2, %s725_s1   ;;  %v382_v35 = vadd.f32 %v381_v33, %v380_v30  ;;  %v394_v36 = vrot.slane %v393_v34, 4 }
 0x154   :  { %s727_s9 = smov [#allocation11]   ;;  %s728_s24 = smov [#allocation13]  }
 0x155   :  { %v395_v37 = vadd.f32 %v394_v36, %v393_v34  ;;  %v383_v38 = vrot.slane %v382_v35, 2  ;;  %s420_s0 = sshll.u32 %s727_s9, 4  ;;  %s430_s10 = sshll.u32 %s728_s24, 4  ;;  %s421_s0 = int_to_ptr.vmem [resolvable:$true] %s420_s0  ;;  %s846_s10 = int_to_ptr.vmem [resolvable:$true] %s430_s10 }
 0x156   :  { %s664_s4 = scalar_lea.vmem %s421_s0, 16  ;;  %s668_s11 = scalar_lea.vmem %s421_s0, 32 }
 0x157   :  { %v384_v39 = vadd.f32 %v383_v38, %v382_v35  ;;  %v396_v40 = vrot.slane %v395_v37, 2  ;;  %p665_p12 = scmp.ne.s32.totalorder %s421_s0, %s664_s4  ;;  %p669_p13 = scmp.lt.s32.totalorder %s421_s0, %s421_s0 }
 0x158   :  { %p670_p0 = scmp.lt.s32.totalorder %s668_s11, %s664_s4 }
 0x159   :  { %v385_v41 = vrot.slane %v384_v39, 1  ;;  %v397_v42 = vadd.f32 %v396_v40, %v395_v37 }
 0x15a   :  { %p671_p1 = por %p670_p0, %p669_p13 }
 0x15b   :  { %v386_v43 = vadd.f32 %v385_v41, %v384_v39  ;;  %v398_v44 = vrot.slane %v397_v42, 1 }
 0x15c   :  { %p672_p2 = pnand %p671_p1, %p665_p12 }
 0x15d   :  { %400 = vst [vmem:[#allocation11] sm:$0x1] %v386_v43  ;;  %v399_v45 = vadd.f32 %v398_v44, %v397_v42 }
 0x15e   :  { %675 = shalt.err (!%p672_p2)
}
 0x15f   :  { %s676_s14 = scalar_lea.hbm %s883_s5, 16 }
 0x160   :  { %p677_p3 = scmp.ne.s32.totalorder %s883_s5, %s676_s14  ;;  %p680_p4 = scmp.lt.u32.totalorder %s676_s14, %s883_s5 }
 0x162   :  { %p682_p5 = pnand %p680_p4, %p677_p3 }
 0x164   :  { %685 = shalt.err (!%p682_p5)
}
 0x165   :  { %423 = dma.vmem_to_hbm [thread:$0]  %s421_s0, 16, %s883_s5, [#allocation12]   ;;  %401 = vst [vmem:[#allocation13] sm:$0x1] %v399_v45 }
 0x166   :  { %s686_s19 = scalar_lea.vmem %s846_s10, 16  ;;  %s690_s20 = scalar_lea.vmem %s846_s10, 32 }
 0x167   :  { %p687_p6 = scmp.ne.s32.totalorder %s846_s10, %s686_s19  ;;  %p691_p7 = scmp.lt.s32.totalorder %s846_s10, %s846_s10 }
 0x168   :  { %p692_p8 = scmp.lt.s32.totalorder %s690_s20, %s686_s19 }
 0x16a   :  { %p693_p9 = por %p692_p8, %p691_p7 }
 0x16c   :  { %p694_p10 = pnand %p693_p9, %p687_p6 }
 0x16e   :  { %697 = shalt.err (!%p694_p10)
}
 0x16f   :  { %s698_s22 = scalar_lea.hbm %s884_s6, 16 }
 0x170   :  { %p699_p11 = scmp.ne.s32.totalorder %s884_s6, %s698_s22  ;;  %p702_p12 = scmp.lt.u32.totalorder %s698_s22, %s884_s6 }
 0x172   :  { %p704_p13 = pnand %p702_p12, %p699_p11 }
 0x174   :  { %707 = shalt.err (!%p704_p13)
}
 0x175   :  { %433 = dma.vmem_to_hbm [thread:$0]  %s846_s10, 16, %s884_s6, [#allocation12]  }
 0x176   :  { %714 = dma.done.wait [#allocation4], 256  }
 0x177   :  { %715 = vsyncadd [#allocation4], 4294967040 }
 0x178   :  { %716 = dma.done.wait [#allocation12], 32  }
 0x179   :  { %717 = vsyncadd [#allocation12], 4294967264 }
 0x17a   :  { %443 = vsyncpa [#allocation3], 1 }
 0x17b   :  { %444 = vsyncpa [#allocation6], 1 }
 0x17c   :  { %445 = vsyncpa [#allocation9], 1 }
 0x17d   :  { %446 = vsyncpa [#allocation4], 1 }
 0x17e   :  { %447 = vsyncpa [#allocation12], 1 }

// kernel: discriminator_forward.9
= control target key start
LH: loop header
LB: loop body
LE: loop exit
PB: predicated region body
PF: predicated region fallthrough
CT: control target
= control target key end

     0   :  { %9 = vsyncpa [#allocation3], 0  ;;  %s838_s0 = inlined_call_operand.hbm [shape: bf16[8,512], index: 0, kind: input, shape index: {}]   ;;  %s839_s1 = inlined_call_operand.hbm [shape: f32[1,512], index: 1, kind: input, shape index: {}]   ;;  %s840_s2 = inlined_call_operand.hbm [shape: f32[1,512], index: 2, kind: input, shape index: {}]   ;;  %s841_s3 = inlined_call_operand.hbm [shape: bf16[512,128], index: 3, kind: input, shape index: {}]   ;;  %s842_s4 = inlined_call_operand.hbm [shape: f32[8,128], index: 4, kind: output, shape index: {}]  }
   0x1   :  { %10 = vsyncpa [#allocation6], 0 }
   0x2   :  { %11 = vsyncpa [#allocation9], 0 }
   0x3   :  { %12 = vsyncpa [#allocation4], 0  ;;  %s739_s15 = smov [#allocation5]   ;;  %s740_s17 = smov [#allocation2]  }
   0x4   :  { %s29_s16 = sshll.u32 %s739_s15, 4  ;;  %s19_s18 = sshll.u32 %s740_s17, 4  ;;  %s30_s16 = int_to_ptr.vmem [resolvable:$true] %s29_s16  ;;  %s20_s18 = int_to_ptr.vmem [resolvable:$true] %s19_s18 }
   0x5   :  { %s621_s21 = scalar_lea.hbm %s839_s1, 64 }
   0x6   :  { %p622_p0 = scmp.ne.s32.totalorder %s839_s1, %s621_s21  ;;  %p625_p1 = scmp.lt.u32.totalorder %s621_s21, %s839_s1 }
   0x8   :  { %p627_p2 = pnand %p625_p1, %p622_p0 }
   0xa   :  { %630 = shalt.err (!%p627_p2)
}
   0xb   :  { %s631_s26 = scalar_lea.vmem %s30_s16, 64  ;;  %p636_p4 = scmp.lt.s32.totalorder %s30_s16, %s30_s16 }
   0xc   :  { %p632_p3 = scmp.ne.s32.totalorder %s30_s16, %s631_s26  ;;  %p637_p5 = scmp.lt.s32.totalorder %s631_s26, %s631_s26 }
   0xe   :  { %p638_p6 = por %p637_p5, %p636_p4 }
  0x10   :  { %p639_p7 = pnand %p638_p6, %p632_p3 }
  0x12   :  { %642 = shalt.err (!%p639_p7)
}
  0x13   :  { %32 = dma.hbm_to_vmem [thread:$0]  %s839_s1, 64, %s30_s16, [#allocation6]  }
  0x14   :  { %s643_s5 = scalar_lea.hbm %s838_s0, 256 }
  0x15   :  { %p644_p8 = scmp.ne.s32.totalorder %s838_s0, %s643_s5  ;;  %p647_p9 = scmp.lt.u32.totalorder %s643_s5, %s838_s0 }
  0x17   :  { %p649_p10 = pnand %p647_p9, %p644_p8 }
  0x19   :  { %652 = shalt.err (!%p649_p10)
}
  0x1a   :  { %s653_s10 = scalar_lea.vmem %s20_s18, 256  ;;  %p658_p12 = scmp.lt.s32.totalorder %s20_s18, %s20_s18 }
  0x1b   :  { %p654_p11 = scmp.ne.s32.totalorder %s20_s18, %s653_s10  ;;  %p659_p13 = scmp.lt.s32.totalorder %s653_s10, %s653_s10 }
  0x1d   :  { %p660_p0 = por %p659_p13, %p658_p12 }
  0x1f   :  { %p661_p1 = pnand %p660_p0, %p654_p11 }
  0x21   :  { %664 = shalt.err (!%p661_p1)
}
  0x22   :  { %22 = dma.hbm_to_vmem [thread:$0]  %s838_s0, 256, %s20_s18, [#allocation3]  }
  0x23   :  { %s741_s12 = smov [#allocation7]   ;;  %s742_s14 = smov [#allocation8]  }
  0x24   :  { %s39_s13 = sshll.u32 %s741_s12, 4  ;;  %s48_s15 = sshll.u32 %s742_s14, 4  ;;  %s40_s13 = int_to_ptr.vmem [resolvable:$true] %s39_s13  ;;  %s795_s15 = int_to_ptr.vmem [resolvable:$true] %s48_s15 }
  0x25   :  { %s665_s19 = scalar_lea.hbm %s840_s2, 64 }
  0x26   :  { %p666_p2 = scmp.ne.s32.totalorder %s840_s2, %s665_s19  ;;  %p669_p3 = scmp.lt.u32.totalorder %s665_s19, %s840_s2 }
  0x28   :  { %p671_p4 = pnand %p669_p3, %p666_p2 }
  0x2a   :  { %674 = shalt.err (!%p671_p4)
}
  0x2b   :  { %s675_s0 = scalar_lea.vmem %s40_s13, 64  ;;  %p680_p6 = scmp.lt.s32.totalorder %s40_s13, %s40_s13 }
  0x2c   :  { %p676_p5 = scmp.ne.s32.totalorder %s40_s13, %s675_s0  ;;  %p681_p7 = scmp.lt.s32.totalorder %s675_s0, %s675_s0 }
  0x2e   :  { %p682_p8 = por %p681_p7, %p680_p6 }
  0x30   :  { %p683_p9 = pnand %p682_p8, %p676_p5 }
  0x32   :  { %686 = shalt.err (!%p683_p9)
}
  0x33   :  { %42 = dma.hbm_to_vmem [thread:$0]  %s840_s2, 64, %s40_s13, [#allocation6]  }
  0x34   :  { %s687_s27 = scalar_lea.hbm %s841_s3, 4096 }
  0x35   :  { %p688_p10 = scmp.ne.s32.totalorder %s841_s3, %s687_s27  ;;  %p691_p11 = scmp.lt.u32.totalorder %s687_s27, %s841_s3 }
  0x37   :  { %p693_p12 = pnand %p691_p11, %p688_p10 }
  0x39   :  { %696 = shalt.err (!%p693_p12)
}
  0x3a   :  { %s697_s6 = scalar_lea.vmem %s795_s15, 4096  ;;  %p702_p0 = scmp.lt.s32.totalorder %s795_s15, %s795_s15 }
  0x3b   :  { %p698_p13 = scmp.ne.s32.totalorder %s795_s15, %s697_s6  ;;  %p703_p1 = scmp.lt.s32.totalorder %s697_s6, %s697_s6 }
  0x3d   :  { %p704_p2 = por %p703_p1, %p702_p0 }
  0x3f   :  { %p705_p3 = pnand %p704_p2, %p698_p13 }
  0x41   :  { %708 = shalt.err (!%p705_p3)
}
  0x42   :  { %s743_s2 = smov 64   ;;  %s744_s7 = smov 4  }
  0x43   :  { %54 = dma.hbm_to_vmem [thread:$0]  %s841_s3, 4096, %s795_s15, [#allocation9], %s743_s2, %s743_s2, %s744_s7  }
  0x44   :  { %731 = dma.done.wait [#allocation3], 256  }
  0x45   :  { %732 = vsyncadd [#allocation3], 4294967040 }
  0x46   :  { %733 = dma.done.wait [#allocation6], 128  }
  0x47   :  { %734 = vsyncadd [#allocation6], 4294967168 }
  0x48   :  { %735 = dma.done.wait [#allocation9], 4096  }
  0x49   :  { %736 = vsyncadd [#allocation9], 4294963200  ;;  %v585_v0 = vld [vmem:[#allocation8 + $0x40] sm:$0xff]   ;;  %v589_v4 = vld [vmem:[#allocation8 + $0x48] sm:$0xff]   ;;  %v76_v21 = vlaneseq  ;;  %s745_s3 = smov [#allocation10]  }
  0x4a   :  { %v586_v1 = vld [vmem:[#allocation8 + $0xc0] sm:$0xff]   ;;  %534 = vmatprep.subr.bf16.mxu0 %v585_v0  ;;  %v590_v5 = vld [vmem:[#allocation8 + $0xc8] sm:$0xff]   ;;  %v593_v8 = vld [vmem:[#allocation8 + $0x50] sm:$0xff]   ;;  %s491_s10 = sshll.u32 %s745_s3, 4  ;;  %s492_s10 = int_to_ptr.vmem [resolvable:$true] %s491_s10 }
  0x4b   :  { %v587_v2 = vld [vmem:[#allocation8] sm:$0xff]   ;;  %556 = vmatprep.subr.bf16.mxu1 %v586_v1  ;;  %v591_v6 = vld [vmem:[#allocation8 + $0x8] sm:$0xff]   ;;  %v594_v9 = vld [vmem:[#allocation8 + $0xd0] sm:$0xff]   ;;  %v77_v26 = vshrl.u32 %v76_v21, 7  ;;  %s709_s1 = scalar_lea.vmem %s492_s10, 128  ;;  %p714_p5 = scmp.lt.s32.totalorder %s492_s10, %s492_s10 }
  0x4c   :  { %v588_v3 = vld [vmem:[#allocation8 + $0x80] sm:$0xff]   ;;  %535 = vmatpush3.bf16.msra.mxu0 %v587_v2  ;;  %v592_v7 = vld [vmem:[#allocation8 + $0x88] sm:$0xff]   ;;  %v595_v10 = vld [vmem:[#allocation8 + $0x10] sm:$0xff]   ;;  %p710_p4 = scmp.ne.s32.totalorder %s492_s10, %s709_s1  ;;  %p715_p6 = scmp.lt.s32.totalorder %s709_s1, %s709_s1 }
  0x4d   :  { %557 = vmatpush3.bf16.msra.mxu1 %v588_v3  ;;  %536 = vmatprep.subr.bf16.mxu0 %v589_v4  ;;  %v596_v11 = vld [vmem:[#allocation8 + $0x90] sm:$0xff]   ;;  %v597_v12 = vld [vmem:[#allocation8 + $0x58] sm:$0xff]   ;;  %v601_v16 = vld [vmem:[#allocation8 + $0x60] sm:$0xff]   ;;  %v82_v31 = vsub.s32 1, %v77_v26  ;;  %v90_v33 = vsub.s32 3, %v77_v26  ;;  %v78_v35 = vsub.s32 0, %v77_v26 }
  0x4e   :  { %558 = vmatprep.subr.bf16.mxu1 %v590_v5  ;;  %v598_v13 = vld [vmem:[#allocation8 + $0xd8] sm:$0xff]   ;;  %v602_v17 = vld [vmem:[#allocation8 + $0xe0] sm:$0xff]   ;;  %v605_v20 = vld [vmem:[#allocation8 + $0x68] sm:$0xff]   ;;  %v86_v37 = vsub.s32 2, %v77_v26  ;;  %p716_p7 = por %p715_p6, %p714_p5 }
  0x4f   :  { %v599_v14 = vld [vmem:[#allocation8 + $0x18] sm:$0xff]   ;;  %v603_v18 = vld [vmem:[#allocation8 + $0x20] sm:$0xff]   ;;  %v606_v22 = vld [vmem:[#allocation8 + $0xe8] sm:$0xff]  }
  0x50   :  { %537 = vmatpush3.bf16.msra.mxu0 %v591_v6  ;;  %v600_v15 = vld [vmem:[#allocation8 + $0x98] sm:$0xff]   ;;  %v604_v19 = vld [vmem:[#allocation8 + $0xa0] sm:$0xff]   ;;  %v607_v23 = vld [vmem:[#allocation8 + $0x28] sm:$0xff]   ;;  %p717_p8 = pnand %p716_p7, %p710_p4 }
  0x51   :  { %559 = vmatpush3.bf16.msra.mxu1 %v592_v7  ;;  %538 = vmatprep.subr.bf16.mxu0 %v593_v8  ;;  %v608_v24 = vld [vmem:[#allocation8 + $0xa8] sm:$0xff]   ;;  %v609_v25 = vld [vmem:[#allocation8 + $0x70] sm:$0xff]   ;;  %v613_v30 = vld [vmem:[#allocation8 + $0x78] sm:$0xff]  }
  0x52   :  { %560 = vmatprep.subr.bf16.mxu1 %v594_v9  ;;  %v610_v27 = vld [vmem:[#allocation8 + $0xf0] sm:$0xff]   ;;  %v614_v32 = vld [vmem:[#allocation8 + $0xf8] sm:$0xff]   ;;  %v68_v38 = vld [vmem:[#allocation2] sm:$0xff] }
  0x53   :  { %v611_v28 = vld [vmem:[#allocation8 + $0x30] sm:$0xff]   ;;  %v615_v34 = vld [vmem:[#allocation8 + $0x38] sm:$0xff]   ;;  %v70_v41 = vunpack.c.l.bf16 %v68_v38  ;;  %v71_v42 = vunpack.c.h.bf16 %v68_v38 }
  0x54   :  { %539 = vmatpush3.bf16.msra.mxu0 %v595_v10  ;;  %v612_v29 = vld [vmem:[#allocation8 + $0xb0] sm:$0xff]   ;;  %v616_v36 = vld [vmem:[#allocation8 + $0xb8] sm:$0xff]  }
  0x55   :  { %561 = vmatpush3.bf16.msra.mxu1 %v596_v11  ;;  %540 = vmatprep.subr.bf16.mxu0 %v597_v12  ;;  %v74_v39 = vld [vmem:[#allocation5] sm:$0xf]  ;;  %v100_v40 = vld [vmem:[#allocation7] sm:$0xf]  ;;  %v69_v45 = vld [vmem:[#allocation2 + $0x8] sm:$0xff] }
  0x56   :  { %562 = vmatprep.subr.bf16.mxu1 %v598_v13  ;;  %v83_v43 = vrot.slane %v74_v39, %v82_v31  ;;  %v109_v44 = vrot.slane %v100_v40, %v82_v31  ;;  %v72_v46 = vunpack.c.l.bf16 %v69_v45  ;;  %v73_v47 = vunpack.c.h.bf16 %v69_v45 }
  0x57   :  { %v91_v48 = vrot.slane %v74_v39, %v90_v33  ;;  %v117_v49 = vrot.slane %v100_v40, %v90_v33  ;;  %v79_v51 = vrot.slane %v74_v39, %v78_v35  ;;  %v105_v52 = vrot.slane %v100_v40, %v78_v35 }
  0x58   :  { %541 = vmatpush3.bf16.msra.mxu0 %v599_v14  ;;  %v97_v50 = vmul.f32 %v83_v43, %v71_v42  ;;  %v87_v53 = vrot.slane %v74_v39, %v86_v37  ;;  %v113_v55 = vrot.slane %v100_v40, %v86_v37 }
  0x59   :  { %563 = vmatpush3.bf16.msra.mxu1 %v600_v15  ;;  %542 = vmatprep.subr.bf16.mxu0 %v601_v16  ;;  %v99_v54 = vmul.f32 %v91_v48, %v73_v47  ;;  %v96_v57 = vmul.f32 %v79_v51, %v70_v41 }
  0x5a   :  { %564 = vmatprep.subr.bf16.mxu1 %v602_v17  ;;  %v123_v56 = vadd.f32 %v109_v44, %v97_v50  ;;  %v98_v58 = vmul.f32 %v87_v53, %v72_v46 }
  0x5b   :  { %v125_v59 = vadd.f32 %v117_v49, %v99_v54  ;;  %v122_v61 = vadd.f32 %v105_v52, %v96_v57 }
  0x5c   :  { %543 = vmatpush3.bf16.msra.mxu0 %v603_v18  ;;  %vm127_vm0 = vcmp.gt.f32.partialorder %v123_v56, 0.0  ;;  %v131_v60 = vmul.f32 0.2, %v123_v56  ;;  %v124_v62 = vadd.f32 %v113_v55, %v98_v58 }
  0x5d   :  { %565 = vmatpush3.bf16.msra.mxu1 %v604_v19  ;;  %544 = vmatprep.subr.bf16.mxu0 %v605_v20  ;;  %vm129_vm1 = vcmp.gt.f32.partialorder %v125_v59, 0.0  ;;  %v133_v63 = vmul.f32 0.2, %v125_v59  ;;  %vm126_vm2 = vcmp.gt.f32.partialorder %v122_v61, 0.0  ;;  %v130_v1 = vmul.f32 0.2, %v122_v61 }
  0x5e   :  { %566 = vmatprep.subr.bf16.mxu1 %v606_v22  ;;  %v135_v0 = vsel %vm127_vm0, %v123_v56, %v131_v60  ;;  %vm128_vm3 = vcmp.gt.f32.partialorder %v124_v62, 0.0  ;;  %v132_v4 = vmul.f32 0.2, %v124_v62 }
  0x5f   :  { %v139_v2 = vpack.c.bf16 %v135_v0, %v135_v0  ;;  %v137_v3 = vsel %vm129_vm1, %v125_v59, %v133_v63  ;;  %v134_v6 = vsel %vm126_vm2, %v122_v61, %v130_v1 }
  0x60   :  { %545 = vmatpush3.bf16.msra.mxu0 %v607_v23  ;;  %v141_v5 = vpack.c.bf16 %v137_v3, %v137_v3  ;;  %v138_v7 = vpack.c.bf16 %v134_v6, %v134_v6  ;;  %v136_v8 = vsel %vm128_vm3, %v124_v62, %v132_v4 }
  0x61   :  { %567 = vmatpush3.bf16.msra.mxu1 %v608_v24  ;;  %546 = vmatprep.subr.bf16.mxu0 %v609_v25  ;;  %v140_v9 = vpack.c.bf16 %v136_v8, %v136_v8 }
  0x62   :  { %568 = vmatprep.subr.bf16.mxu1 %v610_v27  ;;  %430 = vmatprep.mubr.bf16.mxu0 %v139_v2 }
  0x63   :  { %470 = vmatprep.mubr.bf16.mxu1 %v141_v5 }
  0x64   :  { %547 = vmatpush3.bf16.msra.mxu0 %v611_v28 }
  0x65   :  { %569 = vmatpush3.bf16.msra.mxu1 %v612_v29  ;;  %548 = vmatprep.subr.bf16.mxu0 %v613_v30 }
  0x66   :  { %570 = vmatprep.subr.bf16.mxu1 %v614_v32 }
  0x68   :  { %549 = vmatpush3.bf16.msra.mxu0 %v615_v34 }
  0x69   :  { %571 = vmatpush3.bf16.msra.mxu1 %v616_v36 }
  0x6b   :  { %431 = vmatmul.mubr.bf16.vlgmr.msra.gmra.mrb[0].mxu0 %v138_v7 }
  0x6c   :  { %471 = vmatmul.mubr.bf16.vlgmr.msra.gmra.mrb[0].mxu1 %v140_v9 }
 0x13e   :  { %v550_v10 = vpop.f32.mrb[0].mxu0 }
 0x13f   :  { %v572_v11 = vpop.f32.mrb[0].mxu1  ;;  %v551_v12 = vpop.f32.mrb[1].mxu0 }
 0x140   :  { %v552_v13 = vadd.f32 %v551_v12, %v550_v10  ;;  %v573_v14 = vpop.f32.mrb[1].mxu1  ;;  %v553_v15 = vpop.f32.mrb[2].mxu0 }
 0x141   :  { %v574_v16 = vadd.f32 %v573_v14, %v572_v11  ;;  %v575_v17 = vpop.f32.mrb[2].mxu1  ;;  %v554_v18 = vpop.f32.mrb[3].mxu0 }
 0x142   :  { %v576_v19 = vpop.f32.mrb[3].mxu1 }
 0x143   :  { %v473_v20 = vadd.f32 %v574_v16, %v552_v13 }
 0x145   :  { %v478_v21 = vsub.f32 0.0, %v473_v20 }
 0x147   :  { %v479_v22 = vmul.f32 1.442695, %v478_v21 }
 0x149   :  { %617 = vpow2.f32 %v479_v22 }
 0x153   :  { %v618_v23 = vpop.eup %617 }
 0x154   :  { %v481_v24 = vadd.f32 1.0, %v618_v23 }
 0x156   :  { %619 = vrcp.f32 %v481_v24 }
 0x160   :  { %v620_v25 = vpop.eup %619 }
 0x161   :  { %484 = vst [vmem:[#allocation10] sm:$0xff] %v620_v25 }
 0x162   :  { %720 = shalt.err (!%p717_p8)
}
 0x163   :  { %s721_s13 = scalar_lea.hbm %s842_s4, 128 }
 0x164   :  { %p722_p9 = scmp.ne.s32.totalorder %s842_s4, %s721_s13  ;;  %p725_p10 = scmp.lt.u32.totalorder %s721_s13, %s842_s4 }
 0x166   :  { %p727_p11 = pnand %p725_p10, %p722_p9 }
 0x168   :  { %730 = shalt.err (!%p727_p11)
}
 0x169   :  { %494 = dma.vmem_to_hbm [thread:$0]  %s492_s10, 128, %s842_s4, [#allocation4]  }
 0x16a   :  { %737 = dma.done.wait [#allocation4], 128  }
 0x16b   :  { %738 = vsyncadd [#allocation4], 4294967168 }
 0x16c   :  { %498 = vsyncpa [#allocation3], 1 }
 0x16d   :  { %499 = vsyncpa [#allocation6], 1 }
 0x16e   :  { %500 = vsyncpa [#allocation9], 1 }
 0x16f   :  { %501 = vsyncpa [#allocation4], 1 }

</bundles_post_ra>
